<compile_context>
chip_gen: v7x
topology: tpu7x:2x2x1
jax: 0.10.0
libtpu: 0.0.40
codegen_flags: <defaults>
</compile_context>

<pallas_src>
import math
from functools import partial

import jax
import jax.numpy as jnp
from jax.experimental import pallas as pl
from jax.experimental.pallas import tpu as pltpu


# ----------------------------- in-kernel helpers ---------------------------------
def _layer_norm(x, gamma, beta, eps=1e-5):
    mu = jnp.mean(x, axis=-1, keepdims=True)
    var = jnp.mean(jnp.square(x - mu), axis=-1, keepdims=True)
    return (x - mu) * jax.lax.rsqrt(var + eps) * gamma + beta


# ---------------------------------- fused kernel ----------------------------------
def fused_forward_kernel(x_ref, w_in_ref, b_in_ref, pe_ref,
                         w_q_ref, w_k_ref, w_v_ref, w_o_ref,
                         w_ff1_ref, w_ff2_ref, vec_ref, b_ff1_ref,
                         w_out_ref, b_out_ref, o_ref, *, batch):
    B = batch
    M2 = x_ref.shape[0]                 # rows in this S-block, s-major: row = s*B + b
    L, D, _ = w_q_ref.shape
    tS = M2 // B

    # input_net Linear + positional encoding (PE pre-expanded per-row in wrapper).
    h = jnp.dot(x_ref[...].astype(jnp.bfloat16), w_in_ref[...],
                preferred_element_type=jnp.float32) + b_in_ref[...]
    h = h + pe_ref[...]

    def layer_body(l, h):
        vec_l = vec_ref[l]                                   # [9, D] f32, lane offset 0
        b_q, b_k, b_v = vec_l[0:1], vec_l[1:2], vec_l[2:3]
        b_o, b_ff2 = vec_l[3:4], vec_l[4:5]
        g1, be1 = vec_l[5:6], vec_l[6:7]
        g2, be2 = vec_l[7:8], vec_l[8:9]
        b_ff1 = b_ff1_ref[l]                                 # [1, 2D]

        hb = h.astype(jnp.bfloat16)
        q = jnp.dot(hb, w_q_ref[l], preferred_element_type=jnp.float32) + b_q
        k = jnp.dot(hb, w_k_ref[l], preferred_element_type=jnp.float32) + b_k
        v = jnp.dot(hb, w_v_ref[l], preferred_element_type=jnp.float32) + b_v

        # head_dim == 1, scaling == 1, attention over the batch axis B:
        # per (s, d) it is a scalar softmax over b.  scores: [tS, B, B, D].
        q3 = q.reshape(tS, B, D)
        k3 = k.reshape(tS, B, D)
        v3 = v.reshape(tS, B, D)
        scores = q3[:, :, None, :] * k3[:, None, :, :]
        scores = scores - jnp.max(scores, axis=2, keepdims=True)
        p = jnp.exp(scores)
        p = p * pl.reciprocal(jnp.sum(p, axis=2, keepdims=True), approx=True)
        attn = jnp.sum(p * v3[:, None, :, :], axis=2).reshape(M2, D)
        attn = jnp.dot(attn.astype(jnp.bfloat16), w_o_ref[l],
                       preferred_element_type=jnp.float32) + b_o

        x1 = _layer_norm(h + attn, g1, be1)

        ff = jnp.dot(x1.astype(jnp.bfloat16), w_ff1_ref[l],
                     preferred_element_type=jnp.float32) + b_ff1
        ff = jnp.maximum(ff, 0.0)
        ff = jnp.dot(ff.astype(jnp.bfloat16), w_ff2_ref[l],
                     preferred_element_type=jnp.float32) + b_ff2

        return _layer_norm(x1 + ff, g2, be2)

    if L <= 4:                                   # small L: static unroll
        for l in range(L):
            h = layer_body(l, h)
    else:                                        # large L: keep code size flat
        h = jax.lax.fori_loop(0, L, layer_body, h)

    # Final Linear — weight pre-padded to a 128-lane multiple -> unmasked lane-dense
    # store (no in-kernel output reshape needed); wrapper slices off the padding.
    out = jnp.dot(h.astype(jnp.bfloat16), w_out_ref[...],
                  preferred_element_type=jnp.float32) + b_out_ref[...]
    o_ref[...] = out


# --------------------------------- parameters ------------------------------------
def _positional_encoding(max_len, d_model):
    position = jnp.arange(max_len, dtype=jnp.float32)[:, None]
    div_term = jnp.exp(jnp.arange(0, d_model, 2, dtype=jnp.float32)
                       * (-math.log(10000.0) / d_model))
    pe = jnp.zeros((max_len, d_model), jnp.float32)
    pe = pe.at[:, 0::2].set(jnp.sin(position * div_term))
    pe = pe.at[:, 1::2].set(jnp.cos(position * div_term))
    return pe


def init_params(key, input_dim, model_dim, output_dim, num_layers, max_len=64):
    """Random params packed at init into the layout the fused kernel expects.

    When loading a real PyTorch checkpoint, drop the actual weight/bias tensors
    into the same slots (biases are carried through; random here to exercise them).
    """
    d = model_dim
    L = 2 * num_layers            # encoder blocks + decoder's TransformerEncoder blocks
    dout_p = -(-output_dim // 128) * 128          # pad output lanes to 128-multiple
    s = 0.05
    wdt = jnp.bfloat16

    keys = jax.random.split(key, 4 + L)
    k_in, k_inb, k_out, k_outb = keys[:4]

    w_q, w_k, w_v, w_o, w_ff1, w_ff2, vec, b_ff1 = ([] for _ in range(8))
    one = jnp.ones((d,), jnp.float32)
    zero = jnp.zeros((d,), jnp.float32)
    for bk in keys[4:]:
        ks = jax.random.split(bk, 12)
        wq, wk_, wv, wo = (jax.random.normal(ks[i], (d, d), jnp.float32) * s
                           for i in range(4))
        w1 = jax.random.normal(ks[4], (2 * d, d), jnp.float32) * s     # torch [out, in]
        w2 = jax.random.normal(ks[5], (d, 2 * d), jnp.float32) * s
        bq, bkk, bv, bo, bf2 = (jax.random.normal(ks[6 + i], (d,), jnp.float32) * s
                                for i in range(5))
        bf1 = jax.random.normal(ks[11], (2 * d,), jnp.float32) * s

        # pre-transpose to left-multiply layout; store bf16 (MXU native).
        w_q.append(wq.T.astype(wdt))
        w_k.append(wk_.T.astype(wdt))
        w_v.append(wv.T.astype(wdt))
        w_o.append(wo.T.astype(wdt))
        w_ff1.append(w1.T.astype(wdt))             # [D, 2D]
        w_ff2.append(w2.T.astype(wdt))             # [2D, D]
        # per-layer D-vectors: all at lane offset 0, selected along sublanes.
        # rows: b_q, b_k, b_v, b_o, b_ff2, gamma1, beta1, gamma2, beta2
        vec.append(jnp.stack([bq, bkk, bv, bo, bf2, one, zero, one, zero]))
        b_ff1.append(bf1[None, :])                 # [1, 2D]

    w_out = (jax.random.normal(k_out, (output_dim, d), jnp.float32) * s).T   # [D, Dout]
    b_out = jax.random.normal(k_outb, (output_dim,), jnp.float32) * s
    w_out_p = jnp.zeros((d, dout_p), jnp.float32).at[:, :output_dim].set(w_out).astype(wdt)
    b_out_p = jnp.zeros((1, dout_p), jnp.float32).at[:, :output_dim].set(b_out[None, :])

    return {
        "w_in": (jax.random.normal(k_in, (d, input_dim), jnp.float32) * s).T.astype(wdt),
        "b_in": (jax.random.normal(k_inb, (d,), jnp.float32) * s)[None, :],   # [1, D] f32
        "pe": _positional_encoding(max_len, d),                               # [max_len, D]
        "w_q": jnp.stack(w_q), "w_k": jnp.stack(w_k), "w_v": jnp.stack(w_v),  # [L, D, D]
        "w_o": jnp.stack(w_o),                                                # [L, D, D]
        "w_ff1": jnp.stack(w_ff1),                                            # [L, D, 2D]
        "w_ff2": jnp.stack(w_ff2),                                            # [L, 2D, D]
        "vec": jnp.stack(vec),                                                # [L, 9, D]
        "b_ff1": jnp.stack(b_ff1),                                            # [L, 1, 2D]
        "w_out": w_out_p,                                                     # [D, Dout_p]
        "b_out": b_out_p,                                                     # [1, Dout_p]
        "out_dim": output_dim,
    }


# ----------------------------------- wrapper --------------------------------------
def ecg_transformer_forward(x, params, add_positional_encoding=True, block_s=None):
    B, S, Din = x.shape
    D = params["w_in"].shape[1]
    Dout = params["out_dim"]
    Dout_p = params["w_out"].shape[1]

    # S-tile: each block handles B*block_s s-major rows end-to-end (attention only
    # mixes over B, so S-blocks are independent).  For real workloads pick block_s
    # so B*block_s >= 256 rows and the [block_s, B, B, D] attention temporaries fit
    # VMEM (raise vmem_limit_bytes in CompilerParams if you size blocks up).
    if block_s is None or block_s >= S or S % block_s != 0 or (block_s * B) % 8 != 0:
        block_s = S
    row_blk = block_s * B
    grid = (S // block_s,)

    # s-major row layout: row = s*B + b (wrapper-side layout plumbing is free XLA).
    xs = jnp.transpose(x, (1, 0, 2)).reshape(S * B, Din)
    pe = params["pe"][:S] if add_positional_encoding else jnp.zeros((S, D), jnp.float32)
    pe_rows = jnp.repeat(pe, B, axis=0)            # [S*B, D], row s*B+b -> pe[s]

    def act_spec(cols):
        return pl.BlockSpec((row_blk, cols), lambda i: (i, 0))

    def whole(a):      # whole-array, constant index_map -> stays VMEM-resident
        return pl.BlockSpec(a.shape, lambda i, nd=a.ndim: (0,) * nd)

    out2d = pl.pallas_call(
        partial(fused_forward_kernel, batch=B),
        out_shape=jax.ShapeDtypeStruct((S * B, Dout_p), jnp.float32),
        grid=grid,
        in_specs=[
            act_spec(Din),                                   # x (s-major rows)
            whole(params["w_in"]), whole(params["b_in"]),
            act_spec(D),                                     # positional encoding rows
            whole(params["w_q"]), whole(params["w_k"]), whole(params["w_v"]),
            whole(params["w_o"]),
            whole(params["w_ff1"]), whole(params["w_ff2"]),
            whole(params["vec"]), whole(params["b_ff1"]),
            whole(params["w_out"]), whole(params["b_out"]),
        ],
        out_specs=act_spec(Dout_p),                          # lane-dense output slab
        compiler_params=pltpu.CompilerParams(
            dimension_semantics=("parallel",)),
    )(xs, params["w_in"], params["b_in"], pe_rows,
      params["w_q"], params["w_k"], params["w_v"], params["w_o"],
      params["w_ff1"], params["w_ff2"], params["vec"], params["b_ff1"],
      params["w_out"], params["b_out"])

    # strip lane padding, undo s-major layout
    return out2d[:, :Dout].reshape(S, B, Dout).transpose(1, 0, 2)


# ------------------------------------- main ----------------------------------------
if __name__ == "__main__":
    B, S = 2, 8
    input_dim, model_dim, output_dim = 12, 32, 16
    num_layers = 2   # encoder: 2 blocks; decoder: 2 blocks + final linear

    key = jax.random.PRNGKey(0)
    kx, kp = jax.random.split(key)
    x = jax.random.normal(kx, (B, S, input_dim), jnp.float32)
    params = init_params(kp, input_dim, model_dim, output_dim, num_layers, max_len=64)

    # block_s=4 -> grid=(2,): exercises the parallel S-grid with resident weights.
    out = jax.block_until_ready(ecg_transformer_forward(x, params, block_s=4))
    assert out.shape == (B, S, output_dim)
    assert bool(jnp.all(jnp.isfinite(out)))
    print("KERNEL_OK")
</pallas_src>

<mosaic_0001>
module attributes {stable_mosaic.version = 11 : i64} {
  func.func @fused_forward_kernel(%arg0: i32, %arg1: memref<8x12xf32, #tpu.memory_space<vmem>>, %arg2: memref<12x32xbf16, #tpu.memory_space<vmem>>, %arg3: memref<1x32xf32, #tpu.memory_space<vmem>>, %arg4: memref<8x32xf32, #tpu.memory_space<vmem>>, %arg5: memref<4x32x32xbf16, #tpu.memory_space<vmem>>, %arg6: memref<4x32x32xbf16, #tpu.memory_space<vmem>>, %arg7: memref<4x32x32xbf16, #tpu.memory_space<vmem>>, %arg8: memref<4x32x32xbf16, #tpu.memory_space<vmem>>, %arg9: memref<4x32x64xbf16, #tpu.memory_space<vmem>>, %arg10: memref<4x64x32xbf16, #tpu.memory_space<vmem>>, %arg11: memref<4x9x32xf32, #tpu.memory_space<vmem>>, %arg12: memref<4x1x64xf32, #tpu.memory_space<vmem>>, %arg13: memref<32x128xbf16, #tpu.memory_space<vmem>>, %arg14: memref<1x128xf32, #tpu.memory_space<vmem>>, %arg15: memref<8x128xf32, #tpu.memory_space<vmem>>) attributes {dimension_semantics = [#tpu.dimension_semantics<parallel>], iteration_bounds = array<i64: 2>, scalar_prefetch = 0 : i64, scratch_operands = 0 : i64, tpu.core_type = #tpu.core_type<tc>, window_params = [{transform_indices = @transform_0, window_bounds = array<i64: 8, 12>}, {pipeline_mode = #tpu.pipeline_mode<synchronous>, transform_indices = @transform_1, window_bounds = array<i64: 12, 32>}, {pipeline_mode = #tpu.pipeline_mode<synchronous>, transform_indices = @transform_2, window_bounds = array<i64: 1, 32>}, {transform_indices = @transform_3, window_bounds = array<i64: 8, 32>}, {pipeline_mode = #tpu.pipeline_mode<synchronous>, transform_indices = @transform_4, window_bounds = array<i64: 4, 32, 32>}, {pipeline_mode = #tpu.pipeline_mode<synchronous>, transform_indices = @transform_5, window_bounds = array<i64: 4, 32, 32>}, {pipeline_mode = #tpu.pipeline_mode<synchronous>, transform_indices = @transform_6, window_bounds = array<i64: 4, 32, 32>}, {pipeline_mode = #tpu.pipeline_mode<synchronous>, transform_indices = @transform_7, window_bounds = array<i64: 4, 32, 32>}, {pipeline_mode = #tpu.pipeline_mode<synchronous>, transform_indices = @transform_8, window_bounds = array<i64: 4, 32, 64>}, {pipeline_mode = #tpu.pipeline_mode<synchronous>, transform_indices = @transform_9, window_bounds = array<i64: 4, 64, 32>}, {pipeline_mode = #tpu.pipeline_mode<synchronous>, transform_indices = @transform_10, window_bounds = array<i64: 4, 9, 32>}, {pipeline_mode = #tpu.pipeline_mode<synchronous>, transform_indices = @transform_11, window_bounds = array<i64: 4, 1, 64>}, {pipeline_mode = #tpu.pipeline_mode<synchronous>, transform_indices = @transform_12, window_bounds = array<i64: 32, 128>}, {pipeline_mode = #tpu.pipeline_mode<synchronous>, transform_indices = @transform_13, window_bounds = array<i64: 1, 128>}, {transform_indices = @transform_14, window_bounds = array<i64: 8, 128>}]} {
    %c0 = arith.constant 0 : index
    %c0_0 = arith.constant 0 : index
    %0 = vector.load %arg1[%c0, %c0_0] : memref<8x12xf32, #tpu.memory_space<vmem>>, vector<8x12xf32>
    %1 = arith.truncf %0 : vector<8x12xf32> to vector<8x12xbf16>
    %c0_1 = arith.constant 0 : index
    %c0_2 = arith.constant 0 : index
    %2 = vector.load %arg2[%c0_1, %c0_2] : memref<12x32xbf16, #tpu.memory_space<vmem>>, vector<12x32xbf16>
    %cst = arith.constant dense<0.000000e+00> : vector<8x32xf32>
    %3 = tpu.matmul %1, %2, %cst {dimension_numbers = #tpu.dot_dimension_numbers<[1], [0], [0], [1], [0, 0, 1, 1], [], []>} : vector<8x12xbf16>, vector<12x32xbf16>, vector<8x32xf32> -> vector<8x32xf32>
    %c0_3 = arith.constant 0 : index
    %c0_4 = arith.constant 0 : index
    %4 = vector.load %arg3[%c0_3, %c0_4] : memref<1x32xf32, #tpu.memory_space<vmem>>, vector<1x32xf32>
    %5 = vector.broadcast %4 : vector<1x32xf32> to vector<8x32xf32>
    %6 = arith.addf %3, %5 : vector<8x32xf32>
    %c0_5 = arith.constant 0 : index
    %c0_6 = arith.constant 0 : index
    %7 = vector.load %arg4[%c0_5, %c0_6] : memref<8x32xf32, #tpu.memory_space<vmem>>, vector<8x32xf32>
    %8 = arith.addf %6, %7 : vector<8x32xf32>
    %c0_7 = arith.constant 0 : index
    %c0_8 = arith.constant 0 : index
    %c0_9 = arith.constant 0 : index
    %9 = vector.load %arg11[%c0_7, %c0_8, %c0_9] : memref<4x9x32xf32, #tpu.memory_space<vmem>>, vector<1x9x32xf32>
    %10 = vector.shape_cast %9 : vector<1x9x32xf32> to vector<9x32xf32>
    %11 = vector.extract_strided_slice %10 {offsets = [0, 0], sizes = [1, 32], strides = [1, 1]} : vector<9x32xf32> to vector<1x32xf32>
    %12 = vector.extract_strided_slice %10 {offsets = [1, 0], sizes = [1, 32], strides = [1, 1]} : vector<9x32xf32> to vector<1x32xf32>
    %13 = vector.extract_strided_slice %10 {offsets = [2, 0], sizes = [1, 32], strides = [1, 1]} : vector<9x32xf32> to vector<1x32xf32>
    %14 = vector.extract_strided_slice %10 {offsets = [3, 0], sizes = [1, 32], strides = [1, 1]} : vector<9x32xf32> to vector<1x32xf32>
    %15 = vector.extract_strided_slice %10 {offsets = [4, 0], sizes = [1, 32], strides = [1, 1]} : vector<9x32xf32> to vector<1x32xf32>
    %16 = vector.extract_strided_slice %10 {offsets = [5, 0], sizes = [1, 32], strides = [1, 1]} : vector<9x32xf32> to vector<1x32xf32>
    %17 = vector.extract_strided_slice %10 {offsets = [6, 0], sizes = [1, 32], strides = [1, 1]} : vector<9x32xf32> to vector<1x32xf32>
    %18 = vector.extract_strided_slice %10 {offsets = [7, 0], sizes = [1, 32], strides = [1, 1]} : vector<9x32xf32> to vector<1x32xf32>
    %19 = vector.extract_strided_slice %10 {offsets = [8, 0], sizes = [1, 32], strides = [1, 1]} : vector<9x32xf32> to vector<1x32xf32>
    %c0_10 = arith.constant 0 : index
    %c0_11 = arith.constant 0 : index
    %c0_12 = arith.constant 0 : index
    %20 = vector.load %arg12[%c0_10, %c0_11, %c0_12] : memref<4x1x64xf32, #tpu.memory_space<vmem>>, vector<1x1x64xf32>
    %21 = vector.shape_cast %20 : vector<1x1x64xf32> to vector<1x64xf32>
    %22 = arith.truncf %8 : vector<8x32xf32> to vector<8x32xbf16>
    %c0_13 = arith.constant 0 : index
    %c0_14 = arith.constant 0 : index
    %c0_15 = arith.constant 0 : index
    %23 = vector.load %arg5[%c0_13, %c0_14, %c0_15] : memref<4x32x32xbf16, #tpu.memory_space<vmem>>, vector<1x32x32xbf16>
    %24 = vector.shape_cast %23 : vector<1x32x32xbf16> to vector<32x32xbf16>
    %cst_16 = arith.constant dense<0.000000e+00> : vector<8x32xf32>
    %25 = tpu.matmul %22, %24, %cst_16 {dimension_numbers = #tpu.dot_dimension_numbers<[1], [0], [0], [1], [0, 0, 1, 1], [], []>} : vector<8x32xbf16>, vector<32x32xbf16>, vector<8x32xf32> -> vector<8x32xf32>
    %26 = vector.broadcast %11 : vector<1x32xf32> to vector<8x32xf32>
    %27 = arith.addf %25, %26 : vector<8x32xf32>
    %c0_17 = arith.constant 0 : index
    %c0_18 = arith.constant 0 : index
    %c0_19 = arith.constant 0 : index
    %28 = vector.load %arg6[%c0_17, %c0_18, %c0_19] : memref<4x32x32xbf16, #tpu.memory_space<vmem>>, vector<1x32x32xbf16>
    %29 = vector.shape_cast %28 : vector<1x32x32xbf16> to vector<32x32xbf16>
    %cst_20 = arith.constant dense<0.000000e+00> : vector<8x32xf32>
    %30 = tpu.matmul %22, %29, %cst_20 {dimension_numbers = #tpu.dot_dimension_numbers<[1], [0], [0], [1], [0, 0, 1, 1], [], []>} : vector<8x32xbf16>, vector<32x32xbf16>, vector<8x32xf32> -> vector<8x32xf32>
    %31 = vector.broadcast %12 : vector<1x32xf32> to vector<8x32xf32>
    %32 = arith.addf %30, %31 : vector<8x32xf32>
    %c0_21 = arith.constant 0 : index
    %c0_22 = arith.constant 0 : index
    %c0_23 = arith.constant 0 : index
    %33 = vector.load %arg7[%c0_21, %c0_22, %c0_23] : memref<4x32x32xbf16, #tpu.memory_space<vmem>>, vector<1x32x32xbf16>
    %34 = vector.shape_cast %33 : vector<1x32x32xbf16> to vector<32x32xbf16>
    %cst_24 = arith.constant dense<0.000000e+00> : vector<8x32xf32>
    %35 = tpu.matmul %22, %34, %cst_24 {dimension_numbers = #tpu.dot_dimension_numbers<[1], [0], [0], [1], [0, 0, 1, 1], [], []>} : vector<8x32xbf16>, vector<32x32xbf16>, vector<8x32xf32> -> vector<8x32xf32>
    %36 = vector.broadcast %13 : vector<1x32xf32> to vector<8x32xf32>
    %37 = arith.addf %35, %36 : vector<8x32xf32>
    %38 = vector.shape_cast %27 : vector<8x32xf32> to vector<4x2x32xf32>
    %39 = vector.shape_cast %32 : vector<8x32xf32> to vector<4x2x32xf32>
    %40 = vector.shape_cast %37 : vector<8x32xf32> to vector<4x2x32xf32>
    %41 = vector.shape_cast %38 : vector<4x2x32xf32> to vector<4x2x1x32xf32>
    %42 = vector.shape_cast %39 : vector<4x2x32xf32> to vector<4x1x2x32xf32>
    %43 = vector.broadcast %41 : vector<4x2x1x32xf32> to vector<4x2x2x32xf32>
    %44 = vector.broadcast %42 : vector<4x1x2x32xf32> to vector<4x2x2x32xf32>
    %45 = arith.mulf %43, %44 : vector<4x2x2x32xf32>
    %cst_25 = arith.constant dense<0xFF800000> : vector<4x2x32xf32>
    %46 = vector.multi_reduction <maximumf>, %45, %cst_25 [2] : vector<4x2x2x32xf32> to vector<4x2x32xf32>
    %47 = vector.shape_cast %46 : vector<4x2x32xf32> to vector<4x2x1x32xf32>
    %48 = vector.broadcast %47 : vector<4x2x1x32xf32> to vector<4x2x2x32xf32>
    %49 = arith.subf %45, %48 : vector<4x2x2x32xf32>
    %50 = math.exp %49 : vector<4x2x2x32xf32>
    %cst_26 = arith.constant dense<0.000000e+00> : vector<4x2x32xf32>
    %51 = vector.multi_reduction <add>, %50, %cst_26 [2] : vector<4x2x2x32xf32> to vector<4x2x32xf32>
    %52 = vector.shape_cast %51 : vector<4x2x32xf32> to vector<4x2x1x32xf32>
    %53 = tpu.reciprocal %52 {approx = true} : vector<4x2x1x32xf32> -> vector<4x2x1x32xf32>
    %54 = vector.broadcast %53 : vector<4x2x1x32xf32> to vector<4x2x2x32xf32>
    %55 = arith.mulf %50, %54 : vector<4x2x2x32xf32>
    %56 = vector.shape_cast %40 : vector<4x2x32xf32> to vector<4x1x2x32xf32>
    %57 = vector.broadcast %56 : vector<4x1x2x32xf32> to vector<4x2x2x32xf32>
    %58 = arith.mulf %55, %57 : vector<4x2x2x32xf32>
    %cst_27 = arith.constant dense<0.000000e+00> : vector<4x2x32xf32>
    %59 = vector.multi_reduction <add>, %58, %cst_27 [2] : vector<4x2x2x32xf32> to vector<4x2x32xf32>
    %60 = vector.shape_cast %59 : vector<4x2x32xf32> to vector<8x32xf32>
    %61 = arith.truncf %60 : vector<8x32xf32> to vector<8x32xbf16>
    %c0_28 = arith.constant 0 : index
    %c0_29 = arith.constant 0 : index
    %c0_30 = arith.constant 0 : index
    %62 = vector.load %arg8[%c0_28, %c0_29, %c0_30] : memref<4x32x32xbf16, #tpu.memory_space<vmem>>, vector<1x32x32xbf16>
    %63 = vector.shape_cast %62 : vector<1x32x32xbf16> to vector<32x32xbf16>
    %cst_31 = arith.constant dense<0.000000e+00> : vector<8x32xf32>
    %64 = tpu.matmul %61, %63, %cst_31 {dimension_numbers = #tpu.dot_dimension_numbers<[1], [0], [0], [1], [0, 0, 1, 1], [], []>} : vector<8x32xbf16>, vector<32x32xbf16>, vector<8x32xf32> -> vector<8x32xf32>
    %65 = vector.broadcast %14 : vector<1x32xf32> to vector<8x32xf32>
    %66 = arith.addf %64, %65 : vector<8x32xf32>
    %67 = arith.addf %8, %66 : vector<8x32xf32>
    %cst_32 = arith.constant dense<0.000000e+00> : vector<8xf32>
    %68 = vector.multi_reduction <add>, %67, %cst_32 [1] : vector<8x32xf32> to vector<8xf32>
    %69 = vector.shape_cast %68 : vector<8xf32> to vector<8x1xf32>
    %cst_33 = arith.constant 3.200000e+01 : f32
    %70 = vector.broadcast %cst_33 : f32 to vector<8x1xf32>
    %71 = arith.divf %69, %70 : vector<8x1xf32>
    %72 = vector.broadcast %71 : vector<8x1xf32> to vector<8x32xf32>
    %73 = arith.subf %67, %72 : vector<8x32xf32>
    %74 = arith.mulf %73, %73 : vector<8x32xf32>
    %cst_34 = arith.constant dense<0.000000e+00> : vector<8xf32>
    %75 = vector.multi_reduction <add>, %74, %cst_34 [1] : vector<8x32xf32> to vector<8xf32>
    %76 = vector.shape_cast %75 : vector<8xf32> to vector<8x1xf32>
    %cst_35 = arith.constant 3.200000e+01 : f32
    %77 = vector.broadcast %cst_35 : f32 to vector<8x1xf32>
    %78 = arith.divf %76, %77 : vector<8x1xf32>
    %79 = vector.broadcast %71 : vector<8x1xf32> to vector<8x32xf32>
    %80 = arith.subf %67, %79 : vector<8x32xf32>
    %cst_36 = arith.constant 9.99999974E-6 : f32
    %81 = vector.broadcast %cst_36 : f32 to vector<8x1xf32>
    %82 = arith.addf %78, %81 : vector<8x1xf32>
    %83 = math.rsqrt %82 : vector<8x1xf32>
    %84 = vector.broadcast %83 : vector<8x1xf32> to vector<8x32xf32>
    %85 = arith.mulf %80, %84 : vector<8x32xf32>
    %86 = vector.broadcast %16 : vector<1x32xf32> to vector<8x32xf32>
    %87 = arith.mulf %85, %86 : vector<8x32xf32>
    %88 = vector.broadcast %17 : vector<1x32xf32> to vector<8x32xf32>
    %89 = arith.addf %87, %88 : vector<8x32xf32>
    %90 = arith.truncf %89 : vector<8x32xf32> to vector<8x32xbf16>
    %c0_37 = arith.constant 0 : index
    %c0_38 = arith.constant 0 : index
    %c0_39 = arith.constant 0 : index
    %91 = vector.load %arg9[%c0_37, %c0_38, %c0_39] : memref<4x32x64xbf16, #tpu.memory_space<vmem>>, vector<1x32x64xbf16>
    %92 = vector.shape_cast %91 : vector<1x32x64xbf16> to vector<32x64xbf16>
    %cst_40 = arith.constant dense<0.000000e+00> : vector<8x64xf32>
    %93 = tpu.matmul %90, %92, %cst_40 {dimension_numbers = #tpu.dot_dimension_numbers<[1], [0], [0], [1], [0, 0, 1, 1], [], []>} : vector<8x32xbf16>, vector<32x64xbf16>, vector<8x64xf32> -> vector<8x64xf32>
    %94 = vector.broadcast %21 : vector<1x64xf32> to vector<8x64xf32>
    %95 = arith.addf %93, %94 : vector<8x64xf32>
    %cst_41 = arith.constant 0.000000e+00 : f32
    %96 = vector.broadcast %cst_41 : f32 to vector<8x64xf32>
    %97 = arith.maximumf %95, %96 : vector<8x64xf32>
    %98 = arith.truncf %97 : vector<8x64xf32> to vector<8x64xbf16>
    %c0_42 = arith.constant 0 : index
    %c0_43 = arith.constant 0 : index
    %c0_44 = arith.constant 0 : index
    %99 = vector.load %arg10[%c0_42, %c0_43, %c0_44] : memref<4x64x32xbf16, #tpu.memory_space<vmem>>, vector<1x64x32xbf16>
    %100 = vector.shape_cast %99 : vector<1x64x32xbf16> to vector<64x32xbf16>
    %cst_45 = arith.constant dense<0.000000e+00> : vector<8x32xf32>
    %101 = tpu.matmul %98, %100, %cst_45 {dimension_numbers = #tpu.dot_dimension_numbers<[1], [0], [0], [1], [0, 0, 1, 1], [], []>} : vector<8x64xbf16>, vector<64x32xbf16>, vector<8x32xf32> -> vector<8x32xf32>
    %102 = vector.broadcast %15 : vector<1x32xf32> to vector<8x32xf32>
    %103 = arith.addf %101, %102 : vector<8x32xf32>
    %104 = arith.addf %89, %103 : vector<8x32xf32>
    %cst_46 = arith.constant dense<0.000000e+00> : vector<8xf32>
    %105 = vector.multi_reduction <add>, %104, %cst_46 [1] : vector<8x32xf32> to vector<8xf32>
    %106 = vector.shape_cast %105 : vector<8xf32> to vector<8x1xf32>
    %cst_47 = arith.constant 3.200000e+01 : f32
    %107 = vector.broadcast %cst_47 : f32 to vector<8x1xf32>
    %108 = arith.divf %106, %107 : vector<8x1xf32>
    %109 = vector.broadcast %108 : vector<8x1xf32> to vector<8x32xf32>
    %110 = arith.subf %104, %109 : vector<8x32xf32>
    %111 = arith.mulf %110, %110 : vector<8x32xf32>
    %cst_48 = arith.constant dense<0.000000e+00> : vector<8xf32>
    %112 = vector.multi_reduction <add>, %111, %cst_48 [1] : vector<8x32xf32> to vector<8xf32>
    %113 = vector.shape_cast %112 : vector<8xf32> to vector<8x1xf32>
    %cst_49 = arith.constant 3.200000e+01 : f32
    %114 = vector.broadcast %cst_49 : f32 to vector<8x1xf32>
    %115 = arith.divf %113, %114 : vector<8x1xf32>
    %116 = vector.broadcast %108 : vector<8x1xf32> to vector<8x32xf32>
    %117 = arith.subf %104, %116 : vector<8x32xf32>
    %cst_50 = arith.constant 9.99999974E-6 : f32
    %118 = vector.broadcast %cst_50 : f32 to vector<8x1xf32>
    %119 = arith.addf %115, %118 : vector<8x1xf32>
    %120 = math.rsqrt %119 : vector<8x1xf32>
    %121 = vector.broadcast %120 : vector<8x1xf32> to vector<8x32xf32>
    %122 = arith.mulf %117, %121 : vector<8x32xf32>
    %123 = vector.broadcast %18 : vector<1x32xf32> to vector<8x32xf32>
    %124 = arith.mulf %122, %123 : vector<8x32xf32>
    %125 = vector.broadcast %19 : vector<1x32xf32> to vector<8x32xf32>
    %126 = arith.addf %124, %125 : vector<8x32xf32>
    %c1 = arith.constant 1 : index
    %c0_51 = arith.constant 0 : index
    %c0_52 = arith.constant 0 : index
    %127 = vector.load %arg11[%c1, %c0_51, %c0_52] : memref<4x9x32xf32, #tpu.memory_space<vmem>>, vector<1x9x32xf32>
    %128 = vector.shape_cast %127 : vector<1x9x32xf32> to vector<9x32xf32>
    %129 = vector.extract_strided_slice %128 {offsets = [0, 0], sizes = [1, 32], strides = [1, 1]} : vector<9x32xf32> to vector<1x32xf32>
    %130 = vector.extract_strided_slice %128 {offsets = [1, 0], sizes = [1, 32], strides = [1, 1]} : vector<9x32xf32> to vector<1x32xf32>
    %131 = vector.extract_strided_slice %128 {offsets = [2, 0], sizes = [1, 32], strides = [1, 1]} : vector<9x32xf32> to vector<1x32xf32>
    %132 = vector.extract_strided_slice %128 {offsets = [3, 0], sizes = [1, 32], strides = [1, 1]} : vector<9x32xf32> to vector<1x32xf32>
    %133 = vector.extract_strided_slice %128 {offsets = [4, 0], sizes = [1, 32], strides = [1, 1]} : vector<9x32xf32> to vector<1x32xf32>
    %134 = vector.extract_strided_slice %128 {offsets = [5, 0], sizes = [1, 32], strides = [1, 1]} : vector<9x32xf32> to vector<1x32xf32>
    %135 = vector.extract_strided_slice %128 {offsets = [6, 0], sizes = [1, 32], strides = [1, 1]} : vector<9x32xf32> to vector<1x32xf32>
    %136 = vector.extract_strided_slice %128 {offsets = [7, 0], sizes = [1, 32], strides = [1, 1]} : vector<9x32xf32> to vector<1x32xf32>
    %137 = vector.extract_strided_slice %128 {offsets = [8, 0], sizes = [1, 32], strides = [1, 1]} : vector<9x32xf32> to vector<1x32xf32>
    %c1_53 = arith.constant 1 : index
    %c0_54 = arith.constant 0 : index
    %c0_55 = arith.constant 0 : index
    %138 = vector.load %arg12[%c1_53, %c0_54, %c0_55] : memref<4x1x64xf32, #tpu.memory_space<vmem>>, vector<1x1x64xf32>
    %139 = vector.shape_cast %138 : vector<1x1x64xf32> to vector<1x64xf32>
    %140 = arith.truncf %126 : vector<8x32xf32> to vector<8x32xbf16>
    %c1_56 = arith.constant 1 : index
    %c0_57 = arith.constant 0 : index
    %c0_58 = arith.constant 0 : index
    %141 = vector.load %arg5[%c1_56, %c0_57, %c0_58] : memref<4x32x32xbf16, #tpu.memory_space<vmem>>, vector<1x32x32xbf16>
    %142 = vector.shape_cast %141 : vector<1x32x32xbf16> to vector<32x32xbf16>
    %cst_59 = arith.constant dense<0.000000e+00> : vector<8x32xf32>
    %143 = tpu.matmul %140, %142, %cst_59 {dimension_numbers = #tpu.dot_dimension_numbers<[1], [0], [0], [1], [0, 0, 1, 1], [], []>} : vector<8x32xbf16>, vector<32x32xbf16>, vector<8x32xf32> -> vector<8x32xf32>
    %144 = vector.broadcast %129 : vector<1x32xf32> to vector<8x32xf32>
    %145 = arith.addf %143, %144 : vector<8x32xf32>
    %c1_60 = arith.constant 1 : index
    %c0_61 = arith.constant 0 : index
    %c0_62 = arith.constant 0 : index
    %146 = vector.load %arg6[%c1_60, %c0_61, %c0_62] : memref<4x32x32xbf16, #tpu.memory_space<vmem>>, vector<1x32x32xbf16>
    %147 = vector.shape_cast %146 : vector<1x32x32xbf16> to vector<32x32xbf16>
    %cst_63 = arith.constant dense<0.000000e+00> : vector<8x32xf32>
    %148 = tpu.matmul %140, %147, %cst_63 {dimension_numbers = #tpu.dot_dimension_numbers<[1], [0], [0], [1], [0, 0, 1, 1], [], []>} : vector<8x32xbf16>, vector<32x32xbf16>, vector<8x32xf32> -> vector<8x32xf32>
    %149 = vector.broadcast %130 : vector<1x32xf32> to vector<8x32xf32>
    %150 = arith.addf %148, %149 : vector<8x32xf32>
    %c1_64 = arith.constant 1 : index
    %c0_65 = arith.constant 0 : index
    %c0_66 = arith.constant 0 : index
    %151 = vector.load %arg7[%c1_64, %c0_65, %c0_66] : memref<4x32x32xbf16, #tpu.memory_space<vmem>>, vector<1x32x32xbf16>
    %152 = vector.shape_cast %151 : vector<1x32x32xbf16> to vector<32x32xbf16>
    %cst_67 = arith.constant dense<0.000000e+00> : vector<8x32xf32>
    %153 = tpu.matmul %140, %152, %cst_67 {dimension_numbers = #tpu.dot_dimension_numbers<[1], [0], [0], [1], [0, 0, 1, 1], [], []>} : vector<8x32xbf16>, vector<32x32xbf16>, vector<8x32xf32> -> vector<8x32xf32>
    %154 = vector.broadcast %131 : vector<1x32xf32> to vector<8x32xf32>
    %155 = arith.addf %153, %154 : vector<8x32xf32>
    %156 = vector.shape_cast %145 : vector<8x32xf32> to vector<4x2x32xf32>
    %157 = vector.shape_cast %150 : vector<8x32xf32> to vector<4x2x32xf32>
    %158 = vector.shape_cast %155 : vector<8x32xf32> to vector<4x2x32xf32>
    %159 = vector.shape_cast %156 : vector<4x2x32xf32> to vector<4x2x1x32xf32>
    %160 = vector.shape_cast %157 : vector<4x2x32xf32> to vector<4x1x2x32xf32>
    %161 = vector.broadcast %159 : vector<4x2x1x32xf32> to vector<4x2x2x32xf32>
    %162 = vector.broadcast %160 : vector<4x1x2x32xf32> to vector<4x2x2x32xf32>
    %163 = arith.mulf %161, %162 : vector<4x2x2x32xf32>
    %cst_68 = arith.constant dense<0xFF800000> : vector<4x2x32xf32>
    %164 = vector.multi_reduction <maximumf>, %163, %cst_68 [2] : vector<4x2x2x32xf32> to vector<4x2x32xf32>
    %165 = vector.shape_cast %164 : vector<4x2x32xf32> to vector<4x2x1x32xf32>
    %166 = vector.broadcast %165 : vector<4x2x1x32xf32> to vector<4x2x2x32xf32>
    %167 = arith.subf %163, %166 : vector<4x2x2x32xf32>
    %168 = math.exp %167 : vector<4x2x2x32xf32>
    %cst_69 = arith.constant dense<0.000000e+00> : vector<4x2x32xf32>
    %169 = vector.multi_reduction <add>, %168, %cst_69 [2] : vector<4x2x2x32xf32> to vector<4x2x32xf32>
    %170 = vector.shape_cast %169 : vector<4x2x32xf32> to vector<4x2x1x32xf32>
    %171 = tpu.reciprocal %170 {approx = true} : vector<4x2x1x32xf32> -> vector<4x2x1x32xf32>
    %172 = vector.broadcast %171 : vector<4x2x1x32xf32> to vector<4x2x2x32xf32>
    %173 = arith.mulf %168, %172 : vector<4x2x2x32xf32>
    %174 = vector.shape_cast %158 : vector<4x2x32xf32> to vector<4x1x2x32xf32>
    %175 = vector.broadcast %174 : vector<4x1x2x32xf32> to vector<4x2x2x32xf32>
    %176 = arith.mulf %173, %175 : vector<4x2x2x32xf32>
    %cst_70 = arith.constant dense<0.000000e+00> : vector<4x2x32xf32>
    %177 = vector.multi_reduction <add>, %176, %cst_70 [2] : vector<4x2x2x32xf32> to vector<4x2x32xf32>
    %178 = vector.shape_cast %177 : vector<4x2x32xf32> to vector<8x32xf32>
    %179 = arith.truncf %178 : vector<8x32xf32> to vector<8x32xbf16>
    %c1_71 = arith.constant 1 : index
    %c0_72 = arith.constant 0 : index
    %c0_73 = arith.constant 0 : index
    %180 = vector.load %arg8[%c1_71, %c0_72, %c0_73] : memref<4x32x32xbf16, #tpu.memory_space<vmem>>, vector<1x32x32xbf16>
    %181 = vector.shape_cast %180 : vector<1x32x32xbf16> to vector<32x32xbf16>
    %cst_74 = arith.constant dense<0.000000e+00> : vector<8x32xf32>
    %182 = tpu.matmul %179, %181, %cst_74 {dimension_numbers = #tpu.dot_dimension_numbers<[1], [0], [0], [1], [0, 0, 1, 1], [], []>} : vector<8x32xbf16>, vector<32x32xbf16>, vector<8x32xf32> -> vector<8x32xf32>
    %183 = vector.broadcast %132 : vector<1x32xf32> to vector<8x32xf32>
    %184 = arith.addf %182, %183 : vector<8x32xf32>
    %185 = arith.addf %126, %184 : vector<8x32xf32>
    %cst_75 = arith.constant dense<0.000000e+00> : vector<8xf32>
    %186 = vector.multi_reduction <add>, %185, %cst_75 [1] : vector<8x32xf32> to vector<8xf32>
    %187 = vector.shape_cast %186 : vector<8xf32> to vector<8x1xf32>
    %cst_76 = arith.constant 3.200000e+01 : f32
    %188 = vector.broadcast %cst_76 : f32 to vector<8x1xf32>
    %189 = arith.divf %187, %188 : vector<8x1xf32>
    %190 = vector.broadcast %189 : vector<8x1xf32> to vector<8x32xf32>
    %191 = arith.subf %185, %190 : vector<8x32xf32>
    %192 = arith.mulf %191, %191 : vector<8x32xf32>
    %cst_77 = arith.constant dense<0.000000e+00> : vector<8xf32>
    %193 = vector.multi_reduction <add>, %192, %cst_77 [1] : vector<8x32xf32> to vector<8xf32>
    %194 = vector.shape_cast %193 : vector<8xf32> to vector<8x1xf32>
    %cst_78 = arith.constant 3.200000e+01 : f32
    %195 = vector.broadcast %cst_78 : f32 to vector<8x1xf32>
    %196 = arith.divf %194, %195 : vector<8x1xf32>
    %197 = vector.broadcast %189 : vector<8x1xf32> to vector<8x32xf32>
    %198 = arith.subf %185, %197 : vector<8x32xf32>
    %cst_79 = arith.constant 9.99999974E-6 : f32
    %199 = vector.broadcast %cst_79 : f32 to vector<8x1xf32>
    %200 = arith.addf %196, %199 : vector<8x1xf32>
    %201 = math.rsqrt %200 : vector<8x1xf32>
    %202 = vector.broadcast %201 : vector<8x1xf32> to vector<8x32xf32>
    %203 = arith.mulf %198, %202 : vector<8x32xf32>
    %204 = vector.broadcast %134 : vector<1x32xf32> to vector<8x32xf32>
    %205 = arith.mulf %203, %204 : vector<8x32xf32>
    %206 = vector.broadcast %135 : vector<1x32xf32> to vector<8x32xf32>
    %207 = arith.addf %205, %206 : vector<8x32xf32>
    %208 = arith.truncf %207 : vector<8x32xf32> to vector<8x32xbf16>
    %c1_80 = arith.constant 1 : index
    %c0_81 = arith.constant 0 : index
    %c0_82 = arith.constant 0 : index
    %209 = vector.load %arg9[%c1_80, %c0_81, %c0_82] : memref<4x32x64xbf16, #tpu.memory_space<vmem>>, vector<1x32x64xbf16>
    %210 = vector.shape_cast %209 : vector<1x32x64xbf16> to vector<32x64xbf16>
    %cst_83 = arith.constant dense<0.000000e+00> : vector<8x64xf32>
    %211 = tpu.matmul %208, %210, %cst_83 {dimension_numbers = #tpu.dot_dimension_numbers<[1], [0], [0], [1], [0, 0, 1, 1], [], []>} : vector<8x32xbf16>, vector<32x64xbf16>, vector<8x64xf32> -> vector<8x64xf32>
    %212 = vector.broadcast %139 : vector<1x64xf32> to vector<8x64xf32>
    %213 = arith.addf %211, %212 : vector<8x64xf32>
    %cst_84 = arith.constant 0.000000e+00 : f32
    %214 = vector.broadcast %cst_84 : f32 to vector<8x64xf32>
    %215 = arith.maximumf %213, %214 : vector<8x64xf32>
    %216 = arith.truncf %215 : vector<8x64xf32> to vector<8x64xbf16>
    %c1_85 = arith.constant 1 : index
    %c0_86 = arith.constant 0 : index
    %c0_87 = arith.constant 0 : index
    %217 = vector.load %arg10[%c1_85, %c0_86, %c0_87] : memref<4x64x32xbf16, #tpu.memory_space<vmem>>, vector<1x64x32xbf16>
    %218 = vector.shape_cast %217 : vector<1x64x32xbf16> to vector<64x32xbf16>
    %cst_88 = arith.constant dense<0.000000e+00> : vector<8x32xf32>
    %219 = tpu.matmul %216, %218, %cst_88 {dimension_numbers = #tpu.dot_dimension_numbers<[1], [0], [0], [1], [0, 0, 1, 1], [], []>} : vector<8x64xbf16>, vector<64x32xbf16>, vector<8x32xf32> -> vector<8x32xf32>
    %220 = vector.broadcast %133 : vector<1x32xf32> to vector<8x32xf32>
    %221 = arith.addf %219, %220 : vector<8x32xf32>
    %222 = arith.addf %207, %221 : vector<8x32xf32>
    %cst_89 = arith.constant dense<0.000000e+00> : vector<8xf32>
    %223 = vector.multi_reduction <add>, %222, %cst_89 [1] : vector<8x32xf32> to vector<8xf32>
    %224 = vector.shape_cast %223 : vector<8xf32> to vector<8x1xf32>
    %cst_90 = arith.constant 3.200000e+01 : f32
    %225 = vector.broadcast %cst_90 : f32 to vector<8x1xf32>
    %226 = arith.divf %224, %225 : vector<8x1xf32>
    %227 = vector.broadcast %226 : vector<8x1xf32> to vector<8x32xf32>
    %228 = arith.subf %222, %227 : vector<8x32xf32>
    %229 = arith.mulf %228, %228 : vector<8x32xf32>
    %cst_91 = arith.constant dense<0.000000e+00> : vector<8xf32>
    %230 = vector.multi_reduction <add>, %229, %cst_91 [1] : vector<8x32xf32> to vector<8xf32>
    %231 = vector.shape_cast %230 : vector<8xf32> to vector<8x1xf32>
    %cst_92 = arith.constant 3.200000e+01 : f32
    %232 = vector.broadcast %cst_92 : f32 to vector<8x1xf32>
    %233 = arith.divf %231, %232 : vector<8x1xf32>
    %234 = vector.broadcast %226 : vector<8x1xf32> to vector<8x32xf32>
    %235 = arith.subf %222, %234 : vector<8x32xf32>
    %cst_93 = arith.constant 9.99999974E-6 : f32
    %236 = vector.broadcast %cst_93 : f32 to vector<8x1xf32>
    %237 = arith.addf %233, %236 : vector<8x1xf32>
    %238 = math.rsqrt %237 : vector<8x1xf32>
    %239 = vector.broadcast %238 : vector<8x1xf32> to vector<8x32xf32>
    %240 = arith.mulf %235, %239 : vector<8x32xf32>
    %241 = vector.broadcast %136 : vector<1x32xf32> to vector<8x32xf32>
    %242 = arith.mulf %240, %241 : vector<8x32xf32>
    %243 = vector.broadcast %137 : vector<1x32xf32> to vector<8x32xf32>
    %244 = arith.addf %242, %243 : vector<8x32xf32>
    %c2 = arith.constant 2 : index
    %c0_94 = arith.constant 0 : index
    %c0_95 = arith.constant 0 : index
    %245 = vector.load %arg11[%c2, %c0_94, %c0_95] : memref<4x9x32xf32, #tpu.memory_space<vmem>>, vector<1x9x32xf32>
    %246 = vector.shape_cast %245 : vector<1x9x32xf32> to vector<9x32xf32>
    %247 = vector.extract_strided_slice %246 {offsets = [0, 0], sizes = [1, 32], strides = [1, 1]} : vector<9x32xf32> to vector<1x32xf32>
    %248 = vector.extract_strided_slice %246 {offsets = [1, 0], sizes = [1, 32], strides = [1, 1]} : vector<9x32xf32> to vector<1x32xf32>
    %249 = vector.extract_strided_slice %246 {offsets = [2, 0], sizes = [1, 32], strides = [1, 1]} : vector<9x32xf32> to vector<1x32xf32>
    %250 = vector.extract_strided_slice %246 {offsets = [3, 0], sizes = [1, 32], strides = [1, 1]} : vector<9x32xf32> to vector<1x32xf32>
    %251 = vector.extract_strided_slice %246 {offsets = [4, 0], sizes = [1, 32], strides = [1, 1]} : vector<9x32xf32> to vector<1x32xf32>
    %252 = vector.extract_strided_slice %246 {offsets = [5, 0], sizes = [1, 32], strides = [1, 1]} : vector<9x32xf32> to vector<1x32xf32>
    %253 = vector.extract_strided_slice %246 {offsets = [6, 0], sizes = [1, 32], strides = [1, 1]} : vector<9x32xf32> to vector<1x32xf32>
    %254 = vector.extract_strided_slice %246 {offsets = [7, 0], sizes = [1, 32], strides = [1, 1]} : vector<9x32xf32> to vector<1x32xf32>
    %255 = vector.extract_strided_slice %246 {offsets = [8, 0], sizes = [1, 32], strides = [1, 1]} : vector<9x32xf32> to vector<1x32xf32>
    %c2_96 = arith.constant 2 : index
    %c0_97 = arith.constant 0 : index
    %c0_98 = arith.constant 0 : index
    %256 = vector.load %arg12[%c2_96, %c0_97, %c0_98] : memref<4x1x64xf32, #tpu.memory_space<vmem>>, vector<1x1x64xf32>
    %257 = vector.shape_cast %256 : vector<1x1x64xf32> to vector<1x64xf32>
    %258 = arith.truncf %244 : vector<8x32xf32> to vector<8x32xbf16>
    %c2_99 = arith.constant 2 : index
    %c0_100 = arith.constant 0 : index
    %c0_101 = arith.constant 0 : index
    %259 = vector.load %arg5[%c2_99, %c0_100, %c0_101] : memref<4x32x32xbf16, #tpu.memory_space<vmem>>, vector<1x32x32xbf16>
    %260 = vector.shape_cast %259 : vector<1x32x32xbf16> to vector<32x32xbf16>
    %cst_102 = arith.constant dense<0.000000e+00> : vector<8x32xf32>
    %261 = tpu.matmul %258, %260, %cst_102 {dimension_numbers = #tpu.dot_dimension_numbers<[1], [0], [0], [1], [0, 0, 1, 1], [], []>} : vector<8x32xbf16>, vector<32x32xbf16>, vector<8x32xf32> -> vector<8x32xf32>
    %262 = vector.broadcast %247 : vector<1x32xf32> to vector<8x32xf32>
    %263 = arith.addf %261, %262 : vector<8x32xf32>
    %c2_103 = arith.constant 2 : index
    %c0_104 = arith.constant 0 : index
    %c0_105 = arith.constant 0 : index
    %264 = vector.load %arg6[%c2_103, %c0_104, %c0_105] : memref<4x32x32xbf16, #tpu.memory_space<vmem>>, vector<1x32x32xbf16>
    %265 = vector.shape_cast %264 : vector<1x32x32xbf16> to vector<32x32xbf16>
    %cst_106 = arith.constant dense<0.000000e+00> : vector<8x32xf32>
    %266 = tpu.matmul %258, %265, %cst_106 {dimension_numbers = #tpu.dot_dimension_numbers<[1], [0], [0], [1], [0, 0, 1, 1], [], []>} : vector<8x32xbf16>, vector<32x32xbf16>, vector<8x32xf32> -> vector<8x32xf32>
    %267 = vector.broadcast %248 : vector<1x32xf32> to vector<8x32xf32>
    %268 = arith.addf %266, %267 : vector<8x32xf32>
    %c2_107 = arith.constant 2 : index
    %c0_108 = arith.constant 0 : index
    %c0_109 = arith.constant 0 : index
    %269 = vector.load %arg7[%c2_107, %c0_108, %c0_109] : memref<4x32x32xbf16, #tpu.memory_space<vmem>>, vector<1x32x32xbf16>
    %270 = vector.shape_cast %269 : vector<1x32x32xbf16> to vector<32x32xbf16>
    %cst_110 = arith.constant dense<0.000000e+00> : vector<8x32xf32>
    %271 = tpu.matmul %258, %270, %cst_110 {dimension_numbers = #tpu.dot_dimension_numbers<[1], [0], [0], [1], [0, 0, 1, 1], [], []>} : vector<8x32xbf16>, vector<32x32xbf16>, vector<8x32xf32> -> vector<8x32xf32>
    %272 = vector.broadcast %249 : vector<1x32xf32> to vector<8x32xf32>
    %273 = arith.addf %271, %272 : vector<8x32xf32>
    %274 = vector.shape_cast %263 : vector<8x32xf32> to vector<4x2x32xf32>
    %275 = vector.shape_cast %268 : vector<8x32xf32> to vector<4x2x32xf32>
    %276 = vector.shape_cast %273 : vector<8x32xf32> to vector<4x2x32xf32>
    %277 = vector.shape_cast %274 : vector<4x2x32xf32> to vector<4x2x1x32xf32>
    %278 = vector.shape_cast %275 : vector<4x2x32xf32> to vector<4x1x2x32xf32>
    %279 = vector.broadcast %277 : vector<4x2x1x32xf32> to vector<4x2x2x32xf32>
    %280 = vector.broadcast %278 : vector<4x1x2x32xf32> to vector<4x2x2x32xf32>
    %281 = arith.mulf %279, %280 : vector<4x2x2x32xf32>
    %cst_111 = arith.constant dense<0xFF800000> : vector<4x2x32xf32>
    %282 = vector.multi_reduction <maximumf>, %281, %cst_111 [2] : vector<4x2x2x32xf32> to vector<4x2x32xf32>
    %283 = vector.shape_cast %282 : vector<4x2x32xf32> to vector<4x2x1x32xf32>
    %284 = vector.broadcast %283 : vector<4x2x1x32xf32> to vector<4x2x2x32xf32>
    %285 = arith.subf %281, %284 : vector<4x2x2x32xf32>
    %286 = math.exp %285 : vector<4x2x2x32xf32>
    %cst_112 = arith.constant dense<0.000000e+00> : vector<4x2x32xf32>
    %287 = vector.multi_reduction <add>, %286, %cst_112 [2] : vector<4x2x2x32xf32> to vector<4x2x32xf32>
    %288 = vector.shape_cast %287 : vector<4x2x32xf32> to vector<4x2x1x32xf32>
    %289 = tpu.reciprocal %288 {approx = true} : vector<4x2x1x32xf32> -> vector<4x2x1x32xf32>
    %290 = vector.broadcast %289 : vector<4x2x1x32xf32> to vector<4x2x2x32xf32>
    %291 = arith.mulf %286, %290 : vector<4x2x2x32xf32>
    %292 = vector.shape_cast %276 : vector<4x2x32xf32> to vector<4x1x2x32xf32>
    %293 = vector.broadcast %292 : vector<4x1x2x32xf32> to vector<4x2x2x32xf32>
    %294 = arith.mulf %291, %293 : vector<4x2x2x32xf32>
    %cst_113 = arith.constant dense<0.000000e+00> : vector<4x2x32xf32>
    %295 = vector.multi_reduction <add>, %294, %cst_113 [2] : vector<4x2x2x32xf32> to vector<4x2x32xf32>
    %296 = vector.shape_cast %295 : vector<4x2x32xf32> to vector<8x32xf32>
    %297 = arith.truncf %296 : vector<8x32xf32> to vector<8x32xbf16>
    %c2_114 = arith.constant 2 : index
    %c0_115 = arith.constant 0 : index
    %c0_116 = arith.constant 0 : index
    %298 = vector.load %arg8[%c2_114, %c0_115, %c0_116] : memref<4x32x32xbf16, #tpu.memory_space<vmem>>, vector<1x32x32xbf16>
    %299 = vector.shape_cast %298 : vector<1x32x32xbf16> to vector<32x32xbf16>
    %cst_117 = arith.constant dense<0.000000e+00> : vector<8x32xf32>
    %300 = tpu.matmul %297, %299, %cst_117 {dimension_numbers = #tpu.dot_dimension_numbers<[1], [0], [0], [1], [0, 0, 1, 1], [], []>} : vector<8x32xbf16>, vector<32x32xbf16>, vector<8x32xf32> -> vector<8x32xf32>
    %301 = vector.broadcast %250 : vector<1x32xf32> to vector<8x32xf32>
    %302 = arith.addf %300, %301 : vector<8x32xf32>
    %303 = arith.addf %244, %302 : vector<8x32xf32>
    %cst_118 = arith.constant dense<0.000000e+00> : vector<8xf32>
    %304 = vector.multi_reduction <add>, %303, %cst_118 [1] : vector<8x32xf32> to vector<8xf32>
    %305 = vector.shape_cast %304 : vector<8xf32> to vector<8x1xf32>
    %cst_119 = arith.constant 3.200000e+01 : f32
    %306 = vector.broadcast %cst_119 : f32 to vector<8x1xf32>
    %307 = arith.divf %305, %306 : vector<8x1xf32>
    %308 = vector.broadcast %307 : vector<8x1xf32> to vector<8x32xf32>
    %309 = arith.subf %303, %308 : vector<8x32xf32>
    %310 = arith.mulf %309, %309 : vector<8x32xf32>
    %cst_120 = arith.constant dense<0.000000e+00> : vector<8xf32>
    %311 = vector.multi_reduction <add>, %310, %cst_120 [1] : vector<8x32xf32> to vector<8xf32>
    %312 = vector.shape_cast %311 : vector<8xf32> to vector<8x1xf32>
    %cst_121 = arith.constant 3.200000e+01 : f32
    %313 = vector.broadcast %cst_121 : f32 to vector<8x1xf32>
    %314 = arith.divf %312, %313 : vector<8x1xf32>
    %315 = vector.broadcast %307 : vector<8x1xf32> to vector<8x32xf32>
    %316 = arith.subf %303, %315 : vector<8x32xf32>
    %cst_122 = arith.constant 9.99999974E-6 : f32
    %317 = vector.broadcast %cst_122 : f32 to vector<8x1xf32>
    %318 = arith.addf %314, %317 : vector<8x1xf32>
    %319 = math.rsqrt %318 : vector<8x1xf32>
    %320 = vector.broadcast %319 : vector<8x1xf32> to vector<8x32xf32>
    %321 = arith.mulf %316, %320 : vector<8x32xf32>
    %322 = vector.broadcast %252 : vector<1x32xf32> to vector<8x32xf32>
    %323 = arith.mulf %321, %322 : vector<8x32xf32>
    %324 = vector.broadcast %253 : vector<1x32xf32> to vector<8x32xf32>
    %325 = arith.addf %323, %324 : vector<8x32xf32>
    %326 = arith.truncf %325 : vector<8x32xf32> to vector<8x32xbf16>
    %c2_123 = arith.constant 2 : index
    %c0_124 = arith.constant 0 : index
    %c0_125 = arith.constant 0 : index
    %327 = vector.load %arg9[%c2_123, %c0_124, %c0_125] : memref<4x32x64xbf16, #tpu.memory_space<vmem>>, vector<1x32x64xbf16>
    %328 = vector.shape_cast %327 : vector<1x32x64xbf16> to vector<32x64xbf16>
    %cst_126 = arith.constant dense<0.000000e+00> : vector<8x64xf32>
    %329 = tpu.matmul %326, %328, %cst_126 {dimension_numbers = #tpu.dot_dimension_numbers<[1], [0], [0], [1], [0, 0, 1, 1], [], []>} : vector<8x32xbf16>, vector<32x64xbf16>, vector<8x64xf32> -> vector<8x64xf32>
    %330 = vector.broadcast %257 : vector<1x64xf32> to vector<8x64xf32>
    %331 = arith.addf %329, %330 : vector<8x64xf32>
    %cst_127 = arith.constant 0.000000e+00 : f32
    %332 = vector.broadcast %cst_127 : f32 to vector<8x64xf32>
    %333 = arith.maximumf %331, %332 : vector<8x64xf32>
    %334 = arith.truncf %333 : vector<8x64xf32> to vector<8x64xbf16>
    %c2_128 = arith.constant 2 : index
    %c0_129 = arith.constant 0 : index
    %c0_130 = arith.constant 0 : index
    %335 = vector.load %arg10[%c2_128, %c0_129, %c0_130] : memref<4x64x32xbf16, #tpu.memory_space<vmem>>, vector<1x64x32xbf16>
    %336 = vector.shape_cast %335 : vector<1x64x32xbf16> to vector<64x32xbf16>
    %cst_131 = arith.constant dense<0.000000e+00> : vector<8x32xf32>
    %337 = tpu.matmul %334, %336, %cst_131 {dimension_numbers = #tpu.dot_dimension_numbers<[1], [0], [0], [1], [0, 0, 1, 1], [], []>} : vector<8x64xbf16>, vector<64x32xbf16>, vector<8x32xf32> -> vector<8x32xf32>
    %338 = vector.broadcast %251 : vector<1x32xf32> to vector<8x32xf32>
    %339 = arith.addf %337, %338 : vector<8x32xf32>
    %340 = arith.addf %325, %339 : vector<8x32xf32>
    %cst_132 = arith.constant dense<0.000000e+00> : vector<8xf32>
    %341 = vector.multi_reduction <add>, %340, %cst_132 [1] : vector<8x32xf32> to vector<8xf32>
    %342 = vector.shape_cast %341 : vector<8xf32> to vector<8x1xf32>
    %cst_133 = arith.constant 3.200000e+01 : f32
    %343 = vector.broadcast %cst_133 : f32 to vector<8x1xf32>
    %344 = arith.divf %342, %343 : vector<8x1xf32>
    %345 = vector.broadcast %344 : vector<8x1xf32> to vector<8x32xf32>
    %346 = arith.subf %340, %345 : vector<8x32xf32>
    %347 = arith.mulf %346, %346 : vector<8x32xf32>
    %cst_134 = arith.constant dense<0.000000e+00> : vector<8xf32>
    %348 = vector.multi_reduction <add>, %347, %cst_134 [1] : vector<8x32xf32> to vector<8xf32>
    %349 = vector.shape_cast %348 : vector<8xf32> to vector<8x1xf32>
    %cst_135 = arith.constant 3.200000e+01 : f32
    %350 = vector.broadcast %cst_135 : f32 to vector<8x1xf32>
    %351 = arith.divf %349, %350 : vector<8x1xf32>
    %352 = vector.broadcast %344 : vector<8x1xf32> to vector<8x32xf32>
    %353 = arith.subf %340, %352 : vector<8x32xf32>
    %cst_136 = arith.constant 9.99999974E-6 : f32
    %354 = vector.broadcast %cst_136 : f32 to vector<8x1xf32>
    %355 = arith.addf %351, %354 : vector<8x1xf32>
    %356 = math.rsqrt %355 : vector<8x1xf32>
    %357 = vector.broadcast %356 : vector<8x1xf32> to vector<8x32xf32>
    %358 = arith.mulf %353, %357 : vector<8x32xf32>
    %359 = vector.broadcast %254 : vector<1x32xf32> to vector<8x32xf32>
    %360 = arith.mulf %358, %359 : vector<8x32xf32>
    %361 = vector.broadcast %255 : vector<1x32xf32> to vector<8x32xf32>
    %362 = arith.addf %360, %361 : vector<8x32xf32>
    %c3 = arith.constant 3 : index
    %c0_137 = arith.constant 0 : index
    %c0_138 = arith.constant 0 : index
    %363 = vector.load %arg11[%c3, %c0_137, %c0_138] : memref<4x9x32xf32, #tpu.memory_space<vmem>>, vector<1x9x32xf32>
    %364 = vector.shape_cast %363 : vector<1x9x32xf32> to vector<9x32xf32>
    %365 = vector.extract_strided_slice %364 {offsets = [0, 0], sizes = [1, 32], strides = [1, 1]} : vector<9x32xf32> to vector<1x32xf32>
    %366 = vector.extract_strided_slice %364 {offsets = [1, 0], sizes = [1, 32], strides = [1, 1]} : vector<9x32xf32> to vector<1x32xf32>
    %367 = vector.extract_strided_slice %364 {offsets = [2, 0], sizes = [1, 32], strides = [1, 1]} : vector<9x32xf32> to vector<1x32xf32>
    %368 = vector.extract_strided_slice %364 {offsets = [3, 0], sizes = [1, 32], strides = [1, 1]} : vector<9x32xf32> to vector<1x32xf32>
    %369 = vector.extract_strided_slice %364 {offsets = [4, 0], sizes = [1, 32], strides = [1, 1]} : vector<9x32xf32> to vector<1x32xf32>
    %370 = vector.extract_strided_slice %364 {offsets = [5, 0], sizes = [1, 32], strides = [1, 1]} : vector<9x32xf32> to vector<1x32xf32>
    %371 = vector.extract_strided_slice %364 {offsets = [6, 0], sizes = [1, 32], strides = [1, 1]} : vector<9x32xf32> to vector<1x32xf32>
    %372 = vector.extract_strided_slice %364 {offsets = [7, 0], sizes = [1, 32], strides = [1, 1]} : vector<9x32xf32> to vector<1x32xf32>
    %373 = vector.extract_strided_slice %364 {offsets = [8, 0], sizes = [1, 32], strides = [1, 1]} : vector<9x32xf32> to vector<1x32xf32>
    %c3_139 = arith.constant 3 : index
    %c0_140 = arith.constant 0 : index
    %c0_141 = arith.constant 0 : index
    %374 = vector.load %arg12[%c3_139, %c0_140, %c0_141] : memref<4x1x64xf32, #tpu.memory_space<vmem>>, vector<1x1x64xf32>
    %375 = vector.shape_cast %374 : vector<1x1x64xf32> to vector<1x64xf32>
    %376 = arith.truncf %362 : vector<8x32xf32> to vector<8x32xbf16>
    %c3_142 = arith.constant 3 : index
    %c0_143 = arith.constant 0 : index
    %c0_144 = arith.constant 0 : index
    %377 = vector.load %arg5[%c3_142, %c0_143, %c0_144] : memref<4x32x32xbf16, #tpu.memory_space<vmem>>, vector<1x32x32xbf16>
    %378 = vector.shape_cast %377 : vector<1x32x32xbf16> to vector<32x32xbf16>
    %cst_145 = arith.constant dense<0.000000e+00> : vector<8x32xf32>
    %379 = tpu.matmul %376, %378, %cst_145 {dimension_numbers = #tpu.dot_dimension_numbers<[1], [0], [0], [1], [0, 0, 1, 1], [], []>} : vector<8x32xbf16>, vector<32x32xbf16>, vector<8x32xf32> -> vector<8x32xf32>
    %380 = vector.broadcast %365 : vector<1x32xf32> to vector<8x32xf32>
    %381 = arith.addf %379, %380 : vector<8x32xf32>
    %c3_146 = arith.constant 3 : index
    %c0_147 = arith.constant 0 : index
    %c0_148 = arith.constant 0 : index
    %382 = vector.load %arg6[%c3_146, %c0_147, %c0_148] : memref<4x32x32xbf16, #tpu.memory_space<vmem>>, vector<1x32x32xbf16>
    %383 = vector.shape_cast %382 : vector<1x32x32xbf16> to vector<32x32xbf16>
    %cst_149 = arith.constant dense<0.000000e+00> : vector<8x32xf32>
    %384 = tpu.matmul %376, %383, %cst_149 {dimension_numbers = #tpu.dot_dimension_numbers<[1], [0], [0], [1], [0, 0, 1, 1], [], []>} : vector<8x32xbf16>, vector<32x32xbf16>, vector<8x32xf32> -> vector<8x32xf32>
    %385 = vector.broadcast %366 : vector<1x32xf32> to vector<8x32xf32>
    %386 = arith.addf %384, %385 : vector<8x32xf32>
    %c3_150 = arith.constant 3 : index
    %c0_151 = arith.constant 0 : index
    %c0_152 = arith.constant 0 : index
    %387 = vector.load %arg7[%c3_150, %c0_151, %c0_152] : memref<4x32x32xbf16, #tpu.memory_space<vmem>>, vector<1x32x32xbf16>
    %388 = vector.shape_cast %387 : vector<1x32x32xbf16> to vector<32x32xbf16>
    %cst_153 = arith.constant dense<0.000000e+00> : vector<8x32xf32>
    %389 = tpu.matmul %376, %388, %cst_153 {dimension_numbers = #tpu.dot_dimension_numbers<[1], [0], [0], [1], [0, 0, 1, 1], [], []>} : vector<8x32xbf16>, vector<32x32xbf16>, vector<8x32xf32> -> vector<8x32xf32>
    %390 = vector.broadcast %367 : vector<1x32xf32> to vector<8x32xf32>
    %391 = arith.addf %389, %390 : vector<8x32xf32>
    %392 = vector.shape_cast %381 : vector<8x32xf32> to vector<4x2x32xf32>
    %393 = vector.shape_cast %386 : vector<8x32xf32> to vector<4x2x32xf32>
    %394 = vector.shape_cast %391 : vector<8x32xf32> to vector<4x2x32xf32>
    %395 = vector.shape_cast %392 : vector<4x2x32xf32> to vector<4x2x1x32xf32>
    %396 = vector.shape_cast %393 : vector<4x2x32xf32> to vector<4x1x2x32xf32>
    %397 = vector.broadcast %395 : vector<4x2x1x32xf32> to vector<4x2x2x32xf32>
    %398 = vector.broadcast %396 : vector<4x1x2x32xf32> to vector<4x2x2x32xf32>
    %399 = arith.mulf %397, %398 : vector<4x2x2x32xf32>
    %cst_154 = arith.constant dense<0xFF800000> : vector<4x2x32xf32>
    %400 = vector.multi_reduction <maximumf>, %399, %cst_154 [2] : vector<4x2x2x32xf32> to vector<4x2x32xf32>
    %401 = vector.shape_cast %400 : vector<4x2x32xf32> to vector<4x2x1x32xf32>
    %402 = vector.broadcast %401 : vector<4x2x1x32xf32> to vector<4x2x2x32xf32>
    %403 = arith.subf %399, %402 : vector<4x2x2x32xf32>
    %404 = math.exp %403 : vector<4x2x2x32xf32>
    %cst_155 = arith.constant dense<0.000000e+00> : vector<4x2x32xf32>
    %405 = vector.multi_reduction <add>, %404, %cst_155 [2] : vector<4x2x2x32xf32> to vector<4x2x32xf32>
    %406 = vector.shape_cast %405 : vector<4x2x32xf32> to vector<4x2x1x32xf32>
    %407 = tpu.reciprocal %406 {approx = true} : vector<4x2x1x32xf32> -> vector<4x2x1x32xf32>
    %408 = vector.broadcast %407 : vector<4x2x1x32xf32> to vector<4x2x2x32xf32>
    %409 = arith.mulf %404, %408 : vector<4x2x2x32xf32>
    %410 = vector.shape_cast %394 : vector<4x2x32xf32> to vector<4x1x2x32xf32>
    %411 = vector.broadcast %410 : vector<4x1x2x32xf32> to vector<4x2x2x32xf32>
    %412 = arith.mulf %409, %411 : vector<4x2x2x32xf32>
    %cst_156 = arith.constant dense<0.000000e+00> : vector<4x2x32xf32>
    %413 = vector.multi_reduction <add>, %412, %cst_156 [2] : vector<4x2x2x32xf32> to vector<4x2x32xf32>
    %414 = vector.shape_cast %413 : vector<4x2x32xf32> to vector<8x32xf32>
    %415 = arith.truncf %414 : vector<8x32xf32> to vector<8x32xbf16>
    %c3_157 = arith.constant 3 : index
    %c0_158 = arith.constant 0 : index
    %c0_159 = arith.constant 0 : index
    %416 = vector.load %arg8[%c3_157, %c0_158, %c0_159] : memref<4x32x32xbf16, #tpu.memory_space<vmem>>, vector<1x32x32xbf16>
    %417 = vector.shape_cast %416 : vector<1x32x32xbf16> to vector<32x32xbf16>
    %cst_160 = arith.constant dense<0.000000e+00> : vector<8x32xf32>
    %418 = tpu.matmul %415, %417, %cst_160 {dimension_numbers = #tpu.dot_dimension_numbers<[1], [0], [0], [1], [0, 0, 1, 1], [], []>} : vector<8x32xbf16>, vector<32x32xbf16>, vector<8x32xf32> -> vector<8x32xf32>
    %419 = vector.broadcast %368 : vector<1x32xf32> to vector<8x32xf32>
    %420 = arith.addf %418, %419 : vector<8x32xf32>
    %421 = arith.addf %362, %420 : vector<8x32xf32>
    %cst_161 = arith.constant dense<0.000000e+00> : vector<8xf32>
    %422 = vector.multi_reduction <add>, %421, %cst_161 [1] : vector<8x32xf32> to vector<8xf32>
    %423 = vector.shape_cast %422 : vector<8xf32> to vector<8x1xf32>
    %cst_162 = arith.constant 3.200000e+01 : f32
    %424 = vector.broadcast %cst_162 : f32 to vector<8x1xf32>
    %425 = arith.divf %423, %424 : vector<8x1xf32>
    %426 = vector.broadcast %425 : vector<8x1xf32> to vector<8x32xf32>
    %427 = arith.subf %421, %426 : vector<8x32xf32>
    %428 = arith.mulf %427, %427 : vector<8x32xf32>
    %cst_163 = arith.constant dense<0.000000e+00> : vector<8xf32>
    %429 = vector.multi_reduction <add>, %428, %cst_163 [1] : vector<8x32xf32> to vector<8xf32>
    %430 = vector.shape_cast %429 : vector<8xf32> to vector<8x1xf32>
    %cst_164 = arith.constant 3.200000e+01 : f32
    %431 = vector.broadcast %cst_164 : f32 to vector<8x1xf32>
    %432 = arith.divf %430, %431 : vector<8x1xf32>
    %433 = vector.broadcast %425 : vector<8x1xf32> to vector<8x32xf32>
    %434 = arith.subf %421, %433 : vector<8x32xf32>
    %cst_165 = arith.constant 9.99999974E-6 : f32
    %435 = vector.broadcast %cst_165 : f32 to vector<8x1xf32>
    %436 = arith.addf %432, %435 : vector<8x1xf32>
    %437 = math.rsqrt %436 : vector<8x1xf32>
    %438 = vector.broadcast %437 : vector<8x1xf32> to vector<8x32xf32>
    %439 = arith.mulf %434, %438 : vector<8x32xf32>
    %440 = vector.broadcast %370 : vector<1x32xf32> to vector<8x32xf32>
    %441 = arith.mulf %439, %440 : vector<8x32xf32>
    %442 = vector.broadcast %371 : vector<1x32xf32> to vector<8x32xf32>
    %443 = arith.addf %441, %442 : vector<8x32xf32>
    %444 = arith.truncf %443 : vector<8x32xf32> to vector<8x32xbf16>
    %c3_166 = arith.constant 3 : index
    %c0_167 = arith.constant 0 : index
    %c0_168 = arith.constant 0 : index
    %445 = vector.load %arg9[%c3_166, %c0_167, %c0_168] : memref<4x32x64xbf16, #tpu.memory_space<vmem>>, vector<1x32x64xbf16>
    %446 = vector.shape_cast %445 : vector<1x32x64xbf16> to vector<32x64xbf16>
    %cst_169 = arith.constant dense<0.000000e+00> : vector<8x64xf32>
    %447 = tpu.matmul %444, %446, %cst_169 {dimension_numbers = #tpu.dot_dimension_numbers<[1], [0], [0], [1], [0, 0, 1, 1], [], []>} : vector<8x32xbf16>, vector<32x64xbf16>, vector<8x64xf32> -> vector<8x64xf32>
    %448 = vector.broadcast %375 : vector<1x64xf32> to vector<8x64xf32>
    %449 = arith.addf %447, %448 : vector<8x64xf32>
    %cst_170 = arith.constant 0.000000e+00 : f32
    %450 = vector.broadcast %cst_170 : f32 to vector<8x64xf32>
    %451 = arith.maximumf %449, %450 : vector<8x64xf32>
    %452 = arith.truncf %451 : vector<8x64xf32> to vector<8x64xbf16>
    %c3_171 = arith.constant 3 : index
    %c0_172 = arith.constant 0 : index
    %c0_173 = arith.constant 0 : index
    %453 = vector.load %arg10[%c3_171, %c0_172, %c0_173] : memref<4x64x32xbf16, #tpu.memory_space<vmem>>, vector<1x64x32xbf16>
    %454 = vector.shape_cast %453 : vector<1x64x32xbf16> to vector<64x32xbf16>
    %cst_174 = arith.constant dense<0.000000e+00> : vector<8x32xf32>
    %455 = tpu.matmul %452, %454, %cst_174 {dimension_numbers = #tpu.dot_dimension_numbers<[1], [0], [0], [1], [0, 0, 1, 1], [], []>} : vector<8x64xbf16>, vector<64x32xbf16>, vector<8x32xf32> -> vector<8x32xf32>
    %456 = vector.broadcast %369 : vector<1x32xf32> to vector<8x32xf32>
    %457 = arith.addf %455, %456 : vector<8x32xf32>
    %458 = arith.addf %443, %457 : vector<8x32xf32>
    %cst_175 = arith.constant dense<0.000000e+00> : vector<8xf32>
    %459 = vector.multi_reduction <add>, %458, %cst_175 [1] : vector<8x32xf32> to vector<8xf32>
    %460 = vector.shape_cast %459 : vector<8xf32> to vector<8x1xf32>
    %cst_176 = arith.constant 3.200000e+01 : f32
    %461 = vector.broadcast %cst_176 : f32 to vector<8x1xf32>
    %462 = arith.divf %460, %461 : vector<8x1xf32>
    %463 = vector.broadcast %462 : vector<8x1xf32> to vector<8x32xf32>
    %464 = arith.subf %458, %463 : vector<8x32xf32>
    %465 = arith.mulf %464, %464 : vector<8x32xf32>
    %cst_177 = arith.constant dense<0.000000e+00> : vector<8xf32>
    %466 = vector.multi_reduction <add>, %465, %cst_177 [1] : vector<8x32xf32> to vector<8xf32>
    %467 = vector.shape_cast %466 : vector<8xf32> to vector<8x1xf32>
    %cst_178 = arith.constant 3.200000e+01 : f32
    %468 = vector.broadcast %cst_178 : f32 to vector<8x1xf32>
    %469 = arith.divf %467, %468 : vector<8x1xf32>
    %470 = vector.broadcast %462 : vector<8x1xf32> to vector<8x32xf32>
    %471 = arith.subf %458, %470 : vector<8x32xf32>
    %cst_179 = arith.constant 9.99999974E-6 : f32
    %472 = vector.broadcast %cst_179 : f32 to vector<8x1xf32>
    %473 = arith.addf %469, %472 : vector<8x1xf32>
    %474 = math.rsqrt %473 : vector<8x1xf32>
    %475 = vector.broadcast %474 : vector<8x1xf32> to vector<8x32xf32>
    %476 = arith.mulf %471, %475 : vector<8x32xf32>
    %477 = vector.broadcast %372 : vector<1x32xf32> to vector<8x32xf32>
    %478 = arith.mulf %476, %477 : vector<8x32xf32>
    %479 = vector.broadcast %373 : vector<1x32xf32> to vector<8x32xf32>
    %480 = arith.addf %478, %479 : vector<8x32xf32>
    %481 = arith.truncf %480 : vector<8x32xf32> to vector<8x32xbf16>
    %c0_180 = arith.constant 0 : index
    %c0_181 = arith.constant 0 : index
    %482 = vector.load %arg13[%c0_180, %c0_181] : memref<32x128xbf16, #tpu.memory_space<vmem>>, vector<32x128xbf16>
    %cst_182 = arith.constant dense<0.000000e+00> : vector<8x128xf32>
    %483 = tpu.matmul %481, %482, %cst_182 {dimension_numbers = #tpu.dot_dimension_numbers<[1], [0], [0], [1], [0, 0, 1, 1], [], []>} : vector<8x32xbf16>, vector<32x128xbf16>, vector<8x128xf32> -> vector<8x128xf32>
    %c0_183 = arith.constant 0 : index
    %c0_184 = arith.constant 0 : index
    %484 = vector.load %arg14[%c0_183, %c0_184] : memref<1x128xf32, #tpu.memory_space<vmem>>, vector<1x128xf32>
    %485 = vector.broadcast %484 : vector<1x128xf32> to vector<8x128xf32>
    %486 = arith.addf %483, %485 : vector<8x128xf32>
    %c0_185 = arith.constant 0 : index
    %c0_186 = arith.constant 0 : index
    %487 = vector.load %arg15[%c0_185, %c0_186] : memref<8x128xf32, #tpu.memory_space<vmem>>, vector<8x128xf32>
    tpu.vector_store %arg15[%c0_185, %c0_186], %486 {strides = array<i32>} : memref<8x128xf32, #tpu.memory_space<vmem>>, vector<8x128xf32>,
    return
  }
  func.func @transform_0(%arg0: i32) -> (i32, i32) {
    %c0_i32 = arith.constant 0 : i32
    %c0_i32_0 = arith.constant 0 : i32
    return %arg0, %c0_i32 : i32, i32
  }
  func.func @transform_1(%arg0: i32) -> (i32, i32) {
    %c0_i32 = arith.constant 0 : i32
    %c0_i32_0 = arith.constant 0 : i32
    %c0_i32_1 = arith.constant 0 : i32
    return %c0_i32, %c0_i32_0 : i32, i32
  }
  func.func @transform_2(%arg0: i32) -> (i32, i32) {
    %c0_i32 = arith.constant 0 : i32
    %c0_i32_0 = arith.constant 0 : i32
    %c0_i32_1 = arith.constant 0 : i32
    return %c0_i32, %c0_i32_0 : i32, i32
  }
  func.func @transform_3(%arg0: i32) -> (i32, i32) {
    %c0_i32 = arith.constant 0 : i32
    %c0_i32_0 = arith.constant 0 : i32
    return %arg0, %c0_i32 : i32, i32
  }
  func.func @transform_4(%arg0: i32) -> (i32, i32, i32) {
    %c0_i32 = arith.constant 0 : i32
    %c0_i32_0 = arith.constant 0 : i32
    %c0_i32_1 = arith.constant 0 : i32
    %c0_i32_2 = arith.constant 0 : i32
    return %c0_i32, %c0_i32_0, %c0_i32_1 : i32, i32, i32
  }
  func.func @transform_5(%arg0: i32) -> (i32, i32, i32) {
    %c0_i32 = arith.constant 0 : i32
    %c0_i32_0 = arith.constant 0 : i32
    %c0_i32_1 = arith.constant 0 : i32
    %c0_i32_2 = arith.constant 0 : i32
    return %c0_i32, %c0_i32_0, %c0_i32_1 : i32, i32, i32
  }
  func.func @transform_6(%arg0: i32) -> (i32, i32, i32) {
    %c0_i32 = arith.constant 0 : i32
    %c0_i32_0 = arith.constant 0 : i32
    %c0_i32_1 = arith.constant 0 : i32
    %c0_i32_2 = arith.constant 0 : i32
    return %c0_i32, %c0_i32_0, %c0_i32_1 : i32, i32, i32
  }
  func.func @transform_7(%arg0: i32) -> (i32, i32, i32) {
    %c0_i32 = arith.constant 0 : i32
    %c0_i32_0 = arith.constant 0 : i32
    %c0_i32_1 = arith.constant 0 : i32
    %c0_i32_2 = arith.constant 0 : i32
    return %c0_i32, %c0_i32_0, %c0_i32_1 : i32, i32, i32
  }
  func.func @transform_8(%arg0: i32) -> (i32, i32, i32) {
    %c0_i32 = arith.constant 0 : i32
    %c0_i32_0 = arith.constant 0 : i32
    %c0_i32_1 = arith.constant 0 : i32
    %c0_i32_2 = arith.constant 0 : i32
    return %c0_i32, %c0_i32_0, %c0_i32_1 : i32, i32, i32
  }
  func.func @transform_9(%arg0: i32) -> (i32, i32, i32) {
    %c0_i32 = arith.constant 0 : i32
    %c0_i32_0 = arith.constant 0 : i32
    %c0_i32_1 = arith.constant 0 : i32
    %c0_i32_2 = arith.constant 0 : i32
    return %c0_i32, %c0_i32_0, %c0_i32_1 : i32, i32, i32
  }
  func.func @transform_10(%arg0: i32) -> (i32, i32, i32) {
    %c0_i32 = arith.constant 0 : i32
    %c0_i32_0 = arith.constant 0 : i32
    %c0_i32_1 = arith.constant 0 : i32
    %c0_i32_2 = arith.constant 0 : i32
    return %c0_i32, %c0_i32_0, %c0_i32_1 : i32, i32, i32
  }
  func.func @transform_11(%arg0: i32) -> (i32, i32, i32) {
    %c0_i32 = arith.constant 0 : i32
    %c0_i32_0 = arith.constant 0 : i32
    %c0_i32_1 = arith.constant 0 : i32
    %c0_i32_2 = arith.constant 0 : i32
    return %c0_i32, %c0_i32_0, %c0_i32_1 : i32, i32, i32
  }
  func.func @transform_12(%arg0: i32) -> (i32, i32) {
    %c0_i32 = arith.constant 0 : i32
    %c0_i32_0 = arith.constant 0 : i32
    %c0_i32_1 = arith.constant 0 : i32
    return %c0_i32, %c0_i32_0 : i32, i32
  }
  func.func @transform_13(%arg0: i32) -> (i32, i32) {
    %c0_i32 = arith.constant 0 : i32
    %c0_i32_0 = arith.constant 0 : i32
    %c0_i32_1 = arith.constant 0 : i32
    return %c0_i32, %c0_i32_0 : i32, i32
  }
  func.func @transform_14(%arg0: i32) -> (i32, i32) {
    %c0_i32 = arith.constant 0 : i32
    %c0_i32_0 = arith.constant 0 : i32
    return %arg0, %c0_i32 : i32, i32
  }
}

</mosaic_0001>

<bundles_post_ra>
// kernel: tpu_custom_call.1
= control target key start
LH: loop header
LB: loop body
LE: loop exit
PB: predicated region body
PF: predicated region fallthrough
CT: control target
= control target key end

     0   :  { %s6533_s0 = inlined_call_operand.hbm [shape: f32[16,12], index: 0, kind: input, shape index: {}]   ;;  %s6534_s1 = inlined_call_operand.hbm [shape: bf16[12,32], index: 1, kind: input, shape index: {}]   ;;  %s6535_s2 = inlined_call_operand.vmem [shape: f32[1,32], index: 2, kind: input, shape index: {}]   ;;  %s6536_s3 = inlined_call_operand.hbm [shape: f32[16,32], index: 3, kind: input, shape index: {}]   ;;  %s6537_s4 = inlined_call_operand.vmem [shape: bf16[4,32,32], index: 4, kind: input, shape index: {}]   ;;  %s6538_s5 = inlined_call_operand.vmem [shape: bf16[4,32,32], index: 5, kind: input, shape index: {}]   ;;  %s6539_s6 = inlined_call_operand.vmem [shape: bf16[4,32,32], index: 6, kind: input, shape index: {}]   ;;  %s6540_s7 = inlined_call_operand.hbm [shape: bf16[4,32,32], index: 7, kind: input, shape index: {}]   ;;  %s6541_s8 = inlined_call_operand.vmem [shape: bf16[4,32,64], index: 8, kind: input, shape index: {}]   ;;  %s6542_s9 = inlined_call_operand.vmem [shape: bf16[4,64,32], index: 9, kind: input, shape index: {}]   ;;  %s6543_s10 = inlined_call_operand.vmem [shape: f32[4,9,32], index: 10, kind: input, shape index: {}]   ;;  %s6544_s11 = inlined_call_operand.hbm [shape: f32[4,1,64], index: 11, kind: input, shape index: {}]   ;;  %s6545_s12 = inlined_call_operand.vmem [shape: bf16[32,128], index: 12, kind: input, shape index: {}]   ;;  %s6546_s13 = inlined_call_operand.vmem [shape: f32[1,128], index: 13, kind: input, shape index: {}]   ;;  %s6547_s14 = inlined_call_operand.hbm [shape: f32[16,128], index: 14, kind: output, shape index: {}]  }
   0x1   :  { %6573 = sst [smem:[#allocation25_spill]] %s6533_s0 }
   0x2   :  { %6574 = sst [smem:[#allocation26_spill]] %s6534_s1 }
   0x3   :  { %6575 = sst [smem:[#allocation27_spill]] %s6539_s6 }
   0x4   :  { %6576 = sst [smem:[#allocation28_spill]] %s6541_s8 }
   0x5   :  { %6577 = sst [smem:[#allocation29_spill]] %s6542_s9 }
   0x6   :  { %6578 = sst [smem:[#allocation30_spill]] %s6543_s10 }
   0x7   :  { %6579 = sst [smem:[#allocation31_spill]] %s6545_s12 }
   0x8   :  { %6580 = sst [smem:[#allocation32_spill]] %s6546_s13 }
   0x9   :  { %6581 = sst [smem:[#allocation33_spill]] %s6547_s14 }
   0xa   :  { %19 = vsyncpa [#allocation3], 0 }
   0xb   :  { %21 = vsyncpa [#allocation3 + $0x1], 0 }
   0xc   :  { %22 = vsyncpa [#allocation6], 0 }
   0xd   :  { %23 = vsyncpa [#allocation10], 0 }
   0xe   :  { %24 = vsyncpa [#allocation4], 0 }
   0xf   :  { %26 = vsyncpa [#allocation4 + $0x1], 0  ;;  %s5315_s29 = smov 0   ;;  %s5317_s30 = smov 0  }
  0x10   :  { %s5319_s15 = smov 0   ;;  %s5321_s16 = smov 0  }
  0x11 LB: > { %6582 = sst [smem:[#allocation18_spill]] %s5212_s29  ;;  %s5336_s17 = sadd.s32 4294967295, %s5224_s16   ;;  %s5224_s16 = sphi %s5321_s16, %s6628_s16   ;;  %s5220_s15 = sphi %s5319_s15, %s6630_s15   ;;  %s5216_s30 = sphi %s5317_s30, %s6632_s30   ;;  %s5212_s29 = sphi %s5315_s29, %s6631_s29  }
  0x12   : > { %6583 = sst [smem:[#allocation19_spill]] %s5220_s15  ;;  %s4204_s18 = sadd.s32 4294967294, %s5224_s16  }
  0x13   : > { %6584 = sst [smem:[#allocation20_spill]] %s5224_s16  ;;  %p52_p0 = scmp.ne.s32.totalorder %s5216_s30, %s5212_s29 }
  0x14   : > { %p6552_p1 = scmp.eq.s32.totalorder %s5336_s17, 0  ;;  %p360_p3 = scmp.eq.s32.totalorder %s4204_s18, 1 }
  0x15   : > { %p4205_p5 = scmp.ge.s32.totalorder %s5224_s16, 1  ;;  %p367_p7 = scmp.lt.s32.totalorder %s5224_s16, 3 }
  0x16   : > { %p5345_p4 = por %p6552_p1, %p52_p0  ;;  %p5350_p6 = por %p360_p3, %p52_p0 }
  0x17   : > { %p5355_p8 = pnand %p4205_p5, %p367_p7  ;;  %s5226_s22 = smov [#allocation5]  }
  0x18   : > { %s6585_s19 = scalar_select %p5345_p4, 1, 0 }
  0x19   : > { %s6586_s20 = scalar_select %p5350_p6, 1, 0 }
  0x1a   : > { %s6588_s21 = scalar_select %p5355_p8, 1, 0 }
  0x1b   : > { %6587 = sst [smem:[#allocation21_spill]] %s6586_s20  ;;  %s379_s23 = sshll.u32 %s5226_s22, 4  ;;  %s5359_s23 = int_to_ptr.vmem [resolvable:$true] %s379_s23 }
  0x1c   : > { %p4723_p9 = pneg %p5355_p8  ;;  %s5371_s25 = sadd.s32 1, %s5224_s16  }
  0x1d   : > { %6590 = sst [smem:[#allocation22_spill]] %s5371_s25  ;;  %s39_s26 = sadd.s32 1, %s5220_s15 }
  0x1e   : > { %p5366_p11 = pnand %p4723_p9, %p6552_p1  ;;  %s36_s27 = ssub.s32 %s5224_s16, %s5371_s25 }
  0x1f   : > { %s6591_s1 = sld [smem:[#allocation26_spill]] }
  0x20   : > { %s6589_s24 = scalar_select %p5366_p11, 1, 0 }
  0x21   : > { %p5384_p13 = pneg %p5366_p11 }
  0x25   : > { %s4998_s22 = scalar_lea.hbm %s6591_s1, 128 }
  0x26   : > { %p4999_p12 = scmp.ne.s32.totalorder %s6591_s1, %s4998_s22  ;;  %p5005_p5 = scmp.lt.u32.totalorder %s4998_s22, %s6591_s1 }
  0x28   : > { %p5001_p0 = pnand %p5384_p13, %p4999_p12 }
  0x2a   : > { %p5002_p3 = pneg %p5001_p0 }
  0x2c   : > { %p5007_p7 = pnand %p5005_p5, %p5002_p3 }
  0x2e   : > { %5010 = shalt.err (!%p5007_p7)
}
  0x2f   : > { %s5011_s29 = scalar_lea.vmem %s5359_s23, 128  ;;  %p5019_p2 = scmp.lt.s32.totalorder %s5359_s23, %s5359_s23 }
  0x30   : > { %p5012_p9 = scmp.ne.s32.totalorder %s5359_s23, %s5011_s29  ;;  %p5020_p6 = scmp.lt.s32.totalorder %s5011_s29, %s5011_s29 }
  0x32   : > { %p5014_p10 = pnand %p5012_p9, %p5384_p13  ;;  %p5021_p12 = por %p5020_p6, %p5019_p2 }
  0x34   : > { %p5015_p1 = pneg %p5014_p10 }
  0x36   : > { %p5022_p0 = pnand %p5021_p12, %p5015_p1 }
  0x38   : > { %5025 = shalt.err (!%p5022_p0)
}
  0x39   : > { %s6557_s20 = smov 64   ;;  %s6558_s12 = smov 4  }
  0x3a   : > { %4726 = dma.hbm_to_vmem [thread:$0]  (!%p5366_p11), %s6591_s1, 128, %s5359_s23, [#allocation6], %s6557_s20, %s6557_s20, %s6558_s12  }
  0x3b   : > { %p37_p1 = scmp.eq.s32.totalorder %s36_s27, 0  ;;  %p46_p2 = scmp.ne.s32.totalorder %s5220_s15, %s5216_s30 }
  0x3c   : > { %p47_p6 = scmp.eq.s32.totalorder %s5224_s16, 0  ;;  %p4747_p10 = scmp.lt.s32.totalorder %s5224_s16, 2 }
  0x3d   : > { %s5413_s18 = scalar_select %p37_p1, %s5220_s15, %s39_s26  }
  0x3e   : > { %p48_p3 = por %p47_p6, %p46_p2  ;;  %p6594_p5 = scmp.eq.s32.totalorder %s5336_s17, 1 }
  0x3f   : > { %6593 = sst [smem:[#allocation23_spill]] %s5413_s18  ;;  %s446_s29 = sand.u32 1, %s5224_s16  }
  0x40   : > { %p5417_p7 = por %p6594_p5, %p46_p2  ;;  %s448_s25 = sand.u32 1, %s5220_s15  }
  0x41   : > { %s5423_s9 = sshll.u32 %s448_s25, 3  ;;  %s4211_s8 = sshll.u32 %s5224_s16, 7 }
  0x42   : > { %s6595_s22 = scalar_select %p5417_p7, 1, 0 }
  0x43   : > { %s6597_s0 = sld [smem:[#allocation25_spill]]  ;;  %s450_s26 = scalar_lea.vmem [#allocation2], %s5423_s9 }
  0x44   : > { %6596 = sst [smem:[#allocation24_spill]] %s6595_s22  ;;  %s457_s28 = sshll.u32 %s450_s26, 4  ;;  %s5432_s28 = int_to_ptr.vmem [resolvable:$true] %s457_s28 }
  0x45   : > { %p5434_p9 = pnand %p4747_p10, %p48_p3  ;;  %s5441_s13 = scalar_lea.hbm %s6536_s3, %s4211_s8 }
  0x46   : > { %s5443_s23 = scalar_lea.sflag [#allocation3], %s446_s29 }
  0x47   : > { %s6598_s20 = scalar_select %p5434_p9, 1, 0 }
  0x48   : > { %p6568_p0 = pneg %p5434_p9 }
  0x49   : > { %s5429_s27 = scalar_lea.hbm %s6597_s0, %s4211_s8  ;;  %s5031_s15 = scalar_lea.hbm %s6597_s0, 256 }
  0x4a   : > { %s5026_s1 = scalar_lea.hbm %s5429_s27, 128  ;;  %p5032_p6 = scmp.lt.u32.totalorder %s5429_s27, %s6597_s0 }
  0x4b   : > { %p5027_p12 = scmp.ne.s32.totalorder %s5429_s27, %s5026_s1  ;;  %p5033_p10 = scmp.lt.u32.totalorder %s5031_s15, %s5026_s1 }
  0x4c   : > { %p5035_p5 = scmp.lt.u32.totalorder %s5026_s1, %s5429_s27 }
  0x4d   : > { %p5029_p1 = pnand %p6568_p0, %p5027_p12  ;;  %p5034_p3 = por %p5033_p10, %p5032_p6 }
  0x4f   : > { %p5030_p2 = pneg %p5029_p1  ;;  %p5036_p7 = por %p5035_p5, %p5034_p3 }
  0x51   : > { %p5037_p4 = pnand %p5036_p7, %p5030_p2 }
  0x53   : > { %5040 = shalt.err (!%p5037_p4)
}
  0x54   : > { %s5041_s8 = scalar_lea.vmem %s5432_s28, 128  ;;  %s5229_s18 = smov [#allocation2]  }
  0x55   : > { %p5042_p12 = scmp.ne.s32.totalorder %s5432_s28, %s5041_s8  ;;  %s5046_s29 = sshll.u32 %s5229_s18, 4  ;;  %s5047_s29 = int_to_ptr.vmem [resolvable:$false] %s5046_s29 }
  0x56   : > { %s5048_s16 = scalar_lea.vmem %s5047_s29, 256  ;;  %p5049_p11 = scmp.lt.s32.totalorder %s5432_s28, %s5047_s29 }
  0x57   : > { %p5044_p1 = pnand %p5042_p12, %p6568_p0  ;;  %p5050_p6 = scmp.lt.s32.totalorder %s5048_s16, %s5041_s8 }
  0x59   : > { %p5045_p8 = pneg %p5044_p1  ;;  %p5051_p10 = por %p5050_p6, %p5049_p11 }
  0x5b   : > { %p5052_p3 = pnand %p5051_p10, %p5045_p8 }
  0x5d   : > { %5055 = shalt.err (!%p5052_p3)
}
  0x5e   : > { %4736 = dma.hbm_to_vmem [thread:$0]  (!%p5434_p9), %s5429_s27, 128, %s5432_s28, %s5443_s23  }
  0x5f   : > { %s5230_s1 = smov [#allocation8]   ;;  %s5231_s25 = smov [#allocation9]  }
  0x60   : > { %s404_s15 = sshll.u32 %s5230_s1, 4  ;;  %s426_s26 = sshll.u32 %s5231_s25, 4  ;;  %s405_s15 = int_to_ptr.vmem [resolvable:$true] %s404_s15  ;;  %s427_s26 = int_to_ptr.vmem [resolvable:$true] %s426_s26 }
  0x61   : > { %s5056_s29 = scalar_lea.hbm %s6540_s7, 1024 }
  0x62   : > { %p5057_p4 = scmp.ne.s32.totalorder %s6540_s7, %s5056_s29  ;;  %p5063_p7 = scmp.lt.u32.totalorder %s5056_s29, %s6540_s7 }
  0x64   : > { %p5059_p8 = pnand %p5057_p4, %p5384_p13 }
  0x66   : > { %p5060_p11 = pneg %p5059_p8 }
  0x68   : > { %p5065_p2 = pnand %p5063_p7, %p5060_p11 }
  0x6a   : > { %5068 = shalt.err (!%p5065_p2)
}
  0x6b   : > { %s5069_s27 = scalar_lea.vmem %s405_s15, 1024  ;;  %p5077_p6 = scmp.lt.s32.totalorder %s405_s15, %s405_s15 }
  0x6c   : > { %p5070_p5 = scmp.ne.s32.totalorder %s405_s15, %s5069_s27  ;;  %p5078_p10 = scmp.lt.s32.totalorder %s5069_s27, %s5069_s27 }
  0x6e   : > { %p5072_p12 = pnand %p5070_p5, %p5384_p13  ;;  %p5079_p3 = por %p5078_p10, %p5077_p6 }
  0x70   : > { %p5073_p1 = pneg %p5072_p12 }
  0x72   : > { %p5080_p0 = pnand %p5079_p3, %p5073_p1 }
  0x74   : > { %5083 = shalt.err (!%p5080_p0)
}
  0x75   : > { %p6599_p4 = scmp.ne.s32.totalorder %s6589_s24, 0  ;;  %s6600_s28 = smov 4  }
  0x76   : > { %s6601_s1 = smov 64   ;;  %s468_s25 = scalar_lea.vmem [#allocation7], %s5423_s9 }
  0x77   : > { %4729 = dma.hbm_to_vmem [thread:$0]  (!%p6599_p4), %s6540_s7, 1024, %s405_s15, [#allocation6], %s6601_s1, %s6601_s1, %s6600_s28  }
  0x78   : > { %s475_s12 = sshll.u32 %s468_s25, 4  ;;  %s5084_s8 = scalar_lea.hbm %s6544_s11, 64  ;;  %s476_s12 = int_to_ptr.vmem [resolvable:$true] %s475_s12 }
  0x79   : > { %p5085_p0 = scmp.ne.s32.totalorder %s6544_s11, %s5084_s8  ;;  %p5091_p7 = scmp.lt.u32.totalorder %s5084_s8, %s6544_s11 }
  0x7b   : > { %p5087_p8 = pnand %p5085_p0, %p5384_p13 }
  0x7d   : > { %p5088_p11 = pneg %p5087_p8 }
  0x7f   : > { %p5093_p2 = pnand %p5091_p7, %p5088_p11 }
  0x81   : > { %5096 = shalt.err (!%p5093_p2)
}
  0x82   : > { %s5097_s15 = scalar_lea.vmem %s427_s26, 64  ;;  %p5105_p6 = scmp.lt.s32.totalorder %s427_s26, %s427_s26 }
  0x83   : > { %p5098_p5 = scmp.ne.s32.totalorder %s427_s26, %s5097_s15  ;;  %p5106_p10 = scmp.lt.s32.totalorder %s5097_s15, %s5097_s15 }
  0x85   : > { %p5100_p12 = pnand %p5098_p5, %p5384_p13  ;;  %p5107_p3 = por %p5106_p10, %p5105_p6 }
  0x87   : > { %p5101_p1 = pneg %p5100_p12 }
  0x89   : > { %p5108_p9 = pnand %p5107_p3, %p5101_p1 }
  0x8b   : > { %5111 = shalt.err (!%p5108_p9)
}
  0x8c   : > { %s5232_s9 = smov 16   ;;  %s5233_s6 = smov 1  }
  0x8d   : > { %4732 = dma.hbm_to_vmem [thread:$0]  (!%p6599_p4), %s6544_s11, 64, %s427_s26, [#allocation10], %s5232_s9, %s5232_s9, %s5233_s6  }
  0x8e   : > { %s5112_s14 = scalar_lea.hbm %s5441_s13, 128  ;;  %p6602_p0 = scmp.ne.s32.totalorder %s6598_s20, 0 }
  0x8f   : > { %p5113_p13 = scmp.ne.s32.totalorder %s5441_s13, %s5112_s14  ;;  %s5117_s22 = scalar_lea.hbm %s6536_s3, 256 }
  0x90   : > { %p6603_p8 = pneg %p6602_p0  ;;  %p5118_p7 = scmp.lt.u32.totalorder %s5441_s13, %s6536_s3 }
  0x91   : > { %p5119_p2 = scmp.lt.u32.totalorder %s5117_s22, %s5112_s14  ;;  %p5121_p12 = scmp.lt.u32.totalorder %s5112_s14, %s5441_s13 }
  0x92   : > { %p5115_p11 = pnand %p5113_p13, %p6603_p8 }
  0x93   : > { %p5120_p5 = por %p5119_p2, %p5118_p7 }
  0x94   : > { %p5116_p9 = pneg %p5115_p11 }
  0x95   : > { %p5122_p1 = por %p5121_p12, %p5120_p5 }
  0x97   : > { %p5123_p4 = pnand %p5122_p1, %p5116_p9 }
  0x99   : > { %5126 = shalt.err (!%p5123_p4)
}
  0x9a   : > { %s5127_s24 = scalar_lea.vmem %s476_s12, 128  ;;  %p6604_p10 = pmov %p6603_p8 }
  0x9b   : > { %p5128_p6 = scmp.ne.s32.totalorder %s476_s12, %s5127_s24  ;;  %s5234_s26 = smov [#allocation7]  }
  0x9c   : > { %s5132_s29 = sshll.u32 %s5234_s26, 4  ;;  %s5133_s29 = int_to_ptr.vmem [resolvable:$false] %s5132_s29 }
  0x9d   : > { %p5130_p3 = pnand %p5128_p6, %p6604_p10  ;;  %s5134_s8 = scalar_lea.vmem %s5133_s29, 256 }
  0x9e   : > { %p5135_p8 = scmp.lt.s32.totalorder %s476_s12, %s5133_s29  ;;  %p5136_p11 = scmp.lt.s32.totalorder %s5134_s8, %s5127_s24 }
  0x9f   : > { %p5131_p13 = pneg %p5130_p3 }
  0xa0   : > { %p5137_p2 = por %p5136_p11, %p5135_p8 }
  0xa2   : > { %p5138_p7 = pnand %p5137_p2, %p5131_p13 }
  0xa4   : > { %5141 = shalt.err (!%p5138_p7)
}
  0xa5   : > { %4739 = dma.hbm_to_vmem [thread:$0]  (!%p6602_p0), %s5441_s13, 128, %s476_s12, %s5443_s23  }
  0xa6   : > { %p6605_p9 = scmp.ne.s32.totalorder %s6588_s21, 0 }
  0xa7   : > { %s486_s16 = sand.u32 (!%p6605_p9), 1, %s5336_s17   ;;  %s488_s27 = sand.u32 (!%p6605_p9), 1, %s5216_s30  }
  0xa8   : > { %484 = sbr.rel (%p6605_p9) target bundleno = 7012 (0x1b64), region = 76  ;;  %s5537_s15 = sshll.u32 (!%p6605_p9), %s488_s27, 3 }
  0xa9   : > { %s487_s9 = scalar_lea.sflag (!%p6605_p9), [#allocation3], %s486_s16  ;;  %s490_s6 = scalar_lea.vmem (!%p6605_p9), [#allocation2], %s5537_s15 }
  0xaa   : > { %p6606_p5 = scmp.ne.s32.totalorder (!%p6605_p9), %s6585_s19, 0 }
  0xaf   : > { %5187 = dma.done.wait (%p6606_p5), %s487_s9, 128  }
  0xb0   : > { %5189 = vsyncadd (%p6606_p5), %s487_s9, 4294967168  ;;  %p6607_p0 = scmp.eq.s32.totalorder %s5336_s17, 0 }
  0xb2   : > { %5191 = dma.done.wait (%p6607_p0), [#allocation6], 128   ;;  %p6608_p12 = pmov %p6607_p0 }
  0xb3   : > { %s503_s21 = scalar_lea.vmem [#allocation7], %s5537_s15 }
  0xb4   : > { %5193 = vsyncadd (%p6608_p12), [#allocation6], 4294967168 }
  0xb5   : > { %5195 = dma.done.wait (%p6606_p5), %s487_s9, 128  }
  0xb6   : > { %5197 = vsyncadd (%p6606_p5), %s487_s9, 4294967168  ;;  %p6609_p1 = pmov %p6607_p0 }
  0xb7   : > { %p6610_p4 = pmov %p6607_p0 }
  0xb8   : > { %5199 = dma.done.wait (%p6609_p1), [#allocation6], 1024  }
  0xb9   : > { %5201 = vsyncadd (%p6610_p4), [#allocation6], 4294966272  ;;  %p6611_p6 = pmov %p6607_p0 }
  0xba   : > { %p6612_p10 = pmov %p6607_p0 }
  0xbb   : > { %5203 = dma.done.wait (%p6611_p6), [#allocation10], 64  }
  0xbc   : > { %5205 = vsyncadd (%p6612_p10), [#allocation10], 4294967232  ;;  %v5235_v0 = vmov 0.0   ;;  %vm5236_vm0 = vmmov 0   ;;  %vm582_vm1 = vcmask 1045504   ;;  %v562_v2 = vld [vmem:[%s490_s6] sm:$0xff]  ;;  %v636_v22 = vlaneseq }
  0xbd   : > { %4483 = vmatprep.subr.bf16.mxu0 %v5235_v0  ;;  %4485 = vmatprep.mubr.msk.bf16.mxu0 %vm5236_vm0, %v5235_v0  ;;  %v4795_v1 = vld [vmem:[#allocation5] sm:$0x3f]   ;;  %v563_v4 = vpack.c.bf16 %v562_v2, %v562_v2  ;;  %vm578_vm2 = vcmask 97280   ;;  %v4796_v5 = vld [vmem:[%s6537_s4] sm:$0xff]   ;;  %v4798_v7 = vld [vmem:[%s6537_s4 + $0x8] sm:$0xff]   ;;  %vm652_vm3 = vcmask 261120  }
  0xbe   : > { %4489 = vmatprep.subr.bf16.mxu1 %v5235_v0  ;;  %4493 = vmatprep.mubr.msk.bf16.mxu1 %vm5236_vm0, %v5235_v0  ;;  %v584_v3 = vsel %vm582_vm1, %v4795_v1, 0  ;;  %v4797_v6 = vld [vmem:[%s6538_s5] sm:$0xff]   ;;  %v4799_v8 = vld [vmem:[%s6538_s5 + $0x8] sm:$0xff]   ;;  %s6613_s18 = sld [smem:[#allocation27_spill]]  ;;  %v4803_v21 = vld [vmem:[#allocation8 + $0x8] sm:$0xff]   ;;  %v5614_v23 = vshrl.u32 %v636_v22, 7 }
  0xbf   : > { %4484 = vmatpush3.bf16.msra.mxu0 %v584_v3  ;;  %4490 = vmatpush3.bf16.msra.mxu1 %v4796_v5  ;;  %v4221_v9 = vld [vmem:[%s6535_s2] ss:$0 sm:$0xff]  ;;  %v4802_v20 = vld [vmem:[#allocation8] sm:$0xff]   ;;  %v5237_v24 = vmov 1966171168   ;;  %s6614_s16 = sld [smem:[#allocation30_spill]] }
  0xc0   : > { %4497 = vmatprep.subr.bf16.mxu0 %v5235_v0  ;;  %4491 = vmatprep.subr.bf16.mxu1 %v5235_v0  ;;  %v626_v11 = vld [vmem:[%s503_s21] sm:$0xff]  ;;  %v819_v25 = vunpack.c.l.s4 %v5237_v24  ;;  %v5238_v26 = vmov 1983009808   ;;  %v5617_v28 = vsub.s32 0, %v5614_v23  ;;  %v5620_v29 = vsub.s32 1, %v5614_v23  ;;  %s6616_s19 = sld [smem:[#allocation28_spill]] }
  0xc1   : > { %v869_v27 = vunpack.c.l.s4 %v5238_v26  ;;  %vm936_vm4 = vcmask 254976   ;;  %vm1207_vm5 = vcmask 1041409   ;;  %vm1209_vm6 = vcmask 1042434   ;;  %s6617_s10 = sld [smem:[#allocation29_spill]]  ;;  %s6618_s26 = sld [smem:[#allocation31_spill]] }
  0xc2   : > { %4486 = vmatmul.mubr.msk.bf16.vlgmr.msra.gmra.mrb[0].mxu0 %vm578_vm2, %v563_v4  ;;  %v820_v31 = vunpack.c.0.s8 %v819_v25  ;;  %vm1211_vm7 = vcmask 1043459   ;;  %vm1213_vm8 = vcmask 1044484   ;;  %vm1215_vm9 = vcmask 1045509   ;;  %s6619_s13 = sld [smem:[#allocation32_spill]]  ;;  %s4395_s12 = sshll.u32 %s5336_s17, 7 }
  0xc3   : > { %4501 = vmatprep.mubr.msk.bf16.mxu0 %vm5236_vm0, %v5235_v0  ;;  %4498 = vmatpush3.bf16.msra.mxu0 %v4797_v6  ;;  %v870_v32 = vunpack.c.0.s8 %v869_v27  ;;  %vm1217_vm10 = vcmask 1046534   ;;  %vm1219_vm11 = vcmask 1047559   ;;  %vm1406_vm12 = vcmask 523264   ;;  %s6620_s23 = sld [smem:[#allocation24_spill]]  ;;  %s560_s28 = scalar_lea.vmem [#allocation11], %s5537_s15 }
  0xc4   : > { %4499 = vmatprep.subr.bf16.mxu0 %v5235_v0  ;;  %4492 = vmatpush3.bf16.msra.mxu1 %v4798_v7  ;;  %v4800_v17 = vld [vmem:[%s6613_s18] sm:$0xff]   ;;  %v4801_v19 = vld [vmem:[%s6613_s18 + $0x8] sm:$0xff]   ;;  %v5632_v35 = vsub.s32 %v820_v31, %v5614_v23  ;;  %s4085_s14 = sshll.u32 %s560_s28, 4  ;;  %s6621_s22 = sld [smem:[#allocation33_spill]]  ;;  %s6490_s14 = int_to_ptr.vmem [resolvable:$true] %s4085_s14 }
  0xc5   : > { %4505 = vmatprep.subr.bf16.mxu1 %v5235_v0  ;;  %s6615_s9 = smov %s6614_s16  ;;  %v5625_v30 = vld [vmem:[%s6614_s16] sm:$0xff]  ;;  %v5635_v38 = vsub.s32 %v870_v32, %v5614_v23  ;;  %s4072_s17 = scalar_lea.sflag [#allocation4], %s488_s27 }
  0xc6   : > { %v639_v33 = vrot.slane %v5625_v30, %v5617_v28  ;;  %v703_v34 = vrot.slane %v5625_v30, %v5620_v29  ;;  %s5142_s15 = scalar_lea.vmem %s6490_s14, 128  ;;  %s5239_s24 = smov [#allocation11]  }
  0xc7   : > { %4500 = vmatpush3.bf16.msra.mxu0 %v4799_v8  ;;  %p5143_p3 = scmp.ne.s32.totalorder %s6490_s14, %s5142_s15  ;;  %s5146_s29 = sshll.u32 %s5239_s24, 4  ;;  %s5147_s29 = int_to_ptr.vmem [resolvable:$false] %s5146_s29 }
  0xc8   : > { %4513 = vmatprep.subr.bf16.mxu0 %v5235_v0  ;;  %s5148_s8 = scalar_lea.vmem %s5147_s29, 256  ;;  %p5149_p2 = scmp.lt.s32.totalorder %s6490_s14, %s5147_s29 }
  0xc9   : > { %p6622_p13 = scmp.ne.s32.totalorder %s6620_s23, 0  ;;  %p5150_p7 = scmp.lt.s32.totalorder %s5148_s8, %s5142_s15 }
  0xca   : > { %s6488_s25 = scalar_lea.hbm %s6621_s22, %s4395_s12 }
  0xcb   : > { %p5144_p8 = pnand %p5143_p3, %p6622_p13  ;;  %p5151_p9 = por %p5150_p7, %p5149_p2 }
  0xcd   : > { %p5145_p11 = pneg %p5144_p8 }
  0xcf   : > { %p5152_p5 = pnand %p5151_p9, %p5145_p11 }
 0x195   : > { %v620_v10 = vpop.f32.mrb[0].mxu0 }
 0x196   : > { %v621_v12 = vadd.f32 %v4221_v9, %v620_v10  ;;  %v4487_v13 = vpop.f32.mrb[1].mxu0 }
 0x197   : > { %v623_v14 = vpop.f32.mrb[2].mxu0 }
 0x198   : > { %v5591_v15 = vadd.f32 %v626_v11, %v621_v12  ;;  %v4488_v16 = vpop.f32.mrb[3].mxu0 }
 0x19a   : > { %v631_v18 = vpack.c.bf16 %v5591_v15, %v5591_v15 }
 0x19c   : > { %4494 = vmatmul.mubr.msk.bf16.vlgmr.msra.gmra.mrb[0].mxu1 %vm652_vm3, %v631_v18  ;;  %4502 = vmatmul.mubr.msk.bf16.vlgmr.msra.gmra.mrb[4].mxu0 %vm652_vm3, %v631_v18 }
 0x19d   : > { %4506 = vmatpush3.bf16.msra.mxu1 %v4800_v17  ;;  %4509 = vmatprep.mubr.msk.bf16.mxu1 %vm5236_vm0, %v5235_v0 }
 0x19e   : > { %4507 = vmatprep.subr.bf16.mxu1 %v5235_v0  ;;  %4517 = vmatprep.mubr.msk.bf16.mxu0 %vm5236_vm0, %v5235_v0 }
 0x19f   : > { %4514 = vmatpush3.bf16.msra.mxu0 %v4802_v20 }
 0x1a0   : > { %4515 = vmatprep.subr.bf16.mxu0 %v5235_v0 }
 0x1a1   : > { %4508 = vmatpush3.bf16.msra.mxu1 %v4801_v19 }
 0x1a2   : > { %4521 = vmatprep.subr.bf16.mxu1 %v5235_v0 }
 0x1a3   : > { %4516 = vmatpush3.bf16.msra.mxu0 %v4803_v21 }
 0x1a4   : > { %4510 = vmatmul.mubr.msk.bf16.vlgmr.msra.gmra.mrb[4].mxu1 %vm652_vm3, %v631_v18  ;;  %4529 = vmatprep.subr.bf16.mxu0 %v5235_v0 }
 0x1a5   : > { %4525 = vmatprep.mubr.msk.bf16.mxu1 %vm5236_vm0, %v5235_v0 }
 0x26f   : > { %v690_v36 = vpop.f32.mrb[0].mxu1  ;;  %v750_v37 = vpop.f32.mrb[4].mxu0 }
 0x270   : > { %v691_v39 = vadd.f32 %v690_v36, %v639_v33  ;;  %v751_v40 = vadd.f32 %v750_v37, %v703_v34  ;;  %v4495_v41 = vpop.f32.mrb[1].mxu1  ;;  %v4503_v42 = vpop.f32.mrb[5].mxu0 }
 0x271   : > { %v693_v43 = vpop.f32.mrb[2].mxu1  ;;  %v753_v44 = vpop.f32.mrb[6].mxu0 }
 0x272   : > { %v817_v45 = vcombine.high %v691_v39, %v691_v39  ;;  %v824_v46 = vrot.slane %v691_v39, %v5632_v35  ;;  %v867_v47 = vcombine.high %v751_v40, %v751_v40  ;;  %v4496_v48 = vpop.f32.mrb[3].mxu1  ;;  %v4504_v49 = vpop.f32.mrb[7].mxu0  ;;  %v874_v50 = vrot.slane %v751_v40, %v5635_v38 }
 0x274   : > { %v831_v51 = vrot.slane %v817_v45, %v5632_v35  ;;  %v832_v52 = vcombine.high %v824_v46, %v824_v46  ;;  %v840_v53 = vrot.slane %v824_v46, %v5632_v35  ;;  %v881_v54 = vrot.slane %v867_v47, %v5635_v38 }
 0x275   : > { %v882_v60 = vcombine.high %v874_v50, %v874_v50 }
 0x276   : > { %v833_v55 = vcombine.high %v831_v51, %v831_v51  ;;  %v847_v56 = vrot.slane %v831_v51, %v5632_v35  ;;  %v854_v57 = vrot.slane %v832_v52, %v5632_v35  ;;  %v862_v58 = vcombine.high %v840_v53, %v840_v53 }
 0x277   : > { %v891_v59 = vrot.slane %v840_v53, %v5617_v28  ;;  %v5645_v61 = vpop.f32.mrb[4].mxu1  ;;  %v883_v6 = vcombine.high %v881_v54, %v881_v54 }
 0x278   : > { %v861_v62 = vrot.slane %v833_v55, %v5632_v35  ;;  %v863_v63 = vcombine.high %v847_v56, %v847_v56  ;;  %v864_v1 = vcombine.high %v854_v57, %v854_v57  ;;  %v895_v2 = vrot.slane %v854_v57, %v5617_v28  ;;  %v4511_v3 = vpop.f32.mrb[5].mxu1 }
 0x279   : > { %v899_v4 = vrot.slane %v862_v58, %v5617_v28  ;;  %v907_v5 = vrot.slane %v847_v56, %v5617_v28  ;;  %v5651_v7 = vmul.f32 %v891_v59, %v874_v50  ;;  %v813_v8 = vpop.f32.mrb[6].mxu1 }
 0x27a   : > { %v865_v9 = vcombine.high %v861_v62, %v861_v62  ;;  %v903_v10 = vrot.slane %v864_v1, %v5617_v28  ;;  %v911_v11 = vrot.slane %v861_v62, %v5617_v28  ;;  %v915_v12 = vrot.slane %v863_v63, %v5617_v28  ;;  %v4512_v13 = vpop.f32.mrb[7].mxu1 }
 0x27b   : > { %v5656_v14 = vmul.f32 %v895_v2, %v874_v50  ;;  %v5658_v16 = vmul.f32 %v899_v4, %v882_v60  ;;  %v5660_v17 = vmul.f32 %v907_v5, %v881_v54  ;;  %v937_v18 = vsel %vm936_vm4, %v5651_v7, -inf }
 0x27c   : > { %v919_v19 = vrot.slane %v865_v9, %v5617_v28  ;;  %v5665_v20 = vmul.f32 %v903_v10, %v882_v60  ;;  %v5667_v21 = vmul.f32 %v911_v11, %v881_v54  ;;  %v5669_v22 = vmul.f32 %v915_v12, %v883_v6 }
 0x27d   : > { %v938_v24 = vrot.slane %v937_v18, 4  ;;  %v944_v25 = vsel %vm936_vm4, %v5656_v14, -inf  ;;  %v951_v26 = vsel %vm936_vm4, %v5658_v16, -inf  ;;  %v965_v27 = vsel %vm936_vm4, %v5660_v17, -inf }
 0x27e   : > { %v5677_v31 = vmul.f32 %v919_v19, %v883_v6  ;;  %v945_v32 = vrot.slane %v944_v25, 4  ;;  %v952_v33 = vrot.slane %v951_v26, 4  ;;  %v958_v34 = vsel %vm936_vm4, %v5665_v20, -inf }
 0x27f   : > { %v939_v36 = vmax.f32 %v937_v18, %v938_v24  ;;  %v959_v37 = vrot.slane %v958_v34, 4  ;;  %v966_v39 = vrot.slane %v965_v27, 4  ;;  %v972_v40 = vsel %vm936_vm4, %v5667_v21, -inf }
 0x280   : > { %v946_v41 = vmax.f32 %v944_v25, %v945_v32  ;;  %v953_v42 = vmax.f32 %v951_v26, %v952_v33  ;;  %v973_v43 = vrot.slane %v972_v40, 4  ;;  %v979_v44 = vsel %vm936_vm4, %v5669_v22, -inf }
 0x281   : > { %v940_v45 = vrot.slane %v939_v36, 2  ;;  %v960_v46 = vmax.f32 %v958_v34, %v959_v37  ;;  %v967_v47 = vmax.f32 %v965_v27, %v966_v39  ;;  %v980_v48 = vrot.slane %v979_v44, 4 }
 0x282   : > { %v947_v49 = vrot.slane %v946_v41, 2  ;;  %v954_v50 = vrot.slane %v953_v42, 2  ;;  %v974_v51 = vmax.f32 %v972_v40, %v973_v43  ;;  %v986_v52 = vsel %vm936_vm4, %v5677_v31, -inf }
 0x283   : > { %v941_v53 = vmax.f32 %v939_v36, %v940_v45  ;;  %v961_v54 = vrot.slane %v960_v46, 2  ;;  %v968_v55 = vrot.slane %v967_v47, 2  ;;  %v981_v56 = vmax.f32 %v979_v44, %v980_v48 }
 0x284   : > { %v948_v57 = vmax.f32 %v946_v41, %v947_v49  ;;  %v955_v58 = vmax.f32 %v953_v42, %v954_v50  ;;  %v975_v59 = vrot.slane %v974_v51, 2  ;;  %v987_v60 = vrot.slane %v986_v52, 4 }
 0x285   : > { %v942_v62 = vrot.slane %v941_v53, 1  ;;  %v962_v63 = vmax.f32 %v960_v46, %v961_v54  ;;  %v969_v1 = vmax.f32 %v967_v47, %v968_v55  ;;  %v982_v2 = vrot.slane %v981_v56, 2 }
 0x286   : > { %v949_v3 = vrot.slane %v948_v57, 1  ;;  %v956_v4 = vrot.slane %v955_v58, 1  ;;  %v976_v5 = vmax.f32 %v974_v51, %v975_v59  ;;  %v988_v6 = vmax.f32 %v986_v52, %v987_v60 }
 0x287   : > { %v943_v8 = vmax.f32 %v941_v53, %v942_v62  ;;  %v963_v9 = vrot.slane %v962_v63, 1  ;;  %v970_v10 = vrot.slane %v969_v1, 1  ;;  %v983_v11 = vmax.f32 %v981_v56, %v982_v2 }
 0x288   : > { %v950_v12 = vmax.f32 %v948_v57, %v949_v3  ;;  %v957_v13 = vmax.f32 %v955_v58, %v956_v4  ;;  %v977_v18 = vrot.slane %v976_v5, 1  ;;  %v989_v19 = vrot.slane %v988_v6, 2 }
 0x289   : > { %v964_v24 = vmax.f32 %v962_v63, %v963_v9  ;;  %v971_v25 = vmax.f32 %v969_v1, %v970_v10  ;;  %v984_v26 = vrot.slane %v983_v11, 1  ;;  %v993_v27 = vsub.f32 %v5651_v7, %v943_v8 }
 0x28a   : > { %v978_v32 = vmax.f32 %v976_v5, %v977_v18  ;;  %v990_v33 = vmax.f32 %v988_v6, %v989_v19  ;;  %v994_v34 = vsub.f32 %v5656_v14, %v950_v12  ;;  %v995_v36 = vsub.f32 %v5658_v16, %v957_v13 }
 0x28b   : > { %v985_v37 = vmax.f32 %v983_v11, %v984_v26  ;;  %v996_v39 = vsub.f32 %v5665_v20, %v964_v24  ;;  %v997_v40 = vsub.f32 %v5660_v17, %v971_v25  ;;  %v1001_v41 = vmul.f32 1.442695, %v993_v27 }
 0x28c   : > { %v991_v42 = vrot.slane %v990_v33, 1  ;;  %v998_v43 = vsub.f32 %v5667_v21, %v978_v32  ;;  %v1003_v44 = vmul.f32 1.442695, %v994_v34  ;;  %v1005_v45 = vmul.f32 1.442695, %v995_v36 }
 0x28d   : > { %v999_v46 = vsub.f32 %v5669_v22, %v985_v37  ;;  %4854 = vpow2.f32 %v1001_v41  ;;  %v1007_v7 = vmul.f32 1.442695, %v996_v39  ;;  %v1009_v47 = vmul.f32 1.442695, %v997_v40 }
 0x28e   : > { %v992_v48 = vmax.f32 %v990_v33, %v991_v42  ;;  %4856 = vpow2.f32 %v1003_v44  ;;  %v1011_v14 = vmul.f32 1.442695, %v998_v43  ;;  %v5702_v50 = vsub.s32 2, %v5614_v23 }
 0x28f   : > { %4858 = vpow2.f32 %v1005_v45  ;;  %v1013_v16 = vmul.f32 1.442695, %v999_v46 }
 0x290   : > { %v1000_v20 = vsub.f32 %v5677_v31, %v992_v48  ;;  %4860 = vpow2.f32 %v1007_v7  ;;  %v763_v2 = vrot.slane %v5625_v30, %v5702_v50 }
 0x291   : > { %4862 = vpow2.f32 %v1009_v47 }
 0x292   : > { %4864 = vpow2.f32 %v1011_v14  ;;  %v1015_v17 = vmul.f32 1.442695, %v1000_v20 }
 0x293   : > { %4866 = vpow2.f32 %v1013_v16 }
 0x294   : > { %4868 = vpow2.f32 %v1015_v17 }
 0x297   : > { %v5695_v21 = vpop.eup %4854 }
 0x298   : > { %v5697_v49 = vpop.eup %4856  ;;  %v1017_v22 = vsel %vm936_vm4, %v5695_v21, 0.0 }
 0x299   : > { %v5704_v51 = vpop.eup %4858  ;;  %v1018_v52 = vrot.slane %v1017_v22, 4  ;;  %v1024_v31 = vsel %vm936_vm4, %v5697_v49, 0.0 }
 0x29a   : > { %v5708_v53 = vpop.eup %4860  ;;  %v1025_v54 = vrot.slane %v1024_v31, 4  ;;  %v1031_v55 = vsel %vm936_vm4, %v5704_v51, 0.0 }
 0x29b   : > { %v5712_v56 = vpop.eup %4862  ;;  %v1019_v57 = vadd.f32 %v1018_v52, %v1017_v22  ;;  %v1032_v58 = vrot.slane %v1031_v55, 4  ;;  %v1038_v59 = vsel %vm936_vm4, %v5708_v53, 0.0 }
 0x29c   : > { %v5716_v60 = vpop.eup %4864  ;;  %v1026_v62 = vadd.f32 %v1025_v54, %v1024_v31  ;;  %v1039_v63 = vrot.slane %v1038_v59, 4  ;;  %v1045_v1 = vsel %vm936_vm4, %v5712_v56, 0.0 }
 0x29d   : > { %v5722_v3 = vpop.eup %4866  ;;  %v1020_v4 = vrot.slane %v1019_v57, 2  ;;  %v1033_v5 = vadd.f32 %v1032_v58, %v1031_v55  ;;  %v1046_v6 = vrot.slane %v1045_v1, 4  ;;  %v1052_v8 = vsel %vm936_vm4, %v5716_v60, 0.0 }
 0x29e   : > { %v5726_v9 = vpop.eup %4868  ;;  %v1027_v10 = vrot.slane %v1026_v62, 2  ;;  %v1040_v11 = vadd.f32 %v1039_v63, %v1038_v59  ;;  %v1053_v12 = vrot.slane %v1052_v8, 4  ;;  %v1059_v13 = vsel %vm936_vm4, %v5722_v3, 0.0 }
 0x29f   : > { %v1034_v18 = vrot.slane %v1033_v5, 2  ;;  %v1047_v19 = vadd.f32 %v1046_v6, %v1045_v1  ;;  %v1060_v24 = vrot.slane %v1059_v13, 4  ;;  %v1066_v25 = vsel %vm936_vm4, %v5726_v9, 0.0 }
 0x2a0   : > { %v1041_v26 = vrot.slane %v1040_v11, 2  ;;  %v1054_v27 = vadd.f32 %v1053_v12, %v1052_v8  ;;  %v1067_v32 = vrot.slane %v1066_v25, 4  ;;  %v1021_v33 = vadd.f32 %v1020_v4, %v1019_v57 }
 0x2a1   : > { %v1048_v34 = vrot.slane %v1047_v19, 2  ;;  %v1061_v36 = vadd.f32 %v1060_v24, %v1059_v13  ;;  %v1028_v37 = vadd.f32 %v1027_v10, %v1026_v62  ;;  %v1035_v39 = vadd.f32 %v1034_v18, %v1033_v5 }
 0x2a2   : > { %v1055_v40 = vrot.slane %v1054_v27, 2  ;;  %v1068_v41 = vadd.f32 %v1067_v32, %v1066_v25  ;;  %v1022_v42 = vrot.slane %v1021_v33, 1  ;;  %v1042_v43 = vadd.f32 %v1041_v26, %v1040_v11 }
 0x2a3   : > { %v1062_v44 = vrot.slane %v1061_v36, 2  ;;  %v1029_v45 = vrot.slane %v1028_v37, 1  ;;  %v1036_v46 = vrot.slane %v1035_v39, 1  ;;  %v1049_v7 = vadd.f32 %v1048_v34, %v1047_v19 }
 0x2a4   : > { %v1069_v47 = vrot.slane %v1068_v41, 2  ;;  %v1023_v48 = vadd.f32 %v1022_v42, %v1021_v33  ;;  %v1043_v14 = vrot.slane %v1042_v43, 1  ;;  %v1056_v16 = vadd.f32 %v1055_v40, %v1054_v27 }
 0x2a5   : > { %v1030_v20 = vadd.f32 %v1029_v45, %v1028_v37  ;;  %v1037_v17 = vadd.f32 %v1036_v46, %v1035_v39  ;;  %v1050_v22 = vrot.slane %v1049_v7, 1  ;;  %v1063_v52 = vadd.f32 %v1062_v44, %v1061_v36 }
 0x2a6   : > { %v1044_v31 = vadd.f32 %v1043_v14, %v1042_v43  ;;  %v1057_v54 = vrot.slane %v1056_v16, 1  ;;  %v1070_v55 = vadd.f32 %v1069_v47, %v1068_v41  ;;  %4870 = vrcp.f32 %v1023_v48 }
 0x2a7   : > { %v1051_v57 = vadd.f32 %v1050_v22, %v1049_v7  ;;  %v1064_v58 = vrot.slane %v1063_v52, 1  ;;  %4872 = vrcp.f32 %v1030_v20  ;;  %v811_v63 = vadd.f32 %v5645_v61, %v763_v2 }
 0x2a8   : > { %v1058_v59 = vadd.f32 %v1057_v54, %v1056_v16  ;;  %v1071_v62 = vrot.slane %v1070_v55, 1  ;;  %4874 = vrcp.f32 %v1037_v17 }
 0x2a9   : > { %v1065_v1 = vadd.f32 %v1064_v58, %v1063_v52  ;;  %4876 = vrcp.f32 %v1044_v31  ;;  %v1090_v5 = vcombine.high %v811_v63, %v811_v63  ;;  %v1097_v6 = vrot.slane %v811_v63, %v5635_v38 }
 0x2aa   : > { %v1072_v4 = vadd.f32 %v1071_v62, %v1070_v55  ;;  %4878 = vrcp.f32 %v1051_v57 }
 0x2ab   : > { %4880 = vrcp.f32 %v1058_v59  ;;  %v1104_v12 = vrot.slane %v1090_v5, %v5635_v38  ;;  %v1105_v19 = vcombine.high %v1097_v6, %v1097_v6 }
 0x2ac   : > { %4882 = vrcp.f32 %v1065_v1 }
 0x2ad   : > { %4884 = vrcp.f32 %v1072_v4  ;;  %v1106_v34 = vcombine.high %v1104_v12, %v1104_v12 }
 0x2b0   : > { %v4871_v8 = vpop.eup %4870 }
 0x2b1   : > { %v4873_v10 = vpop.eup %4872  ;;  %v1081_v11 = vmul.f32 %v4871_v8, %v5695_v21 }
 0x2b2   : > { %v4875_v13 = vpop.eup %4874  ;;  %v1082_v18 = vmul.f32 %v4873_v10, %v5697_v49 }
 0x2b3   : > { %v4877_v61 = vpop.eup %4876  ;;  %v1083_v2 = vmul.f32 %v4875_v13, %v5704_v51  ;;  %v1111_v24 = vmul.f32 %v1097_v6, %v1081_v11 }
 0x2b4   : > { %v4879_v25 = vpop.eup %4878  ;;  %v1084_v26 = vmul.f32 %v4877_v61, %v5708_v53  ;;  %v1112_v27 = vmul.f32 %v1097_v6, %v1082_v18 }
 0x2b5   : > { %v4881_v32 = vpop.eup %4880  ;;  %v1085_v33 = vmul.f32 %v4879_v25, %v5712_v56  ;;  %v1113_v36 = vmul.f32 %v1105_v19, %v1083_v2  ;;  %v1119_v21 = vsel %vm936_vm4, %v1111_v24, 0.0 }
 0x2b6   : > { %v4883_v37 = vpop.eup %4882  ;;  %v1086_v39 = vmul.f32 %v4881_v32, %v5716_v60  ;;  %v1114_v49 = vmul.f32 %v1105_v19, %v1084_v26  ;;  %v1120_v40 = vrot.slane %v1119_v21, 4  ;;  %v1126_v51 = vsel %vm936_vm4, %v1112_v27, 0.0 }
 0x2b7   : > { %v4885_v41 = vpop.eup %4884  ;;  %v1087_v42 = vmul.f32 %v4883_v37, %v5722_v3  ;;  %v1115_v43 = vmul.f32 %v1104_v12, %v1085_v33  ;;  %v1127_v53 = vrot.slane %v1126_v51, 4  ;;  %v1133_v44 = vsel %vm936_vm4, %v1113_v36, 0.0 }
 0x2b8   : > { %v1088_v56 = vmul.f32 %v4885_v41, %v5726_v9  ;;  %v1116_v45 = vmul.f32 %v1104_v12, %v1086_v39  ;;  %v1121_v46 = vadd.f32 %v1120_v40, %v1119_v21  ;;  %v1134_v7 = vrot.slane %v1133_v44, 4 }
 0x2b9   : > { %v1117_v47 = vmul.f32 %v1106_v34, %v1087_v42  ;;  %v1128_v48 = vadd.f32 %v1127_v53, %v1126_v51  ;;  %v1140_v60 = vsel %vm936_vm4, %v1114_v49, 0.0  ;;  %v1147_v14 = vsel %vm936_vm4, %v1115_v43, 0.0 }
 0x2ba   : > { %v1118_v16 = vmul.f32 %v1106_v34, %v1088_v56  ;;  %v1122_v20 = vrot.slane %v1121_v46, 2  ;;  %v1135_v17 = vadd.f32 %v1134_v7, %v1133_v44  ;;  %v1141_v22 = vrot.slane %v1140_v60, 4 }
 0x2bb   : > { %v1129_v3 = vrot.slane %v1128_v48, 2  ;;  %v1148_v52 = vrot.slane %v1147_v14, 4  ;;  %v1154_v31 = vsel %vm936_vm4, %v1116_v45, 0.0  ;;  %v1161_v54 = vsel %vm936_vm4, %v1117_v47, 0.0 }
 0x2bc   : > { %v1123_v9 = vadd.f32 %v1122_v20, %v1121_v46  ;;  %v1136_v55 = vrot.slane %v1135_v17, 2  ;;  %v1142_v57 = vadd.f32 %v1141_v22, %v1140_v60  ;;  %v1155_v58 = vrot.slane %v1154_v31, 4 }
 0x2bd   : > { %v1130_v59 = vadd.f32 %v1129_v3, %v1128_v48  ;;  %v1149_v62 = vadd.f32 %v1148_v52, %v1147_v14  ;;  %v1162_v63 = vrot.slane %v1161_v54, 4  ;;  %v1168_v1 = vsel %vm936_vm4, %v1118_v16, 0.0 }
 0x2be   : > { %v1124_v4 = vrot.slane %v1123_v9, 1  ;;  %v1137_v5 = vadd.f32 %v1136_v55, %v1135_v17  ;;  %v1143_v6 = vrot.slane %v1142_v57, 2  ;;  %v1156_v8 = vadd.f32 %v1155_v58, %v1154_v31 }
 0x2bf   : > { %v1131_v10 = vrot.slane %v1130_v59, 1  ;;  %v1150_v11 = vrot.slane %v1149_v62, 2  ;;  %v1163_v12 = vadd.f32 %v1162_v63, %v1161_v54  ;;  %v1169_v13 = vrot.slane %v1168_v1, 4 }
 0x2c0   : > { %v1125_v18 = vadd.f32 %v1124_v4, %v1123_v9  ;;  %v1138_v61 = vrot.slane %v1137_v5, 1  ;;  %v1144_v2 = vadd.f32 %v1143_v6, %v1142_v57  ;;  %v1157_v19 = vrot.slane %v1156_v8, 2 }
 0x2c1   : > { %v1132_v24 = vadd.f32 %v1131_v10, %v1130_v59  ;;  %v1151_v25 = vadd.f32 %v1150_v11, %v1149_v62  ;;  %v1164_v26 = vrot.slane %v1163_v12, 2  ;;  %v1170_v27 = vadd.f32 %v1169_v13, %v1168_v1 }
 0x2c2   : > { %v1139_v32 = vadd.f32 %v1138_v61, %v1137_v5  ;;  %v1145_v33 = vrot.slane %v1144_v2, 1  ;;  %v1158_v34 = vadd.f32 %v1157_v19, %v1156_v8  ;;  %v1175_v36 = vpack.c.bf16 %v1125_v18, %v1125_v18 }
 0x2c3   : > { %v1152_v21 = vrot.slane %v1151_v25, 1  ;;  %v1165_v37 = vadd.f32 %v1164_v26, %v1163_v12  ;;  %v1171_v39 = vrot.slane %v1170_v27, 2  ;;  %v1176_v49 = vpack.c.bf16 %v1132_v24, %v1132_v24  ;;  %v4804_v26 = vld [vmem:[%s6616_s19] sm:$0xff]  }
 0x2c4   : > { %v1146_v40 = vadd.f32 %v1145_v33, %v1144_v2  ;;  %v1159_v51 = vrot.slane %v1158_v34, 1  ;;  %v1177_v41 = vpack.c.bf16 %v1139_v32, %v1139_v32  ;;  %v1199_v42 = vunpack.c.l.b16 %v1175_v36  ;;  %4522 = vmatpush3.bf16.msra.mxu1 %v4804_v26  ;;  %v4807_v32 = vld [vmem:[%s6617_s10 + $0x8] sm:$0xff]   ;;  %v4816_v26 = vld [vmem:[#allocation8 + $0x10] sm:$0xff]  }
 0x2c5   : > { %v1153_v43 = vadd.f32 %v1152_v21, %v1151_v25  ;;  %v1166_v53 = vrot.slane %v1165_v37, 1  ;;  %v1172_v44 = vadd.f32 %v1171_v39, %v1170_v27  ;;  %v1200_v56 = vunpack.c.l.b16 %v1176_v49  ;;  %v4805_v27 = vld [vmem:[%s6616_s19 + $0x8] sm:$0xff]   ;;  %4523 = vmatprep.subr.bf16.mxu1 %v5235_v0 }
 0x2c6   : > { %v1160_v45 = vadd.f32 %v1159_v51, %v1158_v34  ;;  %v1178_v46 = vpack.c.bf16 %v1146_v40, %v1146_v40  ;;  %v1201_v7 = vunpack.c.l.b16 %v1177_v41  ;;  %v5762_v4 = vsub.s32 3, %v5614_v23 }
 0x2c7   : > { %v1167_v47 = vadd.f32 %v1166_v53, %v1165_v37  ;;  %v1173_v48 = vrot.slane %v1172_v44, 1  ;;  %v1179_v60 = vpack.c.bf16 %v1153_v43, %v1153_v43  ;;  %v1208_v14 = vsel %vm1207_vm5, %v1200_v56, %v1199_v42  ;;  %v4808_v53 = vld [vmem:[%s6617_s10 + $0x10] sm:$0xff]   ;;  %v4236_v56 = vld [vmem:[#allocation9] ss:$0 sm:$0xff] }
 0x2c8   : > { %v1180_v16 = vpack.c.bf16 %v1160_v45, %v1160_v45  ;;  %v1202_v20 = vunpack.c.l.b16 %v1178_v46  ;;  %v1210_v17 = vsel %vm1209_vm6, %v1201_v7, %v1208_v14  ;;  %v1190_v5 = vrot.slane %v5625_v30, %v5762_v4  ;;  %4524 = vmatpush3.bf16.msra.mxu1 %v4805_v27  ;;  %v4817_v27 = vld [vmem:[#allocation8 + $0x18] sm:$0xff]  }
 0x2c9   : > { %v1181_v22 = vpack.c.bf16 %v1167_v47, %v1167_v47  ;;  %v1203_v3 = vunpack.c.l.b16 %v1179_v60  ;;  %v1174_v52 = vadd.f32 %v1173_v48, %v1172_v44  ;;  %4541 = vmatprep.subr.bf16.mxu1 %v5235_v0  ;;  %v5786_v21 = vsub.s32 5, %v5614_v23  ;;  %v4809_v44 = vld [vmem:[%s6617_s10 + $0x18] sm:$0xff]  }
 0x2ca   : > { %v1204_v31 = vunpack.c.l.b16 %v1180_v16  ;;  %v1212_v54 = vsel %vm1211_vm7, %v1202_v20, %v1210_v17  ;;  %v5789_v37 = vsub.s32 6, %v5614_v23  ;;  %v5810_v16 = vsub.s32 4, %v5614_v23 }
 0x2cb   : > { %v1182_v9 = vpack.c.bf16 %v1174_v52, %v1174_v52  ;;  %v1205_v55 = vunpack.c.l.b16 %v1181_v22  ;;  %v1214_v57 = vsel %vm1213_vm8, %v1203_v3, %v1212_v54  ;;  %v1295_v39 = vrot.slane %v5625_v30, %v5786_v21 }
 0x2cc   : > { %v1216_v58 = vsel %vm1215_vm9, %v1204_v31, %v1214_v57  ;;  %v1300_v51 = vrot.slane %v5625_v30, %v5789_v37  ;;  %v1381_v20 = vrot.slane %v5625_v30, %v5810_v16 }
 0x2cd   : > { %v1206_v59 = vunpack.c.l.b16 %v1182_v9  ;;  %v1218_v62 = vsel %vm1217_vm10, %v1205_v55, %v1216_v58 }
 0x2cf   : > { %v1220_v63 = vsel %vm1219_vm11, %v1206_v59, %v1218_v62 }
 0x2d0   : > { %v1221_v1 = vpack.c.b16 %v1220_v63, %v1220_v63  ;;  %v4810_v63 = vld [vmem:[%s6537_s4 + $0x10] sm:$0xff]  }
 0x2d2   : > { %4518 = vmatmul.mubr.msk.bf16.vlgmr.msra.gmra.mrb[8].mxu0 %vm652_vm3, %v1221_v1  ;;  %v4811_v1 = vld [vmem:[%s6613_s18 + $0x10] sm:$0xff]  }
 0x2d3   : > { %4537 = vmatprep.mubr.msk.bf16.mxu0 %vm5236_vm0, %v5235_v0 }
 0x3a5   : > { %v1271_v6 = vpop.f32.mrb[8].mxu0 }
 0x3a6   : > { %v1272_v8 = vadd.f32 %v1271_v6, %v1190_v5  ;;  %v4519_v10 = vpop.f32.mrb[9].mxu0  ;;  %v4812_v5 = vld [vmem:[%s6537_s4 + $0x18] sm:$0xff]  }
 0x3a7   : > { %v1274_v11 = vpop.f32.mrb[10].mxu0  ;;  %v4813_v6 = vld [vmem:[%s6613_s18 + $0x18] sm:$0xff]  }
 0x3a8   : > { %v4520_v12 = vpop.f32.mrb[11].mxu0  ;;  %v1277_v13 = vadd.f32 %v1272_v8, %v5591_v15  ;;  %v4806_v15 = vld [vmem:[%s6617_s10] sm:$0xff]  }
 0x3a9   : > { %4530 = vmatpush3.bf16.msra.mxu0 %v4806_v15  ;;  %v5833_v12 = vsub.s32 7, %v5614_v23  ;;  %v5866_v15 = vld [vmem:[%s6615_s9 + $0x10] sm:$0xff] }
 0x3aa   : > { %v1278_v18 = vsel %vm652_vm3, %v1277_v13, 0.0  ;;  %4531 = vmatprep.subr.bf16.mxu0 %v5235_v0 }
 0x3ab   : > { %1279 = vadd.xlane.f32.xlu0 %v1278_v18 }
 0x3ad   : > { %4532 = vmatpush3.bf16.msra.mxu0 %v4807_v32  ;;  %v1488_v32 = vrot.slane %v5866_v15, %v5617_v28 }
 0x3ae   : > { %4533 = vmatprep.subr.bf16.mxu0 %v5235_v0 }
 0x3b1   : > { %4534 = vmatpush3.bf16.msra.mxu0 %v4808_v53 }
 0x3b2   : > { %4535 = vmatprep.subr.bf16.mxu0 %v5235_v0 }
 0x3b5   : > { %4536 = vmatpush3.bf16.msra.mxu0 %v4809_v44 }
 0x3b6   : > { %4557 = vmatprep.subr.bf16.mxu0 %v5235_v0 }
 0x438   : > { %v1280_v61 = vpop.xlane.xlu0 %1279 }
 0x439   : > { %v1282_v2 = vmul.f32 0.03125, %v1280_v61 }
 0x43b   : > { %v1283_v19 = vsub.f32 %v1277_v13, %v1282_v2  ;;  %v1467_v13 = vrot.slane %v5625_v30, %v5833_v12  ;;  %v4245_v2 = vld [vmem:[%s6615_s9 + $0x8] ss:$0 sm:$0xff]  ;;  %v4815_v30 = vld [vmem:[%s6538_s5 + $0x18] sm:$0xff]  }
 0x43d   : > { %v1284_v24 = vmul.f32 %v1283_v19, %v1283_v19 }
 0x43f   : > { %v1285_v25 = vsel %vm652_vm3, %v1284_v24, 0.0 }
 0x440   : > { %1286 = vadd.xlane.f32.xlu0 %v1285_v25  ;;  %v4814_v25 = vld [vmem:[%s6538_s5 + $0x10] sm:$0xff]  }
 0x4cd   : > { %v1287_v33 = vpop.xlane.xlu0 %1286 }
 0x4ce   : > { %v1288_v34 = vmul.f32 0.03125, %v1287_v33 }
 0x4d0   : > { %v1289_v36 = vadd.f32 1e-05, %v1288_v34 }
 0x4d2   : > { %4886 = vrsqrt.f32 %v1289_v36 }
 0x4dc   : > { %v4887_v49 = vpop.eup %4886 }
 0x4dd   : > { %v1291_v40 = vmul.f32 %v4887_v49, %v1283_v19 }
 0x4df   : > { %v1296_v41 = vmul.f32 %v1295_v39, %v1291_v40 }
 0x4e1   : > { %v1301_v42 = vadd.f32 %v1300_v51, %v1296_v41 }
 0x4e3   : > { %v1302_v43 = vpack.c.bf16 %v1301_v42, %v1301_v42 }
 0x4e5   : > { %4526 = vmatmul.mubr.msk.bf16.vlgmr.msra.gmra.mrb[8].mxu1 %vm652_vm3, %v1302_v43 }
 0x4e6   : > { %4545 = vmatprep.mubr.msk.bf16.mxu1 %vm5236_vm0, %v5235_v0  ;;  %4542 = vmatpush3.bf16.msra.mxu1 %v4810_v63 }
 0x4e7   : > { %4543 = vmatprep.subr.bf16.mxu1 %v5235_v0 }
 0x4ea   : > { %4544 = vmatpush3.bf16.msra.mxu1 %v4812_v5 }
 0x4eb   : > { %4549 = vmatprep.subr.bf16.mxu1 %v5235_v0 }
 0x5b8   : > { %v1362_v45 = vpop.f32.mrb[8].mxu1 }
 0x5b9   : > { %v1363_v46 = vadd.f32 %v4236_v56, %v1362_v45  ;;  %v4527_v7 = vpop.f32.mrb[9].mxu1 }
 0x5ba   : > { %v1365_v47 = vpop.f32.mrb[10].mxu1 }
 0x5bb   : > { %v1368_v48 = vmax.f32 %v1363_v46, 0.0  ;;  %v4528_v60 = vpop.f32.mrb[11].mxu1  ;;  %v1552_v46 = vrot.slane %v5866_v15, %v5620_v29 }
 0x5bd   : > { %v1369_v14 = vpack.c.bf16 %v1368_v48, %v1368_v48 }
 0x5bf   : > { %4538 = vmatmul.mubr.msk.bf16.vlgmr.msra.gmra.mrb[12].mxu0 %vm1406_vm12, %v1369_v14 }
 0x5c0   : > { %4561 = vmatprep.mubr.msk.bf16.mxu0 %vm5236_vm0, %v5235_v0  ;;  %4558 = vmatpush3.bf16.msra.mxu0 %v4811_v1 }
 0x5c1   : > { %4559 = vmatprep.subr.bf16.mxu0 %v5235_v0 }
 0x5c4   : > { %4560 = vmatpush3.bf16.msra.mxu0 %v4813_v6 }
 0x5c5   : > { %4573 = vmatprep.subr.bf16.mxu0 %v5235_v0 }
 0x692   : > { %v1444_v17 = vpop.f32.mrb[12].mxu0 }
 0x693   : > { %v1445_v22 = vadd.f32 %v1444_v17, %v1381_v20  ;;  %v4539_v3 = vpop.f32.mrb[13].mxu0 }
 0x694   : > { %v1447_v52 = vpop.f32.mrb[14].mxu0 }
 0x695   : > { %v4540_v31 = vpop.f32.mrb[15].mxu0  ;;  %v1450_v54 = vadd.f32 %v1445_v22, %v1301_v42 }
 0x697   : > { %v1451_v9 = vsel %vm652_vm3, %v1450_v54, 0.0 }
 0x698   : > { %1452 = vadd.xlane.f32.xlu1 %v1451_v9 }
 0x725   : > { %v1453_v55 = vpop.xlane.xlu1 %1452 }
 0x726   : > { %v1454_v57 = vmul.f32 0.03125, %v1453_v55 }
 0x728   : > { %v1455_v58 = vsub.f32 %v1450_v54, %v1454_v57 }
 0x72a   : > { %v1456_v59 = vmul.f32 %v1455_v58, %v1455_v58 }
 0x72c   : > { %v1457_v62 = vsel %vm652_vm3, %v1456_v59, 0.0 }
 0x72d   : > { %1458 = vadd.xlane.f32.xlu1 %v1457_v62 }
 0x7ba   : > { %v1459_v8 = vpop.xlane.xlu1 %1458 }
 0x7bb   : > { %v1460_v10 = vmul.f32 0.03125, %v1459_v8 }
 0x7bd   : > { %v1461_v11 = vadd.f32 1e-05, %v1460_v10 }
 0x7bf   : > { %4888 = vrsqrt.f32 %v1461_v11 }
 0x7c9   : > { %v4889_v18 = vpop.eup %4888 }
 0x7ca   : > { %v1463_v61 = vmul.f32 %v4889_v18, %v1455_v58 }
 0x7cc   : > { %v1468_v19 = vmul.f32 %v1467_v13, %v1463_v61 }
 0x7ce   : > { %v5840_v24 = vadd.f32 %v4245_v2, %v1468_v19 }
 0x7d0   : > { %v1479_v23 = vpack.c.bf16 %v5840_v24, %v5840_v24 }
 0x7d2   : > { %4546 = vmatmul.mubr.msk.bf16.vlgmr.msra.gmra.mrb[12].mxu1 %vm652_vm3, %v1479_v23  ;;  %4562 = vmatmul.mubr.msk.bf16.vlgmr.msra.gmra.mrb[16].mxu0 %vm652_vm3, %v1479_v23 }
 0x7d3   : > { %4550 = vmatpush3.bf16.msra.mxu1 %v4814_v25  ;;  %4553 = vmatprep.mubr.msk.bf16.mxu1 %vm5236_vm0, %v5235_v0 }
 0x7d4   : > { %4551 = vmatprep.subr.bf16.mxu1 %v5235_v0  ;;  %4577 = vmatprep.mubr.msk.bf16.mxu0 %vm5236_vm0, %v5235_v0 }
 0x7d7   : > { %4552 = vmatpush3.bf16.msra.mxu1 %v4815_v30 }
 0x7d8   : > { %4565 = vmatprep.subr.bf16.mxu1 %v5235_v0 }
 0x7da   : > { %4554 = vmatmul.mubr.msk.bf16.vlgmr.msra.gmra.mrb[16].mxu1 %vm652_vm3, %v1479_v23 }
 0x7db   : > { %4569 = vmatprep.mubr.msk.bf16.mxu1 %vm5236_vm0, %v5235_v0  ;;  %4566 = vmatpush3.bf16.msra.mxu1 %v4816_v26 }
 0x7dc   : > { %4567 = vmatprep.subr.bf16.mxu1 %v5235_v0 }
 0x7df   : > { %4568 = vmatpush3.bf16.msra.mxu1 %v4817_v27 }
 0x7e0   : > { %4581 = vmatprep.subr.bf16.mxu1 %v5235_v0 }
 0x8a5   : > { %v1538_v33 = vpop.f32.mrb[12].mxu1  ;;  %v5870_v34 = vpop.f32.mrb[16].mxu0 }
 0x8a6   : > { %v1539_v36 = vadd.f32 %v1538_v33, %v1488_v32  ;;  %v4547_v39 = vpop.f32.mrb[13].mxu1  ;;  %v4563_v49 = vpop.f32.mrb[17].mxu0 }
 0x8a7   : > { %v1541_v40 = vpop.f32.mrb[14].mxu1  ;;  %v1663_v51 = vpop.f32.mrb[18].mxu0 }
 0x8a8   : > { %v1667_v41 = vcombine.high %v1539_v36, %v1539_v36  ;;  %v1674_v42 = vrot.slane %v1539_v36, %v5632_v35  ;;  %v4548_v43 = vpop.f32.mrb[15].mxu1  ;;  %v4564_v53 = vpop.f32.mrb[19].mxu0 }
 0x8aa   : > { %v1681_v44 = vrot.slane %v1667_v41, %v5632_v35  ;;  %v1682_v56 = vcombine.high %v1674_v42, %v1674_v42  ;;  %v1690_v45 = vrot.slane %v1674_v42, %v5632_v35 }
 0x8ac   : > { %v1683_v7 = vcombine.high %v1681_v44, %v1681_v44  ;;  %v1697_v47 = vrot.slane %v1681_v44, %v5632_v35  ;;  %v1704_v48 = vrot.slane %v1682_v56, %v5632_v35  ;;  %v1712_v20 = vcombine.high %v1690_v45, %v1690_v45 }
 0x8ad   : > { %v1599_v60 = vpop.f32.mrb[16].mxu1  ;;  %v1741_v55 = vrot.slane %v1690_v45, %v5617_v28 }
 0x8ae   : > { %v1711_v14 = vrot.slane %v1683_v7, %v5632_v35  ;;  %v1714_v17 = vcombine.high %v1704_v48, %v1704_v48  ;;  %v4555_v22 = vpop.f32.mrb[17].mxu1  ;;  %v1600_v3 = vadd.f32 %v1599_v60, %v1552_v46  ;;  %v1713_v31 = vcombine.high %v1697_v47, %v1697_v47 }
 0x8af   : > { %v1602_v52 = vpop.f32.mrb[18].mxu1  ;;  %v1745_v57 = vrot.slane %v1704_v48, %v5617_v28  ;;  %v1749_v62 = vrot.slane %v1712_v20, %v5617_v28  ;;  %v1757_v1 = vrot.slane %v1697_v47, %v5617_v28 }
 0x8b0   : > { %v1715_v54 = vcombine.high %v1711_v14, %v1711_v14  ;;  %v4556_v9 = vpop.f32.mrb[19].mxu1  ;;  %v1717_v58 = vcombine.high %v1600_v3, %v1600_v3  ;;  %v1724_v59 = vrot.slane %v1600_v3, %v5635_v38  ;;  %v1753_v63 = vrot.slane %v1714_v17, %v5617_v28 }
 0x8b1   : > { %v1761_v11 = vrot.slane %v1711_v14, %v5617_v28  ;;  %v1765_v13 = vrot.slane %v1713_v31, %v5617_v28 }
 0x8b2   : > { %v1731_v5 = vrot.slane %v1717_v58, %v5635_v38  ;;  %v1732_v6 = vcombine.high %v1724_v59, %v1724_v59  ;;  %v5887_v8 = vmul.f32 %v1741_v55, %v1724_v59  ;;  %v5889_v10 = vmul.f32 %v1745_v57, %v1724_v59 }
 0x8b3   : > { %v1769_v18 = vrot.slane %v1715_v54, %v5617_v28 }
 0x8b4   : > { %v1733_v61 = vcombine.high %v1731_v5, %v1731_v5  ;;  %v5894_v2 = vmul.f32 %v1749_v62, %v1732_v6  ;;  %v5896_v19 = vmul.f32 %v1753_v63, %v1732_v6  ;;  %v5898_v25 = vmul.f32 %v1757_v1, %v1731_v5 }
 0x8b5   : > { %v5900_v23 = vmul.f32 %v1761_v11, %v1731_v5  ;;  %v1786_v30 = vsel %vm936_vm4, %v5887_v8, -inf  ;;  %v1793_v26 = vsel %vm936_vm4, %v5889_v10, -inf }
 0x8b6   : > { %v5906_v27 = vmul.f32 %v1765_v13, %v1733_v61  ;;  %v5908_v32 = vmul.f32 %v1769_v18, %v1733_v61  ;;  %v1787_v33 = vrot.slane %v1786_v30, 4  ;;  %v1794_v36 = vrot.slane %v1793_v26, 4 }
 0x8b7   : > { %v1800_v39 = vsel %vm936_vm4, %v5894_v2, -inf  ;;  %v1807_v49 = vsel %vm936_vm4, %v5896_v19, -inf  ;;  %v1814_v40 = vsel %vm936_vm4, %v5898_v25, -inf  ;;  %v1821_v51 = vsel %vm936_vm4, %v5900_v23, -inf }
 0x8b8   : > { %v1788_v41 = vmax.f32 %v1786_v30, %v1787_v33  ;;  %v1795_v42 = vmax.f32 %v1793_v26, %v1794_v36  ;;  %v1801_v43 = vrot.slane %v1800_v39, 4  ;;  %v1808_v53 = vrot.slane %v1807_v49, 4 }
 0x8b9   : > { %v1815_v44 = vrot.slane %v1814_v40, 4  ;;  %v1822_v56 = vrot.slane %v1821_v51, 4  ;;  %v1828_v45 = vsel %vm936_vm4, %v5906_v27, -inf  ;;  %v1835_v46 = vsel %vm936_vm4, %v5908_v32, -inf }
 0x8ba   : > { %v1789_v7 = vrot.slane %v1788_v41, 2  ;;  %v1796_v47 = vrot.slane %v1795_v42, 2  ;;  %v1802_v48 = vmax.f32 %v1800_v39, %v1801_v43  ;;  %v1809_v60 = vmax.f32 %v1807_v49, %v1808_v53 }
 0x8bb   : > { %v1816_v14 = vmax.f32 %v1814_v40, %v1815_v44  ;;  %v1823_v20 = vmax.f32 %v1821_v51, %v1822_v56  ;;  %v1829_v17 = vrot.slane %v1828_v45, 4  ;;  %v1836_v22 = vrot.slane %v1835_v46, 4 }
 0x8bc   : > { %v1790_v3 = vmax.f32 %v1788_v41, %v1789_v7  ;;  %v1797_v52 = vmax.f32 %v1795_v42, %v1796_v47  ;;  %v1803_v31 = vrot.slane %v1802_v48, 2  ;;  %v1810_v54 = vrot.slane %v1809_v60, 2 }
 0x8bd   : > { %v1817_v9 = vrot.slane %v1816_v14, 2  ;;  %v1824_v55 = vrot.slane %v1823_v20, 2  ;;  %v1830_v57 = vmax.f32 %v1828_v45, %v1829_v17  ;;  %v1837_v58 = vmax.f32 %v1835_v46, %v1836_v22 }
 0x8be   : > { %v1791_v59 = vrot.slane %v1790_v3, 1  ;;  %v1798_v62 = vrot.slane %v1797_v52, 1  ;;  %v1804_v63 = vmax.f32 %v1802_v48, %v1803_v31  ;;  %v1811_v1 = vmax.f32 %v1809_v60, %v1810_v54 }
 0x8bf   : > { %v1818_v5 = vmax.f32 %v1816_v14, %v1817_v9  ;;  %v1825_v6 = vmax.f32 %v1823_v20, %v1824_v55  ;;  %v1831_v11 = vrot.slane %v1830_v57, 2  ;;  %v1838_v13 = vrot.slane %v1837_v58, 2 }
 0x8c0   : > { %v1792_v18 = vmax.f32 %v1790_v3, %v1791_v59  ;;  %v1799_v61 = vmax.f32 %v1797_v52, %v1798_v62  ;;  %v1805_v30 = vrot.slane %v1804_v63, 1  ;;  %v1812_v26 = vrot.slane %v1811_v1, 1 }
 0x8c1   : > { %v1819_v33 = vrot.slane %v1818_v5, 1  ;;  %v1826_v36 = vrot.slane %v1825_v6, 1  ;;  %v1832_v39 = vmax.f32 %v1830_v57, %v1831_v11  ;;  %v1839_v49 = vmax.f32 %v1837_v58, %v1838_v13 }
 0x8c2   : > { %v1806_v40 = vmax.f32 %v1804_v63, %v1805_v30  ;;  %v1813_v51 = vmax.f32 %v1811_v1, %v1812_v26  ;;  %v1842_v41 = vsub.f32 %v5887_v8, %v1792_v18  ;;  %v1843_v42 = vsub.f32 %v5889_v10, %v1799_v61 }
 0x8c3   : > { %v1820_v43 = vmax.f32 %v1818_v5, %v1819_v33  ;;  %v1827_v53 = vmax.f32 %v1825_v6, %v1826_v36  ;;  %v1833_v44 = vrot.slane %v1832_v39, 1  ;;  %v1840_v56 = vrot.slane %v1839_v49, 1 }
 0x8c4   : > { %v1844_v45 = vsub.f32 %v5894_v2, %v1806_v40  ;;  %v1845_v46 = vsub.f32 %v5896_v19, %v1813_v51  ;;  %v1850_v7 = vmul.f32 1.442695, %v1842_v41  ;;  %v1852_v47 = vmul.f32 1.442695, %v1843_v42 }
 0x8c5   : > { %v1834_v48 = vmax.f32 %v1832_v39, %v1833_v44  ;;  %v1841_v60 = vmax.f32 %v1839_v49, %v1840_v56  ;;  %v1846_v14 = vsub.f32 %v5898_v25, %v1820_v43  ;;  %v1847_v20 = vsub.f32 %v5900_v23, %v1827_v53 }
 0x8c6   : > { %4890 = vpow2.f32 %v1850_v7  ;;  %v1854_v8 = vmul.f32 1.442695, %v1844_v45  ;;  %v1856_v17 = vmul.f32 1.442695, %v1845_v46  ;;  %v1613_v5 = vrot.slane %v5866_v15, %v5702_v50 }
 0x8c7   : > { %v1848_v10 = vsub.f32 %v5906_v27, %v1834_v48  ;;  %v1849_v22 = vsub.f32 %v5908_v32, %v1841_v60  ;;  %4892 = vpow2.f32 %v1852_v47  ;;  %v1858_v3 = vmul.f32 1.442695, %v1846_v14 }
 0x8c8   : > { %4894 = vpow2.f32 %v1854_v8  ;;  %v1860_v2 = vmul.f32 1.442695, %v1847_v20 }
 0x8c9   : > { %4896 = vpow2.f32 %v1856_v17  ;;  %v1862_v19 = vmul.f32 1.442695, %v1848_v10  ;;  %v1864_v52 = vmul.f32 1.442695, %v1849_v22 }
 0x8ca   : > { %4898 = vpow2.f32 %v1858_v3 }
 0x8cb   : > { %4900 = vpow2.f32 %v1860_v2 }
 0x8cc   : > { %4902 = vpow2.f32 %v1862_v19 }
 0x8cd   : > { %4904 = vpow2.f32 %v1864_v52 }
 0x8d0   : > { %v5930_v25 = vpop.eup %4890 }
 0x8d1   : > { %v5932_v23 = vpop.eup %4892  ;;  %v1866_v27 = vsel %vm936_vm4, %v5930_v25, 0.0 }
 0x8d2   : > { %v5936_v31 = vpop.eup %4894  ;;  %v1867_v32 = vrot.slane %v1866_v27, 4  ;;  %v1873_v54 = vsel %vm936_vm4, %v5932_v23, 0.0 }
 0x8d3   : > { %v5940_v9 = vpop.eup %4896  ;;  %v1874_v55 = vrot.slane %v1873_v54, 4  ;;  %v1880_v57 = vsel %vm936_vm4, %v5936_v31, 0.0 }
 0x8d4   : > { %v5944_v58 = vpop.eup %4898  ;;  %v1868_v59 = vadd.f32 %v1867_v32, %v1866_v27  ;;  %v1881_v62 = vrot.slane %v1880_v57, 4  ;;  %v1887_v63 = vsel %vm936_vm4, %v5940_v9, 0.0 }
 0x8d5   : > { %v5948_v1 = vpop.eup %4900  ;;  %v1875_v6 = vadd.f32 %v1874_v55, %v1873_v54  ;;  %v1888_v11 = vrot.slane %v1887_v63, 4  ;;  %v1894_v13 = vsel %vm936_vm4, %v5944_v58, 0.0 }
 0x8d6   : > { %v5954_v18 = vpop.eup %4902  ;;  %v1869_v61 = vrot.slane %v1868_v59, 2  ;;  %v1882_v30 = vadd.f32 %v1881_v62, %v1880_v57  ;;  %v1895_v26 = vrot.slane %v1894_v13, 4  ;;  %v1901_v33 = vsel %vm936_vm4, %v5948_v1, 0.0 }
 0x8d7   : > { %v5958_v36 = vpop.eup %4904  ;;  %v1876_v39 = vrot.slane %v1875_v6, 2  ;;  %v1889_v49 = vadd.f32 %v1888_v11, %v1887_v63  ;;  %v1902_v40 = vrot.slane %v1901_v33, 4  ;;  %v1908_v51 = vsel %vm936_vm4, %v5954_v18, 0.0 }
 0x8d8   : > { %v1870_v41 = vadd.f32 %v1869_v61, %v1868_v59  ;;  %v1883_v42 = vrot.slane %v1882_v30, 2  ;;  %v1896_v43 = vadd.f32 %v1895_v26, %v1894_v13  ;;  %v1909_v53 = vrot.slane %v1908_v51, 4 }
 0x8d9   : > { %v1877_v44 = vadd.f32 %v1876_v39, %v1875_v6  ;;  %v1890_v56 = vrot.slane %v1889_v49, 2  ;;  %v1903_v45 = vadd.f32 %v1902_v40, %v1901_v33  ;;  %v1915_v46 = vsel %vm936_vm4, %v5958_v36, 0.0 }
 0x8da   : > { %v1871_v7 = vrot.slane %v1870_v41, 1  ;;  %v1884_v47 = vadd.f32 %v1883_v42, %v1882_v30  ;;  %v1897_v48 = vrot.slane %v1896_v43, 2  ;;  %v1910_v60 = vadd.f32 %v1909_v53, %v1908_v51 }
 0x8db   : > { %v1878_v14 = vrot.slane %v1877_v44, 1  ;;  %v1891_v20 = vadd.f32 %v1890_v56, %v1889_v49  ;;  %v1904_v8 = vrot.slane %v1903_v45, 2  ;;  %v1916_v17 = vrot.slane %v1915_v46, 4 }
 0x8dc   : > { %v1872_v10 = vadd.f32 %v1871_v7, %v1870_v41  ;;  %v1885_v22 = vrot.slane %v1884_v47, 1  ;;  %v1898_v3 = vadd.f32 %v1897_v48, %v1896_v43  ;;  %v1911_v2 = vrot.slane %v1910_v60, 2 }
 0x8dd   : > { %v1879_v19 = vadd.f32 %v1878_v14, %v1877_v44  ;;  %v1892_v52 = vrot.slane %v1891_v20, 1  ;;  %v1905_v27 = vadd.f32 %v1904_v8, %v1903_v45  ;;  %v1917_v32 = vadd.f32 %v1916_v17, %v1915_v46 }
 0x8de   : > { %v1886_v54 = vadd.f32 %v1885_v22, %v1884_v47  ;;  %v1899_v55 = vrot.slane %v1898_v3, 1  ;;  %v1912_v57 = vadd.f32 %v1911_v2, %v1910_v60  ;;  %4906 = vrcp.f32 %v1872_v10 }
 0x8df   : > { %v1893_v59 = vadd.f32 %v1892_v52, %v1891_v20  ;;  %v1906_v62 = vrot.slane %v1905_v27, 1  ;;  %v1918_v63 = vrot.slane %v1917_v32, 2  ;;  %4908 = vrcp.f32 %v1879_v19 }
 0x8e0   : > { %v1900_v6 = vadd.f32 %v1899_v55, %v1898_v3  ;;  %v1913_v11 = vrot.slane %v1912_v57, 1  ;;  %4910 = vrcp.f32 %v1886_v54  ;;  %v1661_v13 = vadd.f32 %v5870_v34, %v1613_v5 }
 0x8e1   : > { %v1907_v61 = vadd.f32 %v1906_v62, %v1905_v27  ;;  %v1919_v30 = vadd.f32 %v1918_v63, %v1917_v32  ;;  %4912 = vrcp.f32 %v1893_v59 }
 0x8e2   : > { %v1914_v26 = vadd.f32 %v1913_v11, %v1912_v57  ;;  %4914 = vrcp.f32 %v1900_v6  ;;  %v1939_v39 = vcombine.high %v1661_v13, %v1661_v13  ;;  %v1946_v40 = vrot.slane %v1661_v13, %v5635_v38 }
 0x8e3   : > { %v1920_v33 = vrot.slane %v1919_v30, 1  ;;  %4916 = vrcp.f32 %v1907_v61 }
 0x8e4   : > { %4918 = vrcp.f32 %v1914_v26  ;;  %v1953_v42 = vrot.slane %v1939_v39, %v5635_v38  ;;  %v1954_v44 = vcombine.high %v1946_v40, %v1946_v40 }
 0x8e5   : > { %v1921_v49 = vadd.f32 %v1920_v33, %v1919_v30 }
 0x8e6   : > { %v1955_v60 = vcombine.high %v1953_v42, %v1953_v42 }
 0x8e7   : > { %4920 = vrcp.f32 %v1921_v49 }
 0x8e8   : > { %v4907_v51 = vpop.eup %4906 }
 0x8e9   : > { %v4909_v41 = vpop.eup %4908  ;;  %v1930_v43 = vmul.f32 %v4907_v51, %v5930_v25 }
 0x8ea   : > { %v4911_v34 = vpop.eup %4910  ;;  %v1931_v5 = vmul.f32 %v4909_v41, %v5932_v23 }
 0x8eb   : > { %v4913_v53 = vpop.eup %4912  ;;  %v1932_v56 = vmul.f32 %v4911_v34, %v5936_v31  ;;  %v1960_v45 = vmul.f32 %v1946_v40, %v1930_v43 }
 0x8ec   : > { %v4915_v46 = vpop.eup %4914  ;;  %v1933_v7 = vmul.f32 %v4913_v53, %v5940_v9  ;;  %v1961_v47 = vmul.f32 %v1946_v40, %v1931_v5 }
 0x8ed   : > { %v4917_v48 = vpop.eup %4916  ;;  %v1934_v14 = vmul.f32 %v4915_v46, %v5944_v58  ;;  %v1962_v20 = vmul.f32 %v1954_v44, %v1932_v56  ;;  %v1968_v8 = vsel %vm936_vm4, %v1960_v45, 0.0 }
 0x8ee   : > { %v4919_v25 = vpop.eup %4918  ;;  %v1935_v17 = vmul.f32 %v4917_v48, %v5948_v1  ;;  %v1963_v23 = vmul.f32 %v1954_v44, %v1933_v7  ;;  %v1969_v10 = vrot.slane %v1968_v8, 4  ;;  %v1975_v22 = vsel %vm936_vm4, %v1961_v47, 0.0 }
 0x8ef   : > { %v1936_v31 = vmul.f32 %v4919_v25, %v5954_v18  ;;  %v1964_v3 = vmul.f32 %v1953_v42, %v1934_v14  ;;  %v1976_v2 = vrot.slane %v1975_v22, 4  ;;  %v1982_v9 = vsel %vm936_vm4, %v1962_v20, 0.0 }
 0x8f0   : > { %v1965_v19 = vmul.f32 %v1953_v42, %v1935_v17  ;;  %v1970_v52 = vadd.f32 %v1969_v10, %v1968_v8  ;;  %v1983_v27 = vrot.slane %v1982_v9, 4  ;;  %v1989_v58 = vsel %vm936_vm4, %v1963_v23, 0.0 }
 0x8f1   : > { %v4921_v32 = vpop.eup %4920  ;;  %v1977_v54 = vadd.f32 %v1976_v2, %v1975_v22  ;;  %v1990_v55 = vrot.slane %v1989_v58, 4  ;;  %v1996_v1 = vsel %vm936_vm4, %v1964_v3, 0.0  ;;  %v1966_v57 = vmul.f32 %v1955_v60, %v1936_v31 }
 0x8f2   : > { %v1937_v59 = vmul.f32 %v4921_v32, %v5958_v36  ;;  %v1971_v62 = vrot.slane %v1970_v52, 2  ;;  %v1984_v63 = vadd.f32 %v1983_v27, %v1982_v9  ;;  %v1997_v18 = vrot.slane %v1996_v1, 4 }
 0x8f3   : > { %v1978_v6 = vrot.slane %v1977_v54, 2  ;;  %v1991_v11 = vadd.f32 %v1990_v55, %v1989_v58  ;;  %v2003_v13 = vsel %vm936_vm4, %v1965_v19, 0.0  ;;  %v2010_v61 = vsel %vm936_vm4, %v1966_v57, 0.0 }
 0x8f4   : > { %v1972_v30 = vadd.f32 %v1971_v62, %v1970_v52  ;;  %v1985_v26 = vrot.slane %v1984_v63, 2  ;;  %v1998_v33 = vadd.f32 %v1997_v18, %v1996_v1  ;;  %v2004_v39 = vrot.slane %v2003_v13, 4 }
 0x8f5   : > { %v1979_v49 = vadd.f32 %v1978_v6, %v1977_v54  ;;  %v1992_v40 = vrot.slane %v1991_v11, 2  ;;  %v1967_v51 = vmul.f32 %v1955_v60, %v1937_v59  ;;  %v2011_v41 = vrot.slane %v2010_v61, 4 }
 0x8f6   : > { %v1973_v42 = vrot.slane %v1972_v30, 1  ;;  %v1986_v43 = vadd.f32 %v1985_v26, %v1984_v63  ;;  %v1999_v36 = vrot.slane %v1998_v33, 2  ;;  %v2005_v34 = vadd.f32 %v2004_v39, %v2003_v13 }
 0x8f7   : > { %v1980_v5 = vrot.slane %v1979_v49, 1  ;;  %v1993_v53 = vadd.f32 %v1992_v40, %v1991_v11  ;;  %v2012_v44 = vadd.f32 %v2011_v41, %v2010_v61  ;;  %v2017_v56 = vsel %vm936_vm4, %v1967_v51, 0.0 }
 0x8f8   : > { %v1974_v45 = vadd.f32 %v1973_v42, %v1972_v30  ;;  %v1987_v46 = vrot.slane %v1986_v43, 1  ;;  %v2000_v7 = vadd.f32 %v1999_v36, %v1998_v33  ;;  %v2006_v47 = vrot.slane %v2005_v34, 2 }
 0x8f9   : > { %v1981_v48 = vadd.f32 %v1980_v5, %v1979_v49  ;;  %v1994_v14 = vrot.slane %v1993_v53, 1  ;;  %v2013_v20 = vrot.slane %v2012_v44, 2  ;;  %v2018_v8 = vrot.slane %v2017_v56, 4 }
 0x8fa   : > { %v2024_v25 = vpack.c.bf16 %v1974_v45, %v1974_v45  ;;  %v1988_v60 = vadd.f32 %v1987_v46, %v1986_v43  ;;  %v2001_v17 = vrot.slane %v2000_v7, 1  ;;  %v2007_v23 = vadd.f32 %v2006_v47, %v2005_v34 }
 0x8fb   : > { %v2025_v10 = vpack.c.bf16 %v1981_v48, %v1981_v48  ;;  %v1995_v22 = vadd.f32 %v1994_v14, %v1993_v53  ;;  %v2014_v31 = vadd.f32 %v2013_v20, %v2012_v44  ;;  %v2019_v3 = vadd.f32 %v2018_v8, %v2017_v56 }
 0x8fc   : > { %v2002_v2 = vadd.f32 %v2001_v17, %v2000_v7  ;;  %v2008_v9 = vrot.slane %v2007_v23, 1  ;;  %v2026_v19 = vpack.c.bf16 %v1988_v60, %v1988_v60  ;;  %v2049_v52 = vunpack.c.l.b16 %v2024_v25  ;;  %v4818_v60 = vld [vmem:[%s6616_s19 + $0x10] sm:$0xff]   ;;  %v4819_v17 = vld [vmem:[%s6616_s19 + $0x18] sm:$0xff]  }
 0x8fd   : > { %v2015_v27 = vrot.slane %v2014_v31, 1  ;;  %v2020_v58 = vrot.slane %v2019_v3, 2  ;;  %v2027_v32 = vpack.c.bf16 %v1995_v22, %v1995_v22  ;;  %v2050_v54 = vunpack.c.l.b16 %v2025_v10  ;;  %4574 = vmatpush3.bf16.msra.mxu0 %v4818_v60  ;;  %v4830_v60 = vld [vmem:[#allocation8 + $0x20] sm:$0xff]  }
 0x8fe   : > { %v2009_v55 = vadd.f32 %v2008_v9, %v2007_v23  ;;  %v2028_v1 = vpack.c.bf16 %v2002_v2, %v2002_v2  ;;  %v2051_v57 = vunpack.c.l.b16 %v2026_v19  ;;  %v2040_v5 = vrot.slane %v5866_v15, %v5762_v4  ;;  %4575 = vmatprep.subr.bf16.mxu0 %v5235_v0  ;;  %v4821_v23 = vld [vmem:[%s6617_s10 + $0x28] sm:$0xff]  }
 0x8ff   : > { %v2016_v59 = vadd.f32 %v2015_v27, %v2014_v31  ;;  %v2021_v62 = vadd.f32 %v2020_v58, %v2019_v3  ;;  %v2052_v63 = vunpack.c.l.b16 %v2027_v32  ;;  %v2057_v18 = vsel %vm1207_vm5, %v2050_v54, %v2049_v52  ;;  %v4822_v32 = vld [vmem:[%s6617_s10 + $0x30] sm:$0xff]   ;;  %v4823_v54 = vld [vmem:[%s6617_s10 + $0x38] sm:$0xff]  }
 0x900   : > { %v2029_v6 = vpack.c.bf16 %v2009_v55, %v2009_v55  ;;  %v2053_v11 = vunpack.c.l.b16 %v2028_v1  ;;  %v2058_v13 = vsel %vm1209_vm6, %v2051_v57, %v2057_v18  ;;  %v2137_v3 = vrot.slane %v5866_v15, %v5786_v21  ;;  %v4276_v55 = vld [vmem:[#allocation9 + $0x1] ss:$0 sm:$0xff] }
 0x901   : > { %v2022_v61 = vrot.slane %v2021_v62, 1  ;;  %v2030_v30 = vpack.c.bf16 %v2016_v59, %v2016_v59  ;;  %v2059_v26 = vsel %vm1211_vm7, %v2052_v63, %v2058_v13  ;;  %4576 = vmatpush3.bf16.msra.mxu0 %v4819_v17  ;;  %v2142_v19 = vrot.slane %v5866_v15, %v5789_v37  ;;  %v4831_v17 = vld [vmem:[#allocation8 + $0x28] sm:$0xff]  }
 0x902   : > { %v2054_v33 = vunpack.c.l.b16 %v2029_v6  ;;  %v2060_v39 = vsel %vm1213_vm8, %v2053_v11, %v2059_v26  ;;  %4593 = vmatprep.subr.bf16.mxu0 %v5235_v0  ;;  %v2225_v11 = vrot.slane %v5866_v15, %v5810_v16 }
 0x903   : > { %v2023_v49 = vadd.f32 %v2022_v61, %v2021_v62  ;;  %v2055_v40 = vunpack.c.l.b16 %v2030_v30 }
 0x904   : > { %v2061_v51 = vsel %vm1215_vm9, %v2054_v33, %v2060_v39 }
 0x905   : > { %v2031_v41 = vpack.c.bf16 %v2023_v49, %v2023_v49  ;;  %v2062_v42 = vsel %vm1217_vm10, %v2055_v40, %v2061_v51 }
 0x907   : > { %v2056_v43 = vunpack.c.l.b16 %v2031_v41 }
 0x909   : > { %v2063_v36 = vsel %vm1219_vm11, %v2056_v43, %v2062_v42 }
 0x90a   : > { %v2064_v34 = vpack.c.b16 %v2063_v36, %v2063_v36  ;;  %v4824_v36 = vld [vmem:[%s6537_s4 + $0x20] sm:$0xff]  }
 0x90c   : > { %4570 = vmatmul.mubr.msk.bf16.vlgmr.msra.gmra.mrb[20].mxu1 %vm652_vm3, %v2064_v34  ;;  %v4825_v34 = vld [vmem:[%s6613_s18 + $0x20] sm:$0xff]  }
 0x90d   : > { %4589 = vmatprep.mubr.msk.bf16.mxu1 %vm5236_vm0, %v5235_v0 }
 0x9df   : > { %v2114_v53 = vpop.f32.mrb[20].mxu1 }
 0x9e0   : > { %v2115_v44 = vadd.f32 %v2114_v53, %v2040_v5  ;;  %v4571_v56 = vpop.f32.mrb[21].mxu1  ;;  %v4826_v5 = vld [vmem:[%s6537_s4 + $0x28] sm:$0xff]  }
 0x9e1   : > { %v2117_v45 = vpop.f32.mrb[22].mxu1  ;;  %v4827_v53 = vld [vmem:[%s6613_s18 + $0x28] sm:$0xff]  }
 0x9e2   : > { %v4572_v46 = vpop.f32.mrb[23].mxu1  ;;  %v2120_v7 = vadd.f32 %v2115_v44, %v5840_v24  ;;  %v4820_v24 = vld [vmem:[%s6617_s10 + $0x20] sm:$0xff]  }
 0x9e3   : > { %4582 = vmatpush3.bf16.msra.mxu1 %v4820_v24  ;;  %v2310_v46 = vrot.slane %v5866_v15, %v5833_v12  ;;  %v4829_v15 = vld [vmem:[%s6538_s5 + $0x28] sm:$0xff]   ;;  %v6083_v24 = vld [vmem:[%s6615_s9 + $0x20] sm:$0xff] }
 0x9e4   : > { %v2121_v47 = vsel %vm652_vm3, %v2120_v7, 0.0  ;;  %4583 = vmatprep.subr.bf16.mxu1 %v5235_v0 }
 0x9e5   : > { %2122 = vadd.xlane.f32.xlu0 %v2121_v47 }
 0x9e7   : > { %4584 = vmatpush3.bf16.msra.mxu1 %v4821_v23  ;;  %v2331_v23 = vrot.slane %v6083_v24, %v5617_v28 }
 0x9e8   : > { %4585 = vmatprep.subr.bf16.mxu1 %v5235_v0 }
 0x9eb   : > { %4586 = vmatpush3.bf16.msra.mxu1 %v4822_v32 }
 0x9ec   : > { %4587 = vmatprep.subr.bf16.mxu1 %v5235_v0 }
 0x9ef   : > { %4588 = vmatpush3.bf16.msra.mxu1 %v4823_v54 }
 0x9f0   : > { %4609 = vmatprep.subr.bf16.mxu1 %v5235_v0 }
 0xa72   : > { %v2123_v48 = vpop.xlane.xlu0 %2122 }
 0xa73   : > { %v2124_v14 = vmul.f32 0.03125, %v2123_v48  ;;  %v4293_v48 = vld [vmem:[%s6615_s9 + $0x18] ss:$0 sm:$0xff] }
 0xa75   : > { %v2125_v20 = vsub.f32 %v2120_v7, %v2124_v14 }
 0xa77   : > { %v2126_v8 = vmul.f32 %v2125_v20, %v2125_v20 }
 0xa79   : > { %v2127_v25 = vsel %vm652_vm3, %v2126_v8, 0.0  ;;  %v4828_v8 = vld [vmem:[%s6538_s5 + $0x20] sm:$0xff]  }
 0xa7a   : > { %2128 = vadd.xlane.f32.xlu1 %v2127_v25 }
 0xb07   : > { %v2129_v10 = vpop.xlane.xlu1 %2128 }
 0xb08   : > { %v2130_v22 = vmul.f32 0.03125, %v2129_v10 }
 0xb0a   : > { %v2131_v31 = vadd.f32 1e-05, %v2130_v22 }
 0xb0c   : > { %4922 = vrsqrt.f32 %v2131_v31 }
 0xb16   : > { %v4923_v2 = vpop.eup %4922 }
 0xb17   : > { %v2133_v9 = vmul.f32 %v4923_v2, %v2125_v20 }
 0xb19   : > { %v2138_v52 = vmul.f32 %v2137_v3, %v2133_v9 }
 0xb1b   : > { %v2143_v27 = vadd.f32 %v2142_v19, %v2138_v52 }
 0xb1d   : > { %v2144_v58 = vpack.c.bf16 %v2143_v27, %v2143_v27 }
 0xb1f   : > { %4578 = vmatmul.mubr.msk.bf16.vlgmr.msra.gmra.mrb[20].mxu0 %vm652_vm3, %v2144_v58 }
 0xb20   : > { %4597 = vmatprep.mubr.msk.bf16.mxu0 %vm5236_vm0, %v5235_v0  ;;  %4594 = vmatpush3.bf16.msra.mxu0 %v4824_v36 }
 0xb21   : > { %4595 = vmatprep.subr.bf16.mxu0 %v5235_v0 }
 0xb24   : > { %4596 = vmatpush3.bf16.msra.mxu0 %v4826_v5 }
 0xb25   : > { %4601 = vmatprep.subr.bf16.mxu0 %v5235_v0 }
 0xbf2   : > { %v2205_v1 = vpop.f32.mrb[20].mxu0 }
 0xbf3   : > { %v2206_v57 = vadd.f32 %v4276_v55, %v2205_v1  ;;  %v4579_v59 = vpop.f32.mrb[21].mxu0 }
 0xbf4   : > { %v2208_v62 = vpop.f32.mrb[22].mxu0 }
 0xbf5   : > { %v2211_v63 = vmax.f32 %v2206_v57, 0.0  ;;  %v4580_v18 = vpop.f32.mrb[23].mxu0  ;;  %v2395_v57 = vrot.slane %v6083_v24, %v5620_v29 }
 0xbf7   : > { %v2212_v6 = vpack.c.bf16 %v2211_v63, %v2211_v63 }
 0xbf9   : > { %4590 = vmatmul.mubr.msk.bf16.vlgmr.msra.gmra.mrb[24].mxu1 %vm1406_vm12, %v2212_v6 }
 0xbfa   : > { %4613 = vmatprep.mubr.msk.bf16.mxu1 %vm5236_vm0, %v5235_v0  ;;  %4610 = vmatpush3.bf16.msra.mxu1 %v4825_v34 }
 0xbfb   : > { %4611 = vmatprep.subr.bf16.mxu1 %v5235_v0 }
 0xbfe   : > { %4612 = vmatpush3.bf16.msra.mxu1 %v4827_v53 }
 0xbff   : > { %4625 = vmatprep.subr.bf16.mxu1 %v5235_v0 }
 0xccc   : > { %v2287_v13 = vpop.f32.mrb[24].mxu1 }
 0xccd   : > { %v2288_v61 = vadd.f32 %v2287_v13, %v2225_v11  ;;  %v4591_v30 = vpop.f32.mrb[25].mxu1 }
 0xcce   : > { %v2290_v26 = vpop.f32.mrb[26].mxu1 }
 0xccf   : > { %v4592_v33 = vpop.f32.mrb[27].mxu1  ;;  %v2293_v39 = vadd.f32 %v2288_v61, %v2143_v27 }
 0xcd1   : > { %v2294_v49 = vsel %vm652_vm3, %v2293_v39, 0.0 }
 0xcd2   : > { %2295 = vadd.xlane.f32.xlu0 %v2294_v49 }
 0xd5f   : > { %v2296_v40 = vpop.xlane.xlu0 %2295 }
 0xd60   : > { %v2297_v51 = vmul.f32 0.03125, %v2296_v40 }
 0xd62   : > { %v2298_v41 = vsub.f32 %v2293_v39, %v2297_v51 }
 0xd64   : > { %v2299_v42 = vmul.f32 %v2298_v41, %v2298_v41 }
 0xd66   : > { %v2300_v43 = vsel %vm652_vm3, %v2299_v42, 0.0 }
 0xd67   : > { %2301 = vadd.xlane.f32.xlu1 %v2300_v43 }
 0xdf4   : > { %v2302_v44 = vpop.xlane.xlu1 %2301 }
 0xdf5   : > { %v2303_v56 = vmul.f32 0.03125, %v2302_v44 }
 0xdf7   : > { %v2304_v45 = vadd.f32 1e-05, %v2303_v56 }
 0xdf9   : > { %4924 = vrsqrt.f32 %v2304_v45 }
 0xe03   : > { %v4925_v7 = vpop.eup %4924 }
 0xe04   : > { %v2306_v47 = vmul.f32 %v4925_v7, %v2298_v41 }
 0xe06   : > { %v2311_v14 = vmul.f32 %v2310_v46, %v2306_v47 }
 0xe08   : > { %v6057_v20 = vadd.f32 %v4293_v48, %v2311_v14 }
 0xe0a   : > { %v2322_v25 = vpack.c.bf16 %v6057_v20, %v6057_v20 }
 0xe0c   : > { %4598 = vmatmul.mubr.msk.bf16.vlgmr.msra.gmra.mrb[24].mxu0 %vm652_vm3, %v2322_v25  ;;  %4614 = vmatmul.mubr.msk.bf16.vlgmr.msra.gmra.mrb[28].mxu1 %vm652_vm3, %v2322_v25 }
 0xe0d   : > { %4602 = vmatpush3.bf16.msra.mxu0 %v4828_v8  ;;  %4605 = vmatprep.mubr.msk.bf16.mxu0 %vm5236_vm0, %v5235_v0 }
 0xe0e   : > { %4603 = vmatprep.subr.bf16.mxu0 %v5235_v0  ;;  %4629 = vmatprep.mubr.msk.bf16.mxu1 %vm5236_vm0, %v5235_v0 }
 0xe11   : > { %4604 = vmatpush3.bf16.msra.mxu0 %v4829_v15 }
 0xe12   : > { %4617 = vmatprep.subr.bf16.mxu0 %v5235_v0 }
 0xe14   : > { %4606 = vmatmul.mubr.msk.bf16.vlgmr.msra.gmra.mrb[28].mxu0 %vm652_vm3, %v2322_v25 }
 0xe15   : > { %4621 = vmatprep.mubr.msk.bf16.mxu0 %vm5236_vm0, %v5235_v0  ;;  %4618 = vmatpush3.bf16.msra.mxu0 %v4830_v60 }
 0xe16   : > { %4619 = vmatprep.subr.bf16.mxu0 %v5235_v0 }
 0xe19   : > { %4620 = vmatpush3.bf16.msra.mxu0 %v4831_v17 }
 0xe1a   : > { %4633 = vmatprep.subr.bf16.mxu0 %v5235_v0 }
 0xedf   : > { %v2381_v10 = vpop.f32.mrb[24].mxu0  ;;  %v6087_v22 = vpop.f32.mrb[28].mxu1 }
 0xee0   : > { %v2382_v31 = vadd.f32 %v2381_v10, %v2331_v23  ;;  %v4599_v3 = vpop.f32.mrb[25].mxu0  ;;  %v4615_v2 = vpop.f32.mrb[29].mxu1 }
 0xee1   : > { %v2384_v9 = vpop.f32.mrb[26].mxu0  ;;  %v2506_v19 = vpop.f32.mrb[30].mxu1 }
 0xee2   : > { %v2510_v52 = vcombine.high %v2382_v31, %v2382_v31  ;;  %v2517_v27 = vrot.slane %v2382_v31, %v5632_v35  ;;  %v4600_v58 = vpop.f32.mrb[27].mxu0  ;;  %v4616_v32 = vpop.f32.mrb[31].mxu1 }
 0xee4   : > { %v2524_v54 = vrot.slane %v2510_v52, %v5632_v35  ;;  %v2525_v55 = vcombine.high %v2517_v27, %v2517_v27  ;;  %v2533_v1 = vrot.slane %v2517_v27, %v5632_v35 }
 0xee6   : > { %v2526_v59 = vcombine.high %v2524_v54, %v2524_v54  ;;  %v2540_v62 = vrot.slane %v2524_v54, %v5632_v35  ;;  %v2547_v63 = vrot.slane %v2525_v55, %v5632_v35  ;;  %v2555_v11 = vcombine.high %v2533_v1, %v2533_v1 }
 0xee7   : > { %v2442_v18 = vpop.f32.mrb[28].mxu0  ;;  %v2584_v40 = vrot.slane %v2533_v1, %v5617_v28 }
 0xee8   : > { %v2554_v6 = vrot.slane %v2526_v59, %v5632_v35  ;;  %v2557_v13 = vcombine.high %v2547_v63, %v2547_v63  ;;  %v4607_v61 = vpop.f32.mrb[29].mxu0  ;;  %v2443_v30 = vadd.f32 %v2442_v18, %v2395_v57  ;;  %v2556_v33 = vcombine.high %v2540_v62, %v2540_v62 }
 0xee9   : > { %v2445_v26 = vpop.f32.mrb[30].mxu0  ;;  %v2588_v51 = vrot.slane %v2547_v63, %v5617_v28  ;;  %v2592_v43 = vrot.slane %v2555_v11, %v5617_v28  ;;  %v2600_v34 = vrot.slane %v2540_v62, %v5617_v28 }
 0xeea   : > { %v2558_v39 = vcombine.high %v2554_v6, %v2554_v6  ;;  %v4608_v49 = vpop.f32.mrb[31].mxu0  ;;  %v2560_v41 = vcombine.high %v2443_v30, %v2443_v30  ;;  %v2567_v42 = vrot.slane %v2443_v30, %v5635_v38  ;;  %v2596_v36 = vrot.slane %v2557_v13, %v5617_v28 }
 0xeeb   : > { %v2604_v45 = vrot.slane %v2554_v6, %v5617_v28  ;;  %v2608_v46 = vrot.slane %v2556_v33, %v5617_v28 }
 0xeec   : > { %v2574_v5 = vrot.slane %v2560_v41, %v5635_v38  ;;  %v2575_v53 = vcombine.high %v2567_v42, %v2567_v42  ;;  %v6104_v44 = vmul.f32 %v2584_v40, %v2567_v42  ;;  %v6106_v56 = vmul.f32 %v2588_v51, %v2567_v42 }
 0xeed   : > { %v2612_v7 = vrot.slane %v2558_v39, %v5617_v28 }
 0xeee   : > { %v2576_v47 = vcombine.high %v2574_v5, %v2574_v5  ;;  %v6111_v48 = vmul.f32 %v2592_v43, %v2575_v53  ;;  %v6113_v14 = vmul.f32 %v2596_v36, %v2575_v53  ;;  %v6115_v8 = vmul.f32 %v2600_v34, %v2574_v5 }
 0xeef   : > { %v6117_v25 = vmul.f32 %v2604_v45, %v2574_v5  ;;  %v2629_v15 = vsel %vm936_vm4, %v6104_v44, -inf  ;;  %v2636_v60 = vsel %vm936_vm4, %v6106_v56, -inf }
 0xef0   : > { %v6123_v17 = vmul.f32 %v2608_v46, %v2576_v47  ;;  %v6125_v23 = vmul.f32 %v2612_v7, %v2576_v47  ;;  %v2630_v10 = vrot.slane %v2629_v15, 4  ;;  %v2637_v31 = vrot.slane %v2636_v60, 4 }
 0xef1   : > { %v2643_v3 = vsel %vm936_vm4, %v6111_v48, -inf  ;;  %v2650_v2 = vsel %vm936_vm4, %v6113_v14, -inf  ;;  %v2657_v9 = vsel %vm936_vm4, %v6115_v8, -inf  ;;  %v2664_v19 = vsel %vm936_vm4, %v6117_v25, -inf }
 0xef2   : > { %v2631_v52 = vmax.f32 %v2629_v15, %v2630_v10  ;;  %v2638_v27 = vmax.f32 %v2636_v60, %v2637_v31  ;;  %v2644_v58 = vrot.slane %v2643_v3, 4  ;;  %v2651_v32 = vrot.slane %v2650_v2, 4 }
 0xef3   : > { %v2658_v54 = vrot.slane %v2657_v9, 4  ;;  %v2665_v55 = vrot.slane %v2664_v19, 4  ;;  %v2671_v1 = vsel %vm936_vm4, %v6123_v17, -inf  ;;  %v2678_v57 = vsel %vm936_vm4, %v6125_v23, -inf }
 0xef4   : > { %v2632_v59 = vrot.slane %v2631_v52, 2  ;;  %v2639_v62 = vrot.slane %v2638_v27, 2  ;;  %v2645_v63 = vmax.f32 %v2643_v3, %v2644_v58  ;;  %v2652_v18 = vmax.f32 %v2650_v2, %v2651_v32 }
 0xef5   : > { %v2659_v6 = vmax.f32 %v2657_v9, %v2658_v54  ;;  %v2666_v11 = vmax.f32 %v2664_v19, %v2665_v55  ;;  %v2672_v13 = vrot.slane %v2671_v1, 4  ;;  %v2679_v61 = vrot.slane %v2678_v57, 4 }
 0xef6   : > { %v2633_v30 = vmax.f32 %v2631_v52, %v2632_v59  ;;  %v2640_v26 = vmax.f32 %v2638_v27, %v2639_v62  ;;  %v2646_v33 = vrot.slane %v2645_v63, 2  ;;  %v2653_v39 = vrot.slane %v2652_v18, 2 }
 0xef7   : > { %v2660_v49 = vrot.slane %v2659_v6, 2  ;;  %v2667_v40 = vrot.slane %v2666_v11, 2  ;;  %v2673_v51 = vmax.f32 %v2671_v1, %v2672_v13  ;;  %v2680_v41 = vmax.f32 %v2678_v57, %v2679_v61 }
 0xef8   : > { %v2634_v42 = vrot.slane %v2633_v30, 1  ;;  %v2641_v43 = vrot.slane %v2640_v26, 1  ;;  %v2647_v36 = vmax.f32 %v2645_v63, %v2646_v33  ;;  %v2654_v34 = vmax.f32 %v2652_v18, %v2653_v39 }
 0xef9   : > { %v2661_v5 = vmax.f32 %v2659_v6, %v2660_v49  ;;  %v2668_v53 = vmax.f32 %v2666_v11, %v2667_v40  ;;  %v2674_v45 = vrot.slane %v2673_v51, 2  ;;  %v2681_v46 = vrot.slane %v2680_v41, 2 }
 0xefa   : > { %v2635_v7 = vmax.f32 %v2633_v30, %v2634_v42  ;;  %v2642_v47 = vmax.f32 %v2640_v26, %v2641_v43  ;;  %v2648_v15 = vrot.slane %v2647_v36, 1  ;;  %v2655_v60 = vrot.slane %v2654_v34, 1 }
 0xefb   : > { %v2662_v10 = vrot.slane %v2661_v5, 1  ;;  %v2669_v31 = vrot.slane %v2668_v53, 1  ;;  %v2675_v3 = vmax.f32 %v2673_v51, %v2674_v45  ;;  %v2682_v2 = vmax.f32 %v2680_v41, %v2681_v46 }
 0xefc   : > { %v2649_v9 = vmax.f32 %v2647_v36, %v2648_v15  ;;  %v2656_v19 = vmax.f32 %v2654_v34, %v2655_v60  ;;  %v2685_v52 = vsub.f32 %v6104_v44, %v2635_v7  ;;  %v2686_v27 = vsub.f32 %v6106_v56, %v2642_v47 }
 0xefd   : > { %v2663_v58 = vmax.f32 %v2661_v5, %v2662_v10  ;;  %v2670_v32 = vmax.f32 %v2668_v53, %v2669_v31  ;;  %v2676_v54 = vrot.slane %v2675_v3, 1  ;;  %v2683_v55 = vrot.slane %v2682_v2, 1 }
 0xefe   : > { %v2687_v1 = vsub.f32 %v6111_v48, %v2649_v9  ;;  %v2688_v57 = vsub.f32 %v6113_v14, %v2656_v19  ;;  %v2693_v59 = vmul.f32 1.442695, %v2685_v52  ;;  %v2695_v62 = vmul.f32 1.442695, %v2686_v27 }
 0xeff   : > { %v2677_v63 = vmax.f32 %v2675_v3, %v2676_v54  ;;  %v2684_v18 = vmax.f32 %v2682_v2, %v2683_v55  ;;  %v2689_v6 = vsub.f32 %v6115_v8, %v2663_v58  ;;  %v2690_v11 = vsub.f32 %v6117_v25, %v2670_v32 }
 0xf00   : > { %4926 = vpow2.f32 %v2693_v59  ;;  %v2697_v44 = vmul.f32 1.442695, %v2687_v1  ;;  %v2699_v13 = vmul.f32 1.442695, %v2688_v57  ;;  %v2456_v5 = vrot.slane %v6083_v24, %v5702_v50 }
 0xf01   : > { %v2691_v56 = vsub.f32 %v6123_v17, %v2677_v63  ;;  %v2692_v61 = vsub.f32 %v6125_v23, %v2684_v18  ;;  %4928 = vpow2.f32 %v2695_v62  ;;  %v2701_v30 = vmul.f32 1.442695, %v2689_v6 }
 0xf02   : > { %4930 = vpow2.f32 %v2697_v44  ;;  %v2703_v48 = vmul.f32 1.442695, %v2690_v11 }
 0xf03   : > { %4932 = vpow2.f32 %v2699_v13  ;;  %v2705_v14 = vmul.f32 1.442695, %v2691_v56  ;;  %v2707_v26 = vmul.f32 1.442695, %v2692_v61 }
 0xf04   : > { %4934 = vpow2.f32 %v2701_v30 }
 0xf05   : > { %4936 = vpow2.f32 %v2703_v48 }
 0xf06   : > { %4938 = vpow2.f32 %v2705_v14 }
 0xf07   : > { %4940 = vpow2.f32 %v2707_v26 }
 0xf0a   : > { %v6147_v8 = vpop.eup %4926 }
 0xf0b   : > { %v6149_v25 = vpop.eup %4928  ;;  %v2709_v17 = vsel %vm936_vm4, %v6147_v8, 0.0 }
 0xf0c   : > { %v6153_v33 = vpop.eup %4930  ;;  %v2710_v23 = vrot.slane %v2709_v17, 4  ;;  %v2716_v39 = vsel %vm936_vm4, %v6149_v25, 0.0 }
 0xf0d   : > { %v6157_v49 = vpop.eup %4932  ;;  %v2717_v40 = vrot.slane %v2716_v39, 4  ;;  %v2723_v51 = vsel %vm936_vm4, %v6153_v33, 0.0 }
 0xf0e   : > { %v6161_v41 = vpop.eup %4934  ;;  %v2711_v42 = vadd.f32 %v2710_v23, %v2709_v17  ;;  %v2724_v43 = vrot.slane %v2723_v51, 4  ;;  %v2730_v36 = vsel %vm936_vm4, %v6157_v49, 0.0 }
 0xf0f   : > { %v6165_v34 = vpop.eup %4936  ;;  %v2718_v53 = vadd.f32 %v2717_v40, %v2716_v39  ;;  %v2731_v45 = vrot.slane %v2730_v36, 4  ;;  %v2737_v46 = vsel %vm936_vm4, %v6161_v41, 0.0 }
 0xf10   : > { %v6171_v7 = vpop.eup %4938  ;;  %v2712_v47 = vrot.slane %v2711_v42, 2  ;;  %v2725_v15 = vadd.f32 %v2724_v43, %v2723_v51  ;;  %v2738_v60 = vrot.slane %v2737_v46, 4  ;;  %v2744_v10 = vsel %vm936_vm4, %v6165_v34, 0.0 }
 0xf11   : > { %v6175_v31 = vpop.eup %4940  ;;  %v2719_v3 = vrot.slane %v2718_v53, 2  ;;  %v2732_v2 = vadd.f32 %v2731_v45, %v2730_v36  ;;  %v2745_v9 = vrot.slane %v2744_v10, 4  ;;  %v2751_v19 = vsel %vm936_vm4, %v6171_v7, 0.0 }
 0xf12   : > { %v2713_v52 = vadd.f32 %v2712_v47, %v2711_v42  ;;  %v2726_v27 = vrot.slane %v2725_v15, 2  ;;  %v2739_v58 = vadd.f32 %v2738_v60, %v2737_v46  ;;  %v2752_v32 = vrot.slane %v2751_v19, 4 }
 0xf13   : > { %v2720_v54 = vadd.f32 %v2719_v3, %v2718_v53  ;;  %v2733_v55 = vrot.slane %v2732_v2, 2  ;;  %v2746_v1 = vadd.f32 %v2745_v9, %v2744_v10  ;;  %v2758_v57 = vsel %vm936_vm4, %v6175_v31, 0.0 }
 0xf14   : > { %v2714_v59 = vrot.slane %v2713_v52, 1  ;;  %v2727_v62 = vadd.f32 %v2726_v27, %v2725_v15  ;;  %v2740_v63 = vrot.slane %v2739_v58, 2  ;;  %v2753_v18 = vadd.f32 %v2752_v32, %v2751_v19 }
 0xf15   : > { %v2721_v6 = vrot.slane %v2720_v54, 1  ;;  %v2734_v11 = vadd.f32 %v2733_v55, %v2732_v2  ;;  %v2747_v44 = vrot.slane %v2746_v1, 2  ;;  %v2759_v13 = vrot.slane %v2758_v57, 4 }
 0xf16   : > { %v2715_v56 = vadd.f32 %v2714_v59, %v2713_v52  ;;  %v2728_v61 = vrot.slane %v2727_v62, 1  ;;  %v2741_v30 = vadd.f32 %v2740_v63, %v2739_v58  ;;  %v2754_v48 = vrot.slane %v2753_v18, 2 }
 0xf17   : > { %v2722_v14 = vadd.f32 %v2721_v6, %v2720_v54  ;;  %v2735_v26 = vrot.slane %v2734_v11, 1  ;;  %v2748_v17 = vadd.f32 %v2747_v44, %v2746_v1  ;;  %v2760_v23 = vadd.f32 %v2759_v13, %v2758_v57 }
 0xf18   : > { %v2729_v39 = vadd.f32 %v2728_v61, %v2727_v62  ;;  %v2742_v40 = vrot.slane %v2741_v30, 1  ;;  %v2755_v51 = vadd.f32 %v2754_v48, %v2753_v18  ;;  %4942 = vrcp.f32 %v2715_v56 }
 0xf19   : > { %v2736_v42 = vadd.f32 %v2735_v26, %v2734_v11  ;;  %v2749_v43 = vrot.slane %v2748_v17, 1  ;;  %v2761_v36 = vrot.slane %v2760_v23, 2  ;;  %4944 = vrcp.f32 %v2722_v14 }
 0xf1a   : > { %v2743_v53 = vadd.f32 %v2742_v40, %v2741_v30  ;;  %v2756_v45 = vrot.slane %v2755_v51, 1  ;;  %4946 = vrcp.f32 %v2729_v39  ;;  %v2504_v46 = vadd.f32 %v6087_v22, %v2456_v5 }
 0xf1b   : > { %v2750_v47 = vadd.f32 %v2749_v43, %v2748_v17  ;;  %v2762_v15 = vadd.f32 %v2761_v36, %v2760_v23  ;;  %4948 = vrcp.f32 %v2736_v42 }
 0xf1c   : > { %v2757_v60 = vadd.f32 %v2756_v45, %v2755_v51  ;;  %4950 = vrcp.f32 %v2743_v53  ;;  %v2782_v3 = vcombine.high %v2504_v46, %v2504_v46  ;;  %v2789_v9 = vrot.slane %v2504_v46, %v5635_v38 }
 0xf1d   : > { %v2763_v10 = vrot.slane %v2762_v15, 1  ;;  %4952 = vrcp.f32 %v2750_v47 }
 0xf1e   : > { %4954 = vrcp.f32 %v2757_v60  ;;  %v2796_v27 = vrot.slane %v2782_v3, %v5635_v38  ;;  %v2797_v54 = vcombine.high %v2789_v9, %v2789_v9 }
 0xf1f   : > { %v2764_v2 = vadd.f32 %v2763_v10, %v2762_v15 }
 0xf20   : > { %v2798_v18 = vcombine.high %v2796_v27, %v2796_v27 }
 0xf21   : > { %4956 = vrcp.f32 %v2764_v2 }
 0xf22   : > { %v4943_v19 = vpop.eup %4942 }
 0xf23   : > { %v4945_v52 = vpop.eup %4944  ;;  %v2773_v58 = vmul.f32 %v4943_v19, %v6147_v8 }
 0xf24   : > { %v4947_v22 = vpop.eup %4946  ;;  %v2774_v5 = vmul.f32 %v4945_v52, %v6149_v25 }
 0xf25   : > { %v4949_v32 = vpop.eup %4948  ;;  %v2775_v55 = vmul.f32 %v4947_v22, %v6153_v33  ;;  %v2803_v1 = vmul.f32 %v2789_v9, %v2773_v58 }
 0xf26   : > { %v4951_v57 = vpop.eup %4950  ;;  %v2776_v59 = vmul.f32 %v4949_v32, %v6157_v49  ;;  %v2804_v62 = vmul.f32 %v2789_v9, %v2774_v5 }
 0xf27   : > { %v4953_v63 = vpop.eup %4952  ;;  %v2777_v6 = vmul.f32 %v4951_v57, %v6161_v41  ;;  %v2805_v11 = vmul.f32 %v2797_v54, %v2775_v55  ;;  %v2811_v44 = vsel %vm936_vm4, %v2803_v1, 0.0 }
 0xf28   : > { %v4955_v8 = vpop.eup %4954  ;;  %v2778_v13 = vmul.f32 %v4953_v63, %v6165_v34  ;;  %v2806_v25 = vmul.f32 %v2797_v54, %v2776_v59  ;;  %v2812_v56 = vrot.slane %v2811_v44, 4  ;;  %v2818_v61 = vsel %vm936_vm4, %v2804_v62, 0.0 }
 0xf29   : > { %v2779_v33 = vmul.f32 %v4955_v8, %v6171_v7  ;;  %v2807_v30 = vmul.f32 %v2796_v27, %v2777_v6  ;;  %v2819_v48 = vrot.slane %v2818_v61, 4  ;;  %v2825_v49 = vsel %vm936_vm4, %v2805_v11, 0.0 }
 0xf2a   : > { %v2808_v14 = vmul.f32 %v2796_v27, %v2778_v13  ;;  %v2813_v26 = vadd.f32 %v2812_v56, %v2811_v44  ;;  %v2826_v17 = vrot.slane %v2825_v49, 4  ;;  %v2832_v41 = vsel %vm936_vm4, %v2806_v25, 0.0 }
 0xf2b   : > { %v4957_v23 = vpop.eup %4956  ;;  %v2820_v39 = vadd.f32 %v2819_v48, %v2818_v61  ;;  %v2833_v40 = vrot.slane %v2832_v41, 4  ;;  %v2839_v34 = vsel %vm936_vm4, %v2807_v30, 0.0  ;;  %v2809_v51 = vmul.f32 %v2798_v18, %v2779_v33 }
 0xf2c   : > { %v2780_v42 = vmul.f32 %v4957_v23, %v6175_v31  ;;  %v2814_v43 = vrot.slane %v2813_v26, 2  ;;  %v2827_v36 = vadd.f32 %v2826_v17, %v2825_v49  ;;  %v2840_v7 = vrot.slane %v2839_v34, 4 }
 0xf2d   : > { %v2821_v53 = vrot.slane %v2820_v39, 2  ;;  %v2834_v45 = vadd.f32 %v2833_v40, %v2832_v41  ;;  %v2846_v46 = vsel %vm936_vm4, %v2808_v14, 0.0  ;;  %v2853_v47 = vsel %vm936_vm4, %v2809_v51, 0.0 }
 0xf2e   : > { %v2815_v15 = vadd.f32 %v2814_v43, %v2813_v26  ;;  %v2828_v60 = vrot.slane %v2827_v36, 2  ;;  %v2841_v10 = vadd.f32 %v2840_v7, %v2839_v34  ;;  %v2847_v3 = vrot.slane %v2846_v46, 4 }
 0xf2f   : > { %v2822_v2 = vadd.f32 %v2821_v53, %v2820_v39  ;;  %v2835_v9 = vrot.slane %v2834_v45, 2  ;;  %v2810_v19 = vmul.f32 %v2798_v18, %v2780_v42  ;;  %v2854_v52 = vrot.slane %v2853_v47, 4 }
 0xf30   : > { %v2816_v27 = vrot.slane %v2815_v15, 1  ;;  %v2829_v58 = vadd.f32 %v2828_v60, %v2827_v36  ;;  %v2842_v31 = vrot.slane %v2841_v10, 2  ;;  %v2848_v22 = vadd.f32 %v2847_v3, %v2846_v46 }
 0xf31   : > { %v2823_v5 = vrot.slane %v2822_v2, 1  ;;  %v2836_v32 = vadd.f32 %v2835_v9, %v2834_v45  ;;  %v2855_v54 = vadd.f32 %v2854_v52, %v2853_v47  ;;  %v2860_v55 = vsel %vm936_vm4, %v2810_v19, 0.0 }
 0xf32   : > { %v2817_v1 = vadd.f32 %v2816_v27, %v2815_v15  ;;  %v2830_v57 = vrot.slane %v2829_v58, 1  ;;  %v2843_v59 = vadd.f32 %v2842_v31, %v2841_v10  ;;  %v2849_v62 = vrot.slane %v2848_v22, 2 }
 0xf33   : > { %v2824_v63 = vadd.f32 %v2823_v5, %v2822_v2  ;;  %v2837_v6 = vrot.slane %v2836_v32, 1  ;;  %v2856_v11 = vrot.slane %v2855_v54, 2  ;;  %v2861_v44 = vrot.slane %v2860_v55, 4 }
 0xf34   : > { %v2867_v8 = vpack.c.bf16 %v2817_v1, %v2817_v1  ;;  %v2831_v18 = vadd.f32 %v2830_v57, %v2829_v58  ;;  %v2844_v13 = vrot.slane %v2843_v59, 1  ;;  %v2850_v25 = vadd.f32 %v2849_v62, %v2848_v22 }
 0xf35   : > { %v2868_v56 = vpack.c.bf16 %v2824_v63, %v2824_v63  ;;  %v2838_v61 = vadd.f32 %v2837_v6, %v2836_v32  ;;  %v2857_v33 = vadd.f32 %v2856_v11, %v2855_v54  ;;  %v2862_v30 = vadd.f32 %v2861_v44, %v2860_v55 }
 0xf36   : > { %v2845_v48 = vadd.f32 %v2844_v13, %v2843_v59  ;;  %v2851_v49 = vrot.slane %v2850_v25, 1  ;;  %v2869_v14 = vpack.c.bf16 %v2831_v18, %v2831_v18  ;;  %v2892_v26 = vunpack.c.l.b16 %v2867_v8  ;;  %v4832_v18 = vld [vmem:[%s6616_s19 + $0x20] sm:$0xff]   ;;  %v4833_v13 = vld [vmem:[%s6616_s19 + $0x28] sm:$0xff]  }
 0xf37   : > { %v2858_v17 = vrot.slane %v2857_v33, 1  ;;  %v2863_v41 = vrot.slane %v2862_v30, 2  ;;  %v2870_v23 = vpack.c.bf16 %v2838_v61, %v2838_v61  ;;  %v2893_v39 = vunpack.c.l.b16 %v2868_v56  ;;  %4626 = vmatpush3.bf16.msra.mxu1 %v4832_v18  ;;  %v4844_v18 = vld [vmem:[#allocation8 + $0x30] sm:$0xff]  }
 0xf38   : > { %v2852_v40 = vadd.f32 %v2851_v49, %v2850_v25  ;;  %v2871_v34 = vpack.c.bf16 %v2845_v48, %v2845_v48  ;;  %v2894_v51 = vunpack.c.l.b16 %v2869_v14  ;;  %v2883_v5 = vrot.slane %v6083_v24, %v5762_v4  ;;  %4627 = vmatprep.subr.bf16.mxu1 %v5235_v0  ;;  %v4835_v25 = vld [vmem:[%s6617_s10 + $0x48] sm:$0xff]  }
 0xf39   : > { %v2859_v42 = vadd.f32 %v2858_v17, %v2857_v33  ;;  %v2864_v43 = vadd.f32 %v2863_v41, %v2862_v30  ;;  %v2895_v36 = vunpack.c.l.b16 %v2870_v23  ;;  %v2900_v7 = vsel %vm1207_vm5, %v2893_v39, %v2892_v26  ;;  %v4836_v23 = vld [vmem:[%s6617_s10 + $0x50] sm:$0xff]   ;;  %v4837_v39 = vld [vmem:[%s6617_s10 + $0x58] sm:$0xff]  }
 0xf3a   : > { %v2872_v53 = vpack.c.bf16 %v2852_v40, %v2852_v40  ;;  %v2896_v45 = vunpack.c.l.b16 %v2871_v34  ;;  %v2901_v46 = vsel %vm1209_vm6, %v2894_v51, %v2900_v7  ;;  %v2980_v30 = vrot.slane %v6083_v24, %v5786_v21  ;;  %v4324_v40 = vld [vmem:[#allocation9 + $0x2] ss:$0 sm:$0xff] }
 0xf3b   : > { %v2865_v47 = vrot.slane %v2864_v43, 1  ;;  %v2873_v15 = vpack.c.bf16 %v2859_v42, %v2859_v42  ;;  %v2902_v60 = vsel %vm1211_vm7, %v2895_v36, %v2901_v46  ;;  %4628 = vmatpush3.bf16.msra.mxu1 %v4833_v13  ;;  %v2985_v14 = vrot.slane %v6083_v24, %v5789_v37  ;;  %v4845_v13 = vld [vmem:[#allocation8 + $0x38] sm:$0xff]  }
 0xf3c   : > { %v2897_v10 = vunpack.c.l.b16 %v2872_v53  ;;  %v2903_v3 = vsel %vm1213_vm8, %v2896_v45, %v2902_v60  ;;  %4645 = vmatprep.subr.bf16.mxu1 %v5235_v0  ;;  %v3068_v45 = vrot.slane %v6083_v24, %v5810_v16 }
 0xf3d   : > { %v2866_v2 = vadd.f32 %v2865_v47, %v2864_v43  ;;  %v2898_v9 = vunpack.c.l.b16 %v2873_v15 }
 0xf3e   : > { %v2904_v19 = vsel %vm1215_vm9, %v2897_v10, %v2903_v3 }
 0xf3f   : > { %v2874_v52 = vpack.c.bf16 %v2866_v2, %v2866_v2  ;;  %v2905_v27 = vsel %vm1217_vm10, %v2898_v9, %v2904_v19 }
 0xf41   : > { %v2899_v58 = vunpack.c.l.b16 %v2874_v52 }
 0xf43   : > { %v2906_v31 = vsel %vm1219_vm11, %v2899_v58, %v2905_v27 }
 0xf44   : > { %v2907_v22 = vpack.c.b16 %v2906_v31, %v2906_v31  ;;  %v4838_v31 = vld [vmem:[%s6537_s4 + $0x30] sm:$0xff]  }
 0xf46   : > { %4622 = vmatmul.mubr.msk.bf16.vlgmr.msra.gmra.mrb[32].mxu0 %vm652_vm3, %v2907_v22  ;;  %v4839_v22 = vld [vmem:[%s6613_s18 + $0x30] sm:$0xff]  }
 0xf47   : > { %4641 = vmatprep.mubr.msk.bf16.mxu0 %vm5236_vm0, %v5235_v0 }
0x1019   : > { %v2957_v32 = vpop.f32.mrb[32].mxu0 }
0x101a   : > { %v2958_v54 = vadd.f32 %v2957_v32, %v2883_v5  ;;  %v4623_v55 = vpop.f32.mrb[33].mxu0  ;;  %v4840_v5 = vld [vmem:[%s6537_s4 + $0x38] sm:$0xff]  }
0x101b   : > { %v2960_v1 = vpop.f32.mrb[34].mxu0  ;;  %v4841_v32 = vld [vmem:[%s6613_s18 + $0x38] sm:$0xff]  }
0x101c   : > { %v4624_v57 = vpop.f32.mrb[35].mxu0  ;;  %v2963_v59 = vadd.f32 %v2958_v54, %v6057_v20  ;;  %v4834_v20 = vld [vmem:[%s6617_s10 + $0x40] sm:$0xff]  }
0x101d   : > { %4634 = vmatpush3.bf16.msra.mxu0 %v4834_v20  ;;  %v3153_v57 = vrot.slane %v6083_v24, %v5833_v12  ;;  %v4843_v24 = vld [vmem:[%s6538_s5 + $0x38] sm:$0xff]   ;;  %v6300_v20 = vld [vmem:[%s6615_s9 + $0x30] sm:$0xff] }
0x101e   : > { %v2964_v62 = vsel %vm652_vm3, %v2963_v59, 0.0  ;;  %4635 = vmatprep.subr.bf16.mxu0 %v5235_v0 }
0x101f   : > { %2965 = vadd.xlane.f32.xlu0 %v2964_v62 }
0x1021   : > { %4636 = vmatpush3.bf16.msra.mxu0 %v4835_v25  ;;  %v3174_v25 = vrot.slane %v6300_v20, %v5617_v28 }
0x1022   : > { %4637 = vmatprep.subr.bf16.mxu0 %v5235_v0 }
0x1025   : > { %4638 = vmatpush3.bf16.msra.mxu0 %v4836_v23 }
0x1026   : > { %4639 = vmatprep.subr.bf16.mxu0 %v5235_v0 }
0x1029   : > { %4640 = vmatpush3.bf16.msra.mxu0 %v4837_v39 }
0x102a   : > { %4661 = vmatprep.subr.bf16.mxu0 %v5235_v0 }
0x10ac   : > { %v2966_v63 = vpop.xlane.xlu0 %2965 }
0x10ad   : > { %v2967_v6 = vmul.f32 0.03125, %v2966_v63  ;;  %v4341_v63 = vld [vmem:[%s6615_s9 + $0x28] ss:$0 sm:$0xff] }
0x10af   : > { %v2968_v11 = vsub.f32 %v2963_v59, %v2967_v6 }
0x10b1   : > { %v2969_v44 = vmul.f32 %v2968_v11, %v2968_v11 }
0x10b3   : > { %v2970_v8 = vsel %vm652_vm3, %v2969_v44, 0.0  ;;  %v4842_v44 = vld [vmem:[%s6538_s5 + $0x30] sm:$0xff]  }
0x10b4   : > { %2971 = vadd.xlane.f32.xlu1 %v2970_v8 }
0x1141   : > { %v2972_v56 = vpop.xlane.xlu1 %2971 }
0x1142   : > { %v2973_v61 = vmul.f32 0.03125, %v2972_v56 }
0x1144   : > { %v2974_v33 = vadd.f32 1e-05, %v2973_v61 }
0x1146   : > { %4958 = vrsqrt.f32 %v2974_v33 }
0x1150   : > { %v4959_v48 = vpop.eup %4958 }
0x1151   : > { %v2976_v49 = vmul.f32 %v4959_v48, %v2968_v11 }
0x1153   : > { %v2981_v26 = vmul.f32 %v2980_v30, %v2976_v49 }
0x1155   : > { %v2986_v17 = vadd.f32 %v2985_v14, %v2981_v26 }
0x1157   : > { %v2987_v41 = vpack.c.bf16 %v2986_v17, %v2986_v17 }
0x1159   : > { %4630 = vmatmul.mubr.msk.bf16.vlgmr.msra.gmra.mrb[32].mxu1 %vm652_vm3, %v2987_v41 }
0x115a   : > { %4649 = vmatprep.mubr.msk.bf16.mxu1 %vm5236_vm0, %v5235_v0  ;;  %4646 = vmatpush3.bf16.msra.mxu1 %v4838_v31 }
0x115b   : > { %4647 = vmatprep.subr.bf16.mxu1 %v5235_v0 }
0x115e   : > { %4648 = vmatpush3.bf16.msra.mxu1 %v4840_v5 }
0x115f   : > { %4653 = vmatprep.subr.bf16.mxu1 %v5235_v0 }
0x122c   : > { %v3048_v34 = vpop.f32.mrb[32].mxu1 }
0x122d   : > { %v3049_v51 = vadd.f32 %v4324_v40, %v3048_v34  ;;  %v4631_v42 = vpop.f32.mrb[33].mxu1 }
0x122e   : > { %v3051_v43 = vpop.f32.mrb[34].mxu1 }
0x122f   : > { %v3054_v36 = vmax.f32 %v3049_v51, 0.0  ;;  %v4632_v7 = vpop.f32.mrb[35].mxu1  ;;  %v3238_v51 = vrot.slane %v6300_v20, %v5620_v29 }
0x1231   : > { %v3055_v53 = vpack.c.bf16 %v3054_v36, %v3054_v36 }
0x1233   : > { %4642 = vmatmul.mubr.msk.bf16.vlgmr.msra.gmra.mrb[36].mxu0 %vm1406_vm12, %v3055_v53 }
0x1234   : > { %4665 = vmatprep.mubr.msk.bf16.mxu0 %vm5236_vm0, %v5235_v0  ;;  %4662 = vmatpush3.bf16.msra.mxu0 %v4839_v22 }
0x1235   : > { %4663 = vmatprep.subr.bf16.mxu0 %v5235_v0 }
0x1238   : > { %4664 = vmatpush3.bf16.msra.mxu0 %v4841_v32 }
0x1239   : > { %4677 = vmatprep.subr.bf16.mxu0 %v5235_v0 }
0x1306   : > { %v3130_v46 = vpop.f32.mrb[36].mxu0 }
0x1307   : > { %v3131_v47 = vadd.f32 %v3130_v46, %v3068_v45  ;;  %v4643_v15 = vpop.f32.mrb[37].mxu0 }
0x1308   : > { %v3133_v60 = vpop.f32.mrb[38].mxu0 }
0x1309   : > { %v4644_v10 = vpop.f32.mrb[39].mxu0  ;;  %v3136_v3 = vadd.f32 %v3131_v47, %v2986_v17 }
0x130b   : > { %v3137_v2 = vsel %vm652_vm3, %v3136_v3, 0.0 }
0x130c   : > { %3138 = vadd.xlane.f32.xlu0 %v3137_v2 }
0x1399   : > { %v3139_v9 = vpop.xlane.xlu0 %3138 }
0x139a   : > { %v3140_v19 = vmul.f32 0.03125, %v3139_v9 }
0x139c   : > { %v3141_v52 = vsub.f32 %v3136_v3, %v3140_v19 }
0x139e   : > { %v3142_v27 = vmul.f32 %v3141_v52, %v3141_v52 }
0x13a0   : > { %v3143_v58 = vsel %vm652_vm3, %v3142_v27, 0.0 }
0x13a1   : > { %3144 = vadd.xlane.f32.xlu1 %v3143_v58 }
0x142e   : > { %v3145_v54 = vpop.xlane.xlu1 %3144 }
0x142f   : > { %v3146_v55 = vmul.f32 0.03125, %v3145_v54 }
0x1431   : > { %v3147_v1 = vadd.f32 1e-05, %v3146_v55 }
0x1433   : > { %4960 = vrsqrt.f32 %v3147_v1 }
0x143d   : > { %v4961_v59 = vpop.eup %4960 }
0x143e   : > { %v3149_v62 = vmul.f32 %v4961_v59, %v3141_v52 }
0x1440   : > { %v3154_v6 = vmul.f32 %v3153_v57, %v3149_v62 }
0x1442   : > { %v6274_v11 = vadd.f32 %v4341_v63, %v3154_v6 }
0x1444   : > { %v3165_v8 = vpack.c.bf16 %v6274_v11, %v6274_v11 }
0x1446   : > { %4650 = vmatmul.mubr.msk.bf16.vlgmr.msra.gmra.mrb[36].mxu1 %vm652_vm3, %v3165_v8  ;;  %4666 = vmatmul.mubr.msk.bf16.vlgmr.msra.gmra.mrb[40].mxu0 %vm652_vm3, %v3165_v8 }
0x1447   : > { %4654 = vmatpush3.bf16.msra.mxu1 %v4842_v44  ;;  %4657 = vmatprep.mubr.msk.bf16.mxu1 %vm5236_vm0, %v5235_v0 }
0x1448   : > { %4655 = vmatprep.subr.bf16.mxu1 %v5235_v0  ;;  %4681 = vmatprep.mubr.msk.bf16.mxu0 %vm5236_vm0, %v5235_v0 }
0x144b   : > { %4656 = vmatpush3.bf16.msra.mxu1 %v4843_v24 }
0x144c   : > { %4669 = vmatprep.subr.bf16.mxu1 %v5235_v0 }
0x144e   : > { %4658 = vmatmul.mubr.msk.bf16.vlgmr.msra.gmra.mrb[40].mxu1 %vm652_vm3, %v3165_v8 }
0x144f   : > { %4673 = vmatprep.mubr.msk.bf16.mxu1 %vm5236_vm0, %v5235_v0  ;;  %4670 = vmatpush3.bf16.msra.mxu1 %v4844_v18 }
0x1450   : > { %4671 = vmatprep.subr.bf16.mxu1 %v5235_v0 }
0x1453   : > { %4672 = vmatpush3.bf16.msra.mxu1 %v4845_v13 }
0x1454   : > { %4685 = vmatprep.subr.bf16.mxu1 %v5235_v0 }
0x1519   : > { %v3224_v56 = vpop.f32.mrb[36].mxu1  ;;  %v6304_v61 = vpop.f32.mrb[40].mxu0 }
0x151a   : > { %v3225_v33 = vadd.f32 %v3224_v56, %v3174_v25  ;;  %v4651_v30 = vpop.f32.mrb[37].mxu1  ;;  %v4667_v48 = vpop.f32.mrb[41].mxu0 }
0x151b   : > { %v3227_v49 = vpop.f32.mrb[38].mxu1  ;;  %v3349_v14 = vpop.f32.mrb[42].mxu0 }
0x151c   : > { %v3353_v26 = vcombine.high %v3225_v33, %v3225_v33  ;;  %v3360_v17 = vrot.slane %v3225_v33, %v5632_v35  ;;  %v4652_v41 = vpop.f32.mrb[39].mxu1  ;;  %v4668_v23 = vpop.f32.mrb[43].mxu0 }
0x151e   : > { %v3367_v39 = vrot.slane %v3353_v26, %v5632_v35  ;;  %v3368_v40 = vcombine.high %v3360_v17, %v3360_v17  ;;  %v3376_v34 = vrot.slane %v3360_v17, %v5632_v35 }
0x1520   : > { %v3369_v42 = vcombine.high %v3367_v39, %v3367_v39  ;;  %v3383_v43 = vrot.slane %v3367_v39, %v5632_v35  ;;  %v3390_v36 = vrot.slane %v3368_v40, %v5632_v35  ;;  %v3398_v45 = vcombine.high %v3376_v34, %v3376_v34 }
0x1521   : > { %v3285_v7 = vpop.f32.mrb[40].mxu1  ;;  %v3427_v9 = vrot.slane %v3376_v34, %v5617_v28 }
0x1522   : > { %v3397_v53 = vrot.slane %v3369_v42, %v5632_v35  ;;  %v3400_v46 = vcombine.high %v3390_v36, %v3390_v36  ;;  %v4659_v47 = vpop.f32.mrb[41].mxu1  ;;  %v3286_v15 = vadd.f32 %v3285_v7, %v3238_v51  ;;  %v3399_v10 = vcombine.high %v3383_v43, %v3383_v43 }
0x1523   : > { %v3288_v60 = vpop.f32.mrb[42].mxu1  ;;  %v3431_v29 = vrot.slane %v3390_v36, %v5617_v28  ;;  %v3435_v27 = vrot.slane %v3398_v45, %v5617_v28  ;;  %v3443_v35 = vrot.slane %v3383_v43, %v5617_v28 }
0x1524   : > { %v3401_v3 = vcombine.high %v3397_v53, %v3397_v53  ;;  %v4660_v2 = vpop.f32.mrb[43].mxu1  ;;  %v3403_v19 = vcombine.high %v3286_v15, %v3286_v15  ;;  %v3410_v52 = vrot.slane %v3286_v15, %v5635_v38  ;;  %v3439_v58 = vrot.slane %v3400_v46, %v5617_v28 }
0x1525   : > { %v3447_v54 = vrot.slane %v3397_v53, %v5617_v28  ;;  %v3451_v55 = vrot.slane %v3399_v10, %v5617_v28 }
0x1526   : > { %v3417_v31 = vrot.slane %v3403_v19, %v5635_v38  ;;  %v3418_v22 = vcombine.high %v3410_v52, %v3410_v52  ;;  %v6321_v5 = vmul.f32 %v3427_v9, %v3410_v52  ;;  %v6323_v32 = vmul.f32 %v3431_v29, %v3410_v52 }
0x1527   : > { %v3455_v1 = vrot.slane %v3401_v3, %v5617_v28 }
0x1528   : > { %v3419_v57 = vcombine.high %v3417_v31, %v3417_v31  ;;  %v6328_v59 = vmul.f32 %v3435_v27, %v3418_v22  ;;  %v6330_v62 = vmul.f32 %v3439_v58, %v3418_v22  ;;  %v6332_v63 = vmul.f32 %v3443_v35, %v3417_v31 }
0x1529   : > { %v6334_v6 = vmul.f32 %v3447_v54, %v3417_v31  ;;  %v3472_v44 = vsel %vm936_vm4, %v6321_v5, -inf  ;;  %v3479_v8 = vsel %vm936_vm4, %v6323_v32, -inf }
0x152a   : > { %v6340_v24 = vmul.f32 %v3451_v55, %v3419_v57  ;;  %v6342_v18 = vmul.f32 %v3455_v1, %v3419_v57  ;;  %v3473_v28 = vrot.slane %v3472_v44, 4  ;;  %v3480_v13 = vrot.slane %v3479_v8, 4 }
0x152b   : > { %v3486_v25 = vsel %vm936_vm4, %v6328_v59, -inf  ;;  %v3493_v56 = vsel %vm936_vm4, %v6330_v62, -inf  ;;  %v3500_v33 = vsel %vm936_vm4, %v6332_v63, -inf  ;;  %v3507_v30 = vsel %vm936_vm4, %v6334_v6, -inf }
0x152c   : > { %v3474_v48 = vmax.f32 %v3472_v44, %v3473_v28  ;;  %v3481_v49 = vmax.f32 %v3479_v8, %v3480_v13  ;;  %v3487_v14 = vrot.slane %v3486_v25, 4  ;;  %v3494_v26 = vrot.slane %v3493_v56, 4 }
0x152d   : > { %v3501_v17 = vrot.slane %v3500_v33, 4  ;;  %v3508_v41 = vrot.slane %v3507_v30, 4  ;;  %v3514_v23 = vsel %vm936_vm4, %v6340_v24, -inf  ;;  %v3521_v39 = vsel %vm936_vm4, %v6342_v18, -inf }
0x152e   : > { %v3475_v40 = vrot.slane %v3474_v48, 2  ;;  %v3482_v34 = vrot.slane %v3481_v49, 2  ;;  %v3488_v51 = vmax.f32 %v3486_v25, %v3487_v14  ;;  %v3495_v42 = vmax.f32 %v3493_v56, %v3494_v26 }
0x152f   : > { %v3502_v43 = vmax.f32 %v3500_v33, %v3501_v17  ;;  %v3509_v36 = vmax.f32 %v3507_v30, %v3508_v41  ;;  %v3515_v7 = vrot.slane %v3514_v23, 4  ;;  %v3522_v53 = vrot.slane %v3521_v39, 4 }
0x1530   : > { %v3476_v45 = vmax.f32 %v3474_v48, %v3475_v40  ;;  %v3483_v46 = vmax.f32 %v3481_v49, %v3482_v34  ;;  %v3489_v47 = vrot.slane %v3488_v51, 2  ;;  %v3496_v15 = vrot.slane %v3495_v42, 2 }
0x1531   : > { %v3503_v60 = vrot.slane %v3502_v43, 2  ;;  %v3510_v10 = vrot.slane %v3509_v36, 2  ;;  %v3516_v3 = vmax.f32 %v3514_v23, %v3515_v7  ;;  %v3523_v2 = vmax.f32 %v3521_v39, %v3522_v53 }
0x1532   : > { %v3477_v9 = vrot.slane %v3476_v45, 1  ;;  %v3484_v29 = vrot.slane %v3483_v46, 1  ;;  %v3490_v19 = vmax.f32 %v3488_v51, %v3489_v47  ;;  %v3497_v52 = vmax.f32 %v3495_v42, %v3496_v15 }
0x1533   : > { %v3504_v27 = vmax.f32 %v3502_v43, %v3503_v60  ;;  %v3511_v58 = vmax.f32 %v3509_v36, %v3510_v10  ;;  %v3517_v35 = vrot.slane %v3516_v3, 2  ;;  %v3524_v31 = vrot.slane %v3523_v2, 2 }
0x1534   : > { %v3478_v22 = vmax.f32 %v3476_v45, %v3477_v9  ;;  %v3485_v54 = vmax.f32 %v3483_v46, %v3484_v29  ;;  %v3491_v55 = vrot.slane %v3490_v19, 1  ;;  %v3498_v1 = vrot.slane %v3497_v52, 1 }
0x1535   : > { %v3505_v57 = vrot.slane %v3504_v27, 1  ;;  %v3512_v44 = vrot.slane %v3511_v58, 1  ;;  %v3518_v8 = vmax.f32 %v3516_v3, %v3517_v35  ;;  %v3525_v28 = vmax.f32 %v3523_v2, %v3524_v31 }
0x1536   : > { %v3492_v13 = vmax.f32 %v3490_v19, %v3491_v55  ;;  %v3499_v25 = vmax.f32 %v3497_v52, %v3498_v1  ;;  %v3528_v56 = vsub.f32 %v6321_v5, %v3478_v22  ;;  %v3529_v33 = vsub.f32 %v6323_v32, %v3485_v54 }
0x1537   : > { %v3506_v30 = vmax.f32 %v3504_v27, %v3505_v57  ;;  %v3513_v48 = vmax.f32 %v3511_v58, %v3512_v44  ;;  %v3519_v49 = vrot.slane %v3518_v8, 1  ;;  %v3526_v14 = vrot.slane %v3525_v28, 1 }
0x1538   : > { %v3530_v26 = vsub.f32 %v6328_v59, %v3492_v13  ;;  %v3531_v17 = vsub.f32 %v6330_v62, %v3499_v25  ;;  %v3536_v41 = vmul.f32 1.442695, %v3528_v56  ;;  %v3538_v23 = vmul.f32 1.442695, %v3529_v33 }
0x1539   : > { %v3520_v39 = vmax.f32 %v3518_v8, %v3519_v49  ;;  %v3527_v40 = vmax.f32 %v3525_v28, %v3526_v14  ;;  %v3532_v34 = vsub.f32 %v6332_v63, %v3506_v30  ;;  %v3533_v51 = vsub.f32 %v6334_v6, %v3513_v48 }
0x153a   : > { %4962 = vpow2.f32 %v3536_v41  ;;  %v3540_v5 = vmul.f32 1.442695, %v3530_v26  ;;  %v3542_v42 = vmul.f32 1.442695, %v3531_v17  ;;  %v3299_v29 = vrot.slane %v6300_v20, %v5702_v50 }
0x153b   : > { %v3534_v32 = vsub.f32 %v6340_v24, %v3520_v39  ;;  %v3535_v43 = vsub.f32 %v6342_v18, %v3527_v40  ;;  %4964 = vpow2.f32 %v3538_v23  ;;  %v3544_v36 = vmul.f32 1.442695, %v3532_v34 }
0x153c   : > { %4966 = vpow2.f32 %v3540_v5  ;;  %v3546_v59 = vmul.f32 1.442695, %v3533_v51 }
0x153d   : > { %4968 = vpow2.f32 %v3542_v42  ;;  %v3548_v62 = vmul.f32 1.442695, %v3534_v32  ;;  %v3550_v7 = vmul.f32 1.442695, %v3535_v43 }
0x153e   : > { %4970 = vpow2.f32 %v3544_v36 }
0x153f   : > { %4972 = vpow2.f32 %v3546_v59 }
0x1540   : > { %4974 = vpow2.f32 %v3548_v62 }
0x1541   : > { %4976 = vpow2.f32 %v3550_v7 }
0x1544   : > { %v6364_v63 = vpop.eup %4962 }
0x1545   : > { %v6366_v6 = vpop.eup %4964  ;;  %v3552_v24 = vsel %vm936_vm4, %v6364_v63, 0.0 }
0x1546   : > { %v6370_v53 = vpop.eup %4966  ;;  %v3553_v18 = vrot.slane %v3552_v24, 4  ;;  %v3559_v45 = vsel %vm936_vm4, %v6366_v6, 0.0 }
0x1547   : > { %v6374_v46 = vpop.eup %4968  ;;  %v3560_v47 = vrot.slane %v3559_v45, 4  ;;  %v3566_v15 = vsel %vm936_vm4, %v6370_v53, 0.0 }
0x1548   : > { %v6378_v60 = vpop.eup %4970  ;;  %v3554_v10 = vadd.f32 %v3553_v18, %v3552_v24  ;;  %v3567_v3 = vrot.slane %v3566_v15, 4  ;;  %v3573_v2 = vsel %vm936_vm4, %v6374_v46, 0.0 }
0x1549   : > { %v6382_v9 = vpop.eup %4972  ;;  %v3561_v19 = vadd.f32 %v3560_v47, %v3559_v45  ;;  %v3574_v52 = vrot.slane %v3573_v2, 4  ;;  %v3580_v27 = vsel %vm936_vm4, %v6378_v60, 0.0 }
0x154a   : > { %v6388_v58 = vpop.eup %4974  ;;  %v3555_v35 = vrot.slane %v3554_v10, 2  ;;  %v3568_v31 = vadd.f32 %v3567_v3, %v3566_v15  ;;  %v3581_v22 = vrot.slane %v3580_v27, 4  ;;  %v3587_v54 = vsel %vm936_vm4, %v6382_v9, 0.0 }
0x154b   : > { %v6392_v55 = vpop.eup %4976  ;;  %v3562_v1 = vrot.slane %v3561_v19, 2  ;;  %v3575_v57 = vadd.f32 %v3574_v52, %v3573_v2  ;;  %v3588_v44 = vrot.slane %v3587_v54, 4  ;;  %v3594_v50 = vsel %vm936_vm4, %v6388_v58, 0.0 }
0x154c   : > { %v3556_v8 = vadd.f32 %v3555_v35, %v3554_v10  ;;  %v3569_v28 = vrot.slane %v3568_v31, 2  ;;  %v3582_v13 = vadd.f32 %v3581_v22, %v3580_v27  ;;  %v3595_v25 = vrot.slane %v3594_v50, 4 }
0x154d   : > { %v3563_v56 = vadd.f32 %v3562_v1, %v3561_v19  ;;  %v3576_v33 = vrot.slane %v3575_v57, 2  ;;  %v3589_v30 = vadd.f32 %v3588_v44, %v3587_v54  ;;  %v3601_v48 = vsel %vm936_vm4, %v6392_v55, 0.0 }
0x154e   : > { %v3557_v49 = vrot.slane %v3556_v8, 1  ;;  %v3570_v14 = vadd.f32 %v3569_v28, %v3568_v31  ;;  %v3583_v26 = vrot.slane %v3582_v13, 2  ;;  %v3596_v17 = vadd.f32 %v3595_v25, %v3594_v50 }
0x154f   : > { %v3564_v41 = vrot.slane %v3563_v56, 1  ;;  %v3577_v23 = vadd.f32 %v3576_v33, %v3575_v57  ;;  %v3590_v39 = vrot.slane %v3589_v30, 2  ;;  %v3602_v40 = vrot.slane %v3601_v48, 4 }
0x1550   : > { %v3558_v34 = vadd.f32 %v3557_v49, %v3556_v8  ;;  %v3571_v51 = vrot.slane %v3570_v14, 1  ;;  %v3584_v5 = vadd.f32 %v3583_v26, %v3582_v13  ;;  %v3597_v42 = vrot.slane %v3596_v17, 2 }
0x1551   : > { %v3565_v32 = vadd.f32 %v3564_v41, %v3563_v56  ;;  %v3578_v43 = vrot.slane %v3577_v23, 1  ;;  %v3591_v36 = vadd.f32 %v3590_v39, %v3589_v30  ;;  %v3603_v59 = vadd.f32 %v3602_v40, %v3601_v48 }
0x1552   : > { %v3572_v62 = vadd.f32 %v3571_v51, %v3570_v14  ;;  %v3585_v7 = vrot.slane %v3584_v5, 1  ;;  %v3598_v24 = vadd.f32 %v3597_v42, %v3596_v17  ;;  %4978 = vrcp.f32 %v3558_v34 }
0x1553   : > { %v3579_v18 = vadd.f32 %v3578_v43, %v3577_v23  ;;  %v3592_v45 = vrot.slane %v3591_v36, 1  ;;  %v3604_v47 = vrot.slane %v3603_v59, 2  ;;  %4980 = vrcp.f32 %v3565_v32 }
0x1554   : > { %v3586_v15 = vadd.f32 %v3585_v7, %v3584_v5  ;;  %v3599_v10 = vrot.slane %v3598_v24, 1  ;;  %4982 = vrcp.f32 %v3572_v62  ;;  %v3347_v3 = vadd.f32 %v6304_v61, %v3299_v29 }
0x1555   : > { %v3593_v2 = vadd.f32 %v3592_v45, %v3591_v36  ;;  %v3605_v19 = vadd.f32 %v3604_v47, %v3603_v59  ;;  %4984 = vrcp.f32 %v3579_v18 }
0x1556   : > { %v3600_v52 = vadd.f32 %v3599_v10, %v3598_v24  ;;  %4986 = vrcp.f32 %v3586_v15  ;;  %v3625_v35 = vcombine.high %v3347_v3, %v3347_v3  ;;  %v3632_v22 = vrot.slane %v3347_v3, %v5635_v38 }
0x1557   : > { %v3606_v27 = vrot.slane %v3605_v19, 1  ;;  %4988 = vrcp.f32 %v3593_v2 }
0x1558   : > { %4990 = vrcp.f32 %v3600_v52  ;;  %v3639_v57 = vrot.slane %v3625_v35, %v5635_v38  ;;  %v3640_v8 = vcombine.high %v3632_v22, %v3632_v22 }
0x1559   : > { %v3607_v31 = vadd.f32 %v3606_v27, %v3605_v19 }
0x155a   : > { %v3641_v48 = vcombine.high %v3639_v57, %v3639_v57 }
0x155b   : > { %4992 = vrcp.f32 %v3607_v31 }
0x155c   : > { %v4979_v54 = vpop.eup %4978 }
0x155d   : > { %v4981_v1 = vpop.eup %4980  ;;  %v3616_v44 = vmul.f32 %v4979_v54, %v6364_v63 }
0x155e   : > { %v4983_v61 = vpop.eup %4982  ;;  %v3617_v29 = vmul.f32 %v4981_v1, %v6366_v6 }
0x155f   : > { %v4985_v50 = vpop.eup %4984  ;;  %v3618_v28 = vmul.f32 %v4983_v61, %v6370_v53  ;;  %v3646_v13 = vmul.f32 %v3632_v22, %v3616_v44 }
0x1560   : > { %v4987_v25 = vpop.eup %4986  ;;  %v3619_v56 = vmul.f32 %v4985_v50, %v6374_v46  ;;  %v3647_v33 = vmul.f32 %v3632_v22, %v3617_v29 }
0x1561   : > { %v4989_v30 = vpop.eup %4988  ;;  %v3620_v49 = vmul.f32 %v4987_v25, %v6378_v60  ;;  %v3648_v14 = vmul.f32 %v3640_v8, %v3618_v28  ;;  %v3654_v38 = vsel %vm936_vm4, %v3646_v13, 0.0 }
0x1562   : > { %v4991_v63 = vpop.eup %4990  ;;  %v3621_v26 = vmul.f32 %v4989_v30, %v6382_v9  ;;  %v3649_v6 = vmul.f32 %v3640_v8, %v3619_v56  ;;  %v3655_v17 = vrot.slane %v3654_v38, 4  ;;  %v3661_v41 = vsel %vm936_vm4, %v3647_v33, 0.0 }
0x1563   : > { %v3622_v53 = vmul.f32 %v4991_v63, %v6388_v58  ;;  %v3650_v23 = vmul.f32 %v3639_v57, %v3620_v49  ;;  %v3662_v39 = vrot.slane %v3661_v41, 4  ;;  %v3668_v46 = vsel %vm936_vm4, %v3648_v14, 0.0 }
0x1564   : > { %v3651_v40 = vmul.f32 %v3639_v57, %v3621_v26  ;;  %v3656_v34 = vadd.f32 %v3655_v17, %v3654_v38  ;;  %v3669_v51 = vrot.slane %v3668_v46, 4  ;;  %v3675_v60 = vsel %vm936_vm4, %v3649_v6, 0.0 }
0x1565   : > { %v4993_v5 = vpop.eup %4992  ;;  %v3663_v42 = vadd.f32 %v3662_v39, %v3661_v41  ;;  %v3676_v32 = vrot.slane %v3675_v60, 4  ;;  %v3682_v9 = vsel %vm936_vm4, %v3650_v23, 0.0  ;;  %v3652_v43 = vmul.f32 %v3641_v48, %v3622_v53 }
0x1566   : > { %v3623_v36 = vmul.f32 %v4993_v5, %v6392_v55  ;;  %v3657_v59 = vrot.slane %v3656_v34, 2  ;;  %v3670_v62 = vadd.f32 %v3669_v51, %v3668_v46  ;;  %v3683_v58 = vrot.slane %v3682_v9, 4 }
0x1567   : > { %v3664_v7 = vrot.slane %v3663_v42, 2  ;;  %v3677_v24 = vadd.f32 %v3676_v32, %v3675_v60  ;;  %v3689_v18 = vsel %vm936_vm4, %v3651_v40, 0.0  ;;  %v3696_v45 = vsel %vm936_vm4, %v3652_v43, 0.0 }
0x1568   : > { %v3658_v47 = vadd.f32 %v3657_v59, %v3656_v34  ;;  %v3671_v15 = vrot.slane %v3670_v62, 2  ;;  %v3684_v10 = vadd.f32 %v3683_v58, %v3682_v9  ;;  %v3690_v3 = vrot.slane %v3689_v18, 4 }
0x1569   : > { %v3665_v2 = vadd.f32 %v3664_v7, %v3663_v42  ;;  %v3678_v19 = vrot.slane %v3677_v24, 2  ;;  %v3653_v52 = vmul.f32 %v3641_v48, %v3623_v36  ;;  %v3697_v27 = vrot.slane %v3696_v45, 4 }
0x156a   : > { %v3659_v35 = vrot.slane %v3658_v47, 1  ;;  %v3672_v31 = vadd.f32 %v3671_v15, %v3670_v62  ;;  %v3685_v55 = vrot.slane %v3684_v10, 2  ;;  %v3691_v22 = vadd.f32 %v3690_v3, %v3689_v18 }
0x156b   : > { %v3666_v54 = vrot.slane %v3665_v2, 1  ;;  %v3679_v1 = vadd.f32 %v3678_v19, %v3677_v24  ;;  %v3698_v57 = vadd.f32 %v3697_v27, %v3696_v45  ;;  %v3703_v44 = vsel %vm936_vm4, %v3653_v52, 0.0 }
0x156c   : > { %v3660_v61 = vadd.f32 %v3659_v35, %v3658_v47  ;;  %v3673_v29 = vrot.slane %v3672_v31, 1  ;;  %v3686_v50 = vadd.f32 %v3685_v55, %v3684_v10  ;;  %v3692_v8 = vrot.slane %v3691_v22, 2 }
0x156d   : > { %v3667_v28 = vadd.f32 %v3666_v54, %v3665_v2  ;;  %v3680_v13 = vrot.slane %v3679_v1, 1  ;;  %v3699_v25 = vrot.slane %v3698_v57, 2  ;;  %v3704_v56 = vrot.slane %v3703_v44, 4 }
0x156e   : > { %v3710_v33 = vpack.c.bf16 %v3660_v61, %v3660_v61  ;;  %v3674_v30 = vadd.f32 %v3673_v29, %v3672_v31  ;;  %v3687_v48 = vrot.slane %v3686_v50, 1  ;;  %v3693_v49 = vadd.f32 %v3692_v8, %v3691_v22 }
0x156f   : > { %v3711_v14 = vpack.c.bf16 %v3667_v28, %v3667_v28  ;;  %v3681_v38 = vadd.f32 %v3680_v13, %v3679_v1  ;;  %v3700_v63 = vadd.f32 %v3699_v25, %v3698_v57  ;;  %v3705_v26 = vadd.f32 %v3704_v56, %v3703_v44  ;;  %v4847_v28 = vld [vmem:[%s6616_s19 + $0x38] sm:$0xff]   ;;  %v4849_v13 = vld [vmem:[%s6617_s10 + $0x68] sm:$0xff]  }
0x1570   : > { %v3688_v6 = vadd.f32 %v3687_v48, %v3686_v50  ;;  %v3694_v17 = vrot.slane %v3693_v49, 1  ;;  %v3712_v41 = vpack.c.bf16 %v3674_v30, %v3674_v30  ;;  %v3735_v53 = vunpack.c.l.b16 %v3710_v33 }
0x1571   : > { %v3701_v23 = vrot.slane %v3700_v63, 1  ;;  %v3706_v39 = vrot.slane %v3705_v26, 2  ;;  %v3713_v46 = vpack.c.bf16 %v3681_v38, %v3681_v38  ;;  %v3736_v40 = vunpack.c.l.b16 %v3711_v14 }
0x1572   : > { %v3695_v34 = vadd.f32 %v3694_v17, %v3693_v49  ;;  %v3714_v51 = vpack.c.bf16 %v3688_v6, %v3688_v6  ;;  %v3737_v60 = vunpack.c.l.b16 %v3712_v41  ;;  %v3726_v27 = vrot.slane %v6300_v20, %v5762_v4  ;;  %v4846_v4 = vld [vmem:[%s6616_s19 + $0x30] sm:$0xff]  }
0x1573   : > { %v3702_v5 = vadd.f32 %v3701_v23, %v3700_v63  ;;  %v3707_v42 = vadd.f32 %v3706_v39, %v3705_v26  ;;  %v3738_v32 = vunpack.c.l.b16 %v3713_v46  ;;  %v3743_v9 = vsel %vm1207_vm5, %v3736_v40, %v3735_v53  ;;  %4678 = vmatpush3.bf16.msra.mxu0 %v4846_v4  ;;  %v4850_v6 = vld [vmem:[%s6617_s10 + $0x70] sm:$0xff]  }
0x1574   : > { %v3715_v43 = vpack.c.bf16 %v3695_v34, %v3695_v34  ;;  %v3739_v36 = vunpack.c.l.b16 %v3714_v51  ;;  %v3744_v59 = vsel %vm1209_vm6, %v3737_v60, %v3743_v9  ;;  %4679 = vmatprep.subr.bf16.mxu0 %v5235_v0  ;;  %v3823_v30 = vrot.slane %v6300_v20, %v5786_v21  ;;  %v4851_v21 = vld [vmem:[%s6617_s10 + $0x78] sm:$0xff]  }
0x1575   : > { %v3708_v62 = vrot.slane %v3707_v42, 1  ;;  %v3716_v58 = vpack.c.bf16 %v3702_v5, %v3702_v5  ;;  %v3745_v7 = vsel %vm1211_vm7, %v3738_v32, %v3744_v59  ;;  %v3828_v14 = vrot.slane %v6300_v20, %v5789_v37  ;;  %v4372_v37 = vld [vmem:[#allocation9 + $0x3] ss:$0 sm:$0xff] }
0x1576   : > { %v3740_v24 = vunpack.c.l.b16 %v3715_v43  ;;  %v3746_v18 = vsel %vm1213_vm8, %v3739_v36, %v3745_v7  ;;  %v3911_v34 = vrot.slane %v6300_v20, %v5810_v16  ;;  %v4852_v16 = vld [vmem:[%s6618_s26] sm:$0xff]  }
0x1577   : > { %v3709_v45 = vadd.f32 %v3708_v62, %v3707_v42  ;;  %v3741_v47 = vunpack.c.l.b16 %v3716_v58  ;;  %4680 = vmatpush3.bf16.msra.mxu0 %v4847_v28 }
0x1578   : > { %v3747_v15 = vsel %vm1215_vm9, %v3740_v24, %v3746_v18  ;;  %4697 = vmatprep.subr.bf16.mxu0 %v5235_v0  ;;  %v4853_v24 = vld [vmem:[%s6618_s26 + $0x8] sm:$0xff]  }
0x1579   : > { %v3717_v10 = vpack.c.bf16 %v3709_v45, %v3709_v45  ;;  %v3748_v3 = vsel %vm1217_vm10, %v3741_v47, %v3747_v15  ;;  %v3996_v15 = vrot.slane %v6300_v20, %v5833_v12 }
0x157b   : > { %v3742_v2 = vunpack.c.l.b16 %v3717_v10 }
0x157d   : > { %v3749_v19 = vsel %vm1219_vm11, %v3742_v2, %v3748_v3  ;;  %v4389_v2 = vld [vmem:[%s6615_s9 + $0x38] ss:$0 sm:$0xff] }
0x157e   : > { %v3750_v52 = vpack.c.b16 %v3749_v19, %v3749_v19 }
0x1580   : > { %4674 = vmatmul.mubr.msk.bf16.vlgmr.msra.gmra.mrb[44].mxu1 %vm652_vm3, %v3750_v52 }
0x1581   : > { %4693 = vmatprep.mubr.msk.bf16.mxu1 %vm5236_vm0, %v5235_v0 }
0x1653   : > { %v3800_v35 = vpop.f32.mrb[44].mxu1 }
0x1654   : > { %v3801_v31 = vadd.f32 %v3800_v35, %v3726_v27  ;;  %v4675_v55 = vpop.f32.mrb[45].mxu1 }
0x1655   : > { %v3803_v22 = vpop.f32.mrb[46].mxu1 }
0x1656   : > { %v4676_v54 = vpop.f32.mrb[47].mxu1  ;;  %v3806_v1 = vadd.f32 %v3801_v31, %v6274_v11  ;;  %v4848_v11 = vld [vmem:[%s6617_s10 + $0x60] sm:$0xff]  }
0x1657   : > { %4686 = vmatpush3.bf16.msra.mxu1 %v4848_v11 }
0x1658   : > { %v3807_v57 = vsel %vm652_vm3, %v3806_v1, 0.0  ;;  %4687 = vmatprep.subr.bf16.mxu1 %v5235_v0 }
0x1659   : > { %3808 = vadd.xlane.f32.xlu0 %v3807_v57 }
0x165b   : > { %4688 = vmatpush3.bf16.msra.mxu1 %v4849_v13 }
0x165c   : > { %4689 = vmatprep.subr.bf16.mxu1 %v5235_v0 }
0x165f   : > { %4690 = vmatpush3.bf16.msra.mxu1 %v4850_v6 }
0x1660   : > { %4691 = vmatprep.subr.bf16.mxu1 %v5235_v0 }
0x1663   : > { %4692 = vmatpush3.bf16.msra.mxu1 %v4851_v21 }
0x16e6   : > { %v3809_v44 = vpop.xlane.xlu0 %3808 }
0x16e7   : > { %v3810_v61 = vmul.f32 0.03125, %v3809_v44 }
0x16e9   : > { %v3811_v29 = vsub.f32 %v3806_v1, %v3810_v61 }
0x16eb   : > { %v3812_v50 = vmul.f32 %v3811_v29, %v3811_v29 }
0x16ed   : > { %v3813_v8 = vsel %vm652_vm3, %v3812_v50, 0.0 }
0x16ee   : > { %3814 = vadd.xlane.f32.xlu1 %v3813_v8 }
0x177b   : > { %v3815_v25 = vpop.xlane.xlu1 %3814 }
0x177c   : > { %v3816_v56 = vmul.f32 0.03125, %v3815_v25 }
0x177e   : > { %v3817_v33 = vadd.f32 1e-05, %v3816_v56 }
0x1780   : > { %4994 = vrsqrt.f32 %v3817_v33 }
0x178a   : > { %v4995_v48 = vpop.eup %4994 }
0x178b   : > { %v3819_v49 = vmul.f32 %v4995_v48, %v3811_v29 }
0x178d   : > { %v3824_v38 = vmul.f32 %v3823_v30, %v3819_v49 }
0x178f   : > { %v3829_v63 = vadd.f32 %v3828_v14, %v3824_v38 }
0x1791   : > { %v3830_v26 = vpack.c.bf16 %v3829_v63, %v3829_v63 }
0x1793   : > { %4682 = vmatmul.mubr.msk.bf16.vlgmr.msra.gmra.mrb[44].mxu0 %vm652_vm3, %v3830_v26 }
0x1794   : > { %4701 = vmatprep.mubr.msk.bf16.mxu0 %vm5236_vm0, %v5235_v0  ;;  %4698 = vmatpush3.bf16.msra.mxu0 %v4852_v16 }
0x1795   : > { %4699 = vmatprep.subr.bf16.mxu0 %v5235_v0  ;;  %v4390_v0 = vld [vmem:[%s6619_s13] ss:$0 sm:$0xff] }
0x1798   : > { %4700 = vmatpush3.bf16.msra.mxu0 %v4853_v24 }
0x1866   : > { %v3891_v17 = vpop.f32.mrb[44].mxu0 }
0x1867   : > { %v3892_v41 = vadd.f32 %v4372_v37, %v3891_v17  ;;  %v4683_v53 = vpop.f32.mrb[45].mxu0 }
0x1868   : > { %v3894_v23 = vpop.f32.mrb[46].mxu0 }
0x1869   : > { %v3897_v39 = vmax.f32 %v3892_v41, 0.0  ;;  %v4684_v46 = vpop.f32.mrb[47].mxu0 }
0x186b   : > { %v3898_v40 = vpack.c.bf16 %v3897_v39, %v3897_v39 }
0x186d   : > { %4694 = vmatmul.mubr.msk.bf16.vlgmr.msra.gmra.mrb[48].mxu1 %vm1406_vm12, %v3898_v40 }
0x1940   : > { %v3973_v51 = vpop.f32.mrb[48].mxu1 }
0x1941   : > { %v3974_v60 = vadd.f32 %v3973_v51, %v3911_v34  ;;  %v4695_v5 = vpop.f32.mrb[49].mxu1 }
0x1942   : > { %v3976_v42 = vpop.f32.mrb[50].mxu1 }
0x1943   : > { %v4696_v32 = vpop.f32.mrb[51].mxu1  ;;  %v3979_v9 = vadd.f32 %v3974_v60, %v3829_v63 }
0x1945   : > { %v3980_v43 = vsel %vm652_vm3, %v3979_v9, 0.0 }
0x1946   : > { %3981 = vadd.xlane.f32.xlu0 %v3980_v43 }
0x19d3   : > { %v3982_v36 = vpop.xlane.xlu0 %3981 }
0x19d4   : > { %v3983_v59 = vmul.f32 0.03125, %v3982_v36 }
0x19d6   : > { %v3984_v62 = vsub.f32 %v3979_v9, %v3983_v59 }
0x19d8   : > { %v3985_v58 = vmul.f32 %v3984_v62, %v3984_v62 }
0x19da   : > { %v3986_v7 = vsel %vm652_vm3, %v3985_v58, 0.0 }
0x19db   : > { %3987 = vadd.xlane.f32.xlu1 %v3986_v7 }
0x1a68   : > { %v3988_v18 = vpop.xlane.xlu1 %3987 }
0x1a69   : > { %v3989_v45 = vmul.f32 0.03125, %v3988_v18 }
0x1a6b   : > { %v3990_v47 = vadd.f32 1e-05, %v3989_v45 }
0x1a6d   : > { %4996 = vrsqrt.f32 %v3990_v47 }
0x1a77   : > { %v4997_v10 = vpop.eup %4996 }
0x1a78   : > { %v3992_v3 = vmul.f32 %v4997_v10, %v3984_v62 }
0x1a7a   : > { %v3997_v19 = vmul.f32 %v3996_v15, %v3992_v3 }
0x1a7c   : > { %v4002_v52 = vadd.f32 %v4389_v2, %v3997_v19 }
0x1a7e   : > { %v4003_v27 = vpack.c.bf16 %v4002_v52, %v4002_v52 }
0x1a80   : > { %4702 = vmatmul.mubr.msk.bf16.vlgmr.msra.gmra.mrb[48].mxu0 %vm652_vm3, %v4003_v27 }
0x1b53   : > { %v4064_v12 = vpop.f32.mrb[48].mxu0 }
0x1b54   : > { %v4065_v20 = vadd.f32 %v4390_v0, %v4064_v12  ;;  %v4703_v35 = vpop.f32.mrb[49].mxu0 }
0x1b55   : > { %v4067_v31 = vpop.f32.mrb[50].mxu0 }
0x1b56   : > { %4070 = vst [vmem:[%s560_s28] sm:$0xff] %v4065_v20  ;;  %v4704_v55 = vpop.f32.mrb[51].mxu0 }
0x1b57   : > { %5155 = shalt.err (!%p5152_p5)
}
0x1b58   : > { %s5156_s27 = scalar_lea.hbm %s6488_s25, 128  ;;  %s5160_s21 = scalar_lea.hbm %s6621_s22, 256 }
0x1b59   : > { %p5157_p0 = scmp.ne.s32.totalorder %s6488_s25, %s5156_s27  ;;  %p5161_p4 = scmp.lt.u32.totalorder %s6488_s25, %s6621_s22 }
0x1b5a   : > { %p5162_p6 = scmp.lt.u32.totalorder %s5160_s21, %s5156_s27  ;;  %p5164_p3 = scmp.lt.u32.totalorder %s5156_s27, %s6488_s25 }
0x1b5b   : > { %p5158_p12 = pnand %p5157_p0, %p6622_p13 }
0x1b5c   : > { %p5163_p10 = por %p5162_p6, %p5161_p4 }
0x1b5d   : > { %p5159_p1 = pneg %p5158_p12 }
0x1b5e   : > { %p5165_p8 = por %p5164_p3, %p5163_p10 }
0x1b60   : > { %p5166_p11 = pnand %p5165_p8, %p5159_p1 }
0x1b62   : > { %5169 = shalt.err (!%p5166_p11)
}
0x1b63   : > { %4721 = dma.vmem_to_hbm [thread:$0]  (%p6622_p13), %s6490_s14, 128, %s6488_s25, %s4072_s17  }
0x1b64 PF: > { %s6623_s12 = sld [smem:[#allocation18_spill]]  ;;  %s6624_s28 = sld [smem:[#allocation21_spill]] }
0x1b65   : > { %s6625_s1 = sld [smem:[#allocation20_spill]] }
0x1b6a   : > { %s4097_s0 = sand.u32 1, %s6623_s12   ;;  %p6626_p2 = scmp.ne.s32.totalorder %s6624_s28, 0 }
0x1b6b   : > { %p6627_p7 = scmp.ge.s32.totalorder %s6625_s1, 2  ;;  %s4098_s15 = scalar_lea.sflag [#allocation4], %s4097_s0 }
0x1b6d   : > { %p4741_p9 = pnand %p6627_p7, %p6626_p2 }
0x1b6f   : > { %5207 = dma.done.wait (!%p4741_p9), %s4098_s15, 128  }
0x1b70   : > { %5209 = vsyncadd (!%p4741_p9), %s4098_s15, 4294967168  ;;  %s6628_s16 = sld [smem:[#allocation22_spill]]  ;;  %s6629_s24 = sld [smem:[#allocation19_spill]] }
0x1b71   : > { %s6630_s15 = sld [smem:[#allocation23_spill]]  ;;  %s6631_s29 = smov %s5216_s30 }
0x1b76   : > { %p29_p5 = scmp.ge.s32.totalorder %s6628_s16, 4   ;;  %s6632_s30 = smov %s6629_s24 }
0x1b78   :  { %31 = sbr.rel (!%p29_p5) target bundleno = 17 (0x11), region = 168 }
0x1b7f   :  { %4103 = vsyncpa [#allocation3], 1 }
0x1b80   :  { %4105 = vsyncpa [#allocation3 + $0x1], 1 }
0x1b81   :  { %4106 = vsyncpa [#allocation6], 1 }
0x1b82   :  { %4107 = vsyncpa [#allocation10], 1 }
0x1b83   :  { %4108 = vsyncpa [#allocation4], 1 }
0x1b84   :  { %4110 = vsyncpa [#allocation4 + $0x1], 1 }

</bundles_post_ra>
